<compile_context>
chip_gen: v7x
topology: tpu7x:2x2x1
jax: 0.10.0
libtpu: 0.0.40
codegen_flags: <defaults>
</compile_context>

<pallas_src>
import numpy as np
import jax
import jax.numpy as jnp
from jax import lax
from jax.experimental import pallas as pl
from jax.experimental.pallas import tpu as pltpu

# ---------------- static configuration (small shapes) ----------------
B = 1                      # inference squeezes batch 0
C = 3
H_IN, W_IN = 48, 48        # raw input image size
RES = (32, 32)             # stands in for the (224, 224) CLIP resolution
PATCH = 4
HP, WP = RES[0] // PATCH, RES[1] // PATCH     # mask-logit grid (8, 8)
Q = 20                     # hard-coded .view(-1, 20, 1, 1) in the module
D_EMB = 32                 # stands in for the CLIP text-embedding dim
N_LABELS = 12              # registered vocabulary size
UNLABEL_IDX = N_LABELS - 1
OUT_H, OUT_W = 48, 48      # (height, width) of batched_inputs[0]
TEMP = 0.07
RAW_CHUNKS = 4                                  # 960 rows -> 4 x 240-row matmuls
ROWS_PER_CHUNK = (Q * OUT_H) // RAW_CHUNKS


# ---------------- glue: bilinear interpolation matrices (host, numpy) ----------------
def bilinear_matrix(out_size, in_size):
    """Row-interpolation matrix matching F.interpolate(..., align_corners=False)."""
    m = np.zeros((out_size, in_size), dtype=np.float32)
    scale = in_size / out_size
    for d in range(out_size):
        src = (d + 0.5) * scale - 0.5
        src = min(max(src, 0.0), in_size - 1)
        lo = int(np.floor(src))
        hi = min(lo + 1, in_size - 1)
        w_hi = src - lo
        m[d, lo] += 1.0 - w_hi
        m[d, hi] += w_hi
    return m


# ---------------- the single fused kernel ----------------
def coseg_fused_kernel(x_ref, ryb_ref, rxt_ref, scale_ref, offset_ref,
                       wl_ref, wr_ref, wq_ref, we_ref, labt_ref,
                       uxt_ref, uyb_ref,
                       raw_ref, pix_ref, sem_ref, ids_ref):
    f32 = jnp.float32
    bf16 = jnp.bfloat16

    # -- prepare_inputs: bilinear 48->32 resize for all 3 channels in 2 matmuls
    #    (channels stacked on sublanes, kron'd y-matrix shared x-matrix); the
    #    (x/255 - mean)/std affine is folded into one per-row FMA after resize.
    ty = jnp.dot(ryb_ref[...], x_ref[...].astype(bf16),
                 preferred_element_type=f32)                                   # (96, 48)
    pix = jnp.dot(ty.astype(bf16), rxt_ref[...], preferred_element_type=f32)   # (96, 32)
    pix = pix * scale_ref[...] - offset_ref[...]
    pix_ref[...] = pix
    pix_b = pix.astype(bf16)

    # -- predictor surrogate (separable linear), channel contraction fused (K=96)
    macc = jnp.dot(wl_ref[...], pix_b, preferred_element_type=f32)             # (Q*HP, 32)
    m_stack = jnp.dot(macc.astype(bf16), wr_ref[...],
                      preferred_element_type=f32)                              # (Q*HP, WP)
    pacc = jnp.dot(wq_ref[...], pix_b, preferred_element_type=f32)             # (Q, 32)
    emb = jnp.dot(pacc.astype(bf16), we_ref[...], preferred_element_type=f32)  # (Q, D_EMB)

    # -- class probabilities: F.normalize, @ label_emb.T / temp, softmax, max/argmax
    en = emb * lax.rsqrt(jnp.sum(emb * emb, axis=-1, keepdims=True) + 1e-12)
    logits = jnp.dot(en.astype(bf16), labt_ref[...],
                     preferred_element_type=f32) * (1.0 / TEMP)                # (Q, N_LABELS)
    mx = jnp.max(logits, axis=-1, keepdims=True)
    ex = jnp.exp(logits - mx)
    probs = ex * pl.reciprocal(jnp.sum(ex, axis=-1, keepdims=True), approx=True)
    cp = jnp.max(probs, axis=-1, keepdims=True)                                # (Q, 1)
    lane = lax.broadcasted_iota(jnp.int32, probs.shape, 1)
    ids = jnp.min(jnp.where(probs == cp, lane, N_LABELS),
                  axis=-1, keepdims=True).astype(jnp.int32)                    # first argmax
    ids_ref[...] = ids

    # -- sigmoid + separable bilinear upsample for ALL 20 queries:
    #    one (160,8)@(8,48) x-dot, then the y-dot as ONE block-diagonal matmul
    #    (kron(I_Q, uy)) executed in 4 row-chunks written straight to 'raw'.
    sig = jax.nn.sigmoid(m_stack)                                              # (Q*HP, WP)
    part_b = jnp.dot(sig.astype(bf16), uxt_ref[...],
                     preferred_element_type=f32).astype(bf16)                  # (Q*HP, Wo)
    for ck in range(RAW_CHUNKS):
        rows = slice(ck * ROWS_PER_CHUNK, (ck + 1) * ROWS_PER_CHUNK)
        raw_ref[rows, :] = jnp.dot(uyb_ref[rows, :], part_b,
                                   preferred_element_type=f32)                 # (240, Wo)

    # -- running argmax over the 20 queries of cp[q] * raw[q]; weighting the
    #    already-upsampled probabilities is algebraically identical to the
    #    reference's pre-upsample weighting (rep8/partw path removed).
    best = jnp.full((OUT_H, OUT_W), -1.0, dtype=f32)
    inter = jnp.zeros((OUT_H, OUT_W), jnp.int32)
    for q in range(Q):
        blk = raw_ref[q * OUT_H:(q + 1) * OUT_H, :]          # (48,48), 8-row aligned load
        wup = blk * cp[q:q + 1, 0:1]
        upd = wup > best
        inter = jnp.where(upd, q, inter)
        best = jnp.where(upd, wup, best)

    # -- final-mask assembly (device version of the reference numpy loop)
    qiota = lax.broadcasted_iota(jnp.int32, (Q, 1), 0).astype(f32)
    final = jnp.zeros((OUT_H, OUT_W), jnp.int32)
    for l in range(N_LABELS):
        if l == UNLABEL_IDX:
            continue
        is_l = ids == l                                       # (Q, 1)
        cp_l = jnp.where(is_l, cp, -1.0)
        best_p = jnp.max(cp_l, axis=0, keepdims=True)         # (1, 1)
        cand = jnp.where(is_l & (cp_l >= best_p), qiota, float(Q))
        best_q = jnp.min(cand, axis=0, keepdims=True).astype(jnp.int32)   # first best query
        final = jnp.where(inter == best_q, l, final)

    # -- one_hot(final): single broadcast compare + one store
    sem_ref[...] = (lax.broadcasted_iota(jnp.int32, (N_LABELS, OUT_H, OUT_W), 0)
                    == final[None]).astype(jnp.int32)


# ---------------- device portion of CoSeg_wrapper.inference ----------------
@jax.jit
def coseg_device_inference(image, params):
    # channels stacked on the sublane axis (free, contiguous reshape in HBM)
    x_stack = image.reshape(C * H_IN, W_IN)
    raw, pix, sem, ids = pl.pallas_call(
        coseg_fused_kernel,
        out_shape=(
            jax.ShapeDtypeStruct((Q * OUT_H, OUT_W), jnp.float32),     # 'raw' (stacked)
            jax.ShapeDtypeStruct((C * RES[0], RES[1]), jnp.float32),   # resized pixels
            jax.ShapeDtypeStruct((N_LABELS, OUT_H, OUT_W), jnp.int32), # 'sem_seg'
            jax.ShapeDtypeStruct((Q, 1), jnp.int32),                   # 'ids'
        ),
        in_specs=[pl.BlockSpec(memory_space=pltpu.MemorySpace.VMEM)] * 12,
        out_specs=(
            pl.BlockSpec(memory_space=pltpu.MemorySpace.VMEM),
            pl.BlockSpec(memory_space=pltpu.MemorySpace.VMEM),
            pl.BlockSpec(memory_space=pltpu.MemorySpace.VMEM),
            pl.BlockSpec(memory_space=pltpu.MemorySpace.VMEM),
        ),
        cost_estimate=pl.CostEstimate(flops=18_000_000, transcendentals=3_000,
                                      bytes_accessed=760_000),
    )(x_stack,
      params["ry_block"], params["rxT"],
      params["scale_col"], params["offset_col"],
      params["w_mask"], params["w_mask_r"],
      params["w_emb"], params["w_emb_r"],
      params["label_embT"], params["uxT"], params["uy_block"])
    # reshape back to the reference API shapes (HBM layout plumbing, not kernel work)
    raw = raw.reshape(1, Q, OUT_H, OUT_W)
    pix = pix.reshape(1, C, RES[0], RES[1])
    return raw, pix, sem, ids


def coseg_wrapper_inference(image, params):
    raw, pixels, sem_seg, ids = coseg_device_inference(image, params)
    # Reference API returns predicted_ids as numpy; only this tiny (20,) copy
    # leaves the device -- no host-side control flow gates device work.
    return [{"sem_seg": sem_seg, "raw": raw, "input": pixels,
             "ids": np.asarray(ids)[:, 0]}]


if __name__ == "__main__":
    key = jax.random.PRNGKey(0)
    k_img, k_wl, k_wr, k_ql, k_qr, k_lab = jax.random.split(key, 6)

    image = jax.random.uniform(k_img, (B, C, H_IN, W_IN), jnp.float32, 0.0, 255.0)

    pixel_mean = np.array([0.48145466, 0.4578275, 0.40821073], np.float32)
    pixel_std = np.array([0.26862954, 0.26130258, 0.27577711], np.float32)
    scale = 1.0 / (255.0 * pixel_std)          # host-precomputed affine (no divides in-kernel)
    offset = pixel_mean / pixel_std

    ry = bilinear_matrix(RES[0], H_IN)         # (32, 48)
    rx = bilinear_matrix(RES[1], W_IN)         # (32, 48)
    uy = bilinear_matrix(OUT_H, HP)            # (48, 8)
    ux = bilinear_matrix(OUT_W, WP)            # (48, 8)

    lab = jax.random.normal(k_lab, (N_LABELS, D_EMB), jnp.float32)
    lab = lab / jnp.linalg.norm(lab, axis=-1, keepdims=True)   # register_vocabulary normalize

    params = {
        # per-channel affine, expanded to one value per stacked pixel row
        "scale_col": jnp.asarray(np.repeat(scale, RES[0]).reshape(C * RES[0], 1)),
        "offset_col": jnp.asarray(np.repeat(offset, RES[0]).reshape(C * RES[0], 1)),
        # bilinear resize / upsample matrices (F.interpolate, align_corners=False),
        # kron'd so the whole channel / query stacks go through single matmuls
        "ry_block": jnp.asarray(np.kron(np.eye(C, dtype=np.float32), ry), jnp.bfloat16),
        "rxT": jnp.asarray(rx.T, jnp.bfloat16),                    # (48, 32)
        "uy_block": jnp.asarray(np.kron(np.eye(Q, dtype=np.float32), uy), jnp.bfloat16),
        "uxT": jnp.asarray(ux.T, jnp.bfloat16),                    # (8, 48)
        # deterministic separable-linear predictor surrogate weights
        # TODO(synk): stands in for pretrained CLIP ViT + CLIPSegDecoder.
        "w_mask": (0.05 * jax.random.normal(k_wl, (Q * HP, C * RES[0]),
                                            jnp.float32)).astype(jnp.bfloat16),
        "w_mask_r": (0.05 * jax.random.normal(k_wr, (RES[1], WP),
                                              jnp.float32)).astype(jnp.bfloat16),
        "w_emb": (0.05 * jax.random.normal(k_ql, (Q, C * RES[0]),
                                           jnp.float32)).astype(jnp.bfloat16),
        "w_emb_r": (0.05 * jax.random.normal(k_qr, (RES[1], D_EMB),
                                             jnp.float32)).astype(jnp.bfloat16),
        # registered vocabulary, pre-transposed for the in-kernel logits matmul
        "label_embT": lab.T.astype(jnp.bfloat16),                  # (D_EMB, N_LABELS)
    }

    out = coseg_wrapper_inference(image, params)
    jax.block_until_ready(out[0]["sem_seg"])
    jax.block_until_ready(out[0]["raw"])
    jax.block_until_ready(out[0]["input"])
    print("KERNEL_OK")
</pallas_src>

<mosaic_0001>
module attributes {stable_mosaic.version = 11 : i64} {
  func.func @coseg_fused_kernel(%arg0: memref<144x48xf32, #tpu.memory_space<vmem>>, %arg1: memref<96x144xbf16, #tpu.memory_space<vmem>>, %arg2: memref<48x32xbf16, #tpu.memory_space<vmem>>, %arg3: memref<96x1xf32, #tpu.memory_space<vmem>>, %arg4: memref<96x1xf32, #tpu.memory_space<vmem>>, %arg5: memref<160x96xbf16, #tpu.memory_space<vmem>>, %arg6: memref<32x8xbf16, #tpu.memory_space<vmem>>, %arg7: memref<20x96xbf16, #tpu.memory_space<vmem>>, %arg8: memref<32x32xbf16, #tpu.memory_space<vmem>>, %arg9: memref<32x12xbf16, #tpu.memory_space<vmem>>, %arg10: memref<8x48xbf16, #tpu.memory_space<vmem>>, %arg11: memref<960x160xbf16, #tpu.memory_space<vmem>>, %arg12: memref<960x48xf32, #tpu.memory_space<vmem>>, %arg13: memref<96x32xf32, #tpu.memory_space<vmem>>, %arg14: memref<12x48x48xi32, #tpu.memory_space<vmem>>, %arg15: memref<20x1xi32, #tpu.memory_space<vmem>>) attributes {dimension_semantics = [], scalar_prefetch = 0 : i64, scratch_operands = 0 : i64, tpu.core_type = #tpu.core_type<tc>} {
    %c0 = arith.constant 0 : index
    %c0_0 = arith.constant 0 : index
    %0 = vector.load %arg1[%c0, %c0_0] : memref<96x144xbf16, #tpu.memory_space<vmem>>, vector<96x144xbf16>
    %c0_1 = arith.constant 0 : index
    %c0_2 = arith.constant 0 : index
    %1 = vector.load %arg0[%c0_1, %c0_2] : memref<144x48xf32, #tpu.memory_space<vmem>>, vector<144x48xf32>
    %2 = arith.truncf %1 : vector<144x48xf32> to vector<144x48xbf16>
    %cst = arith.constant dense<0.000000e+00> : vector<96x48xf32>
    %3 = tpu.matmul %0, %2, %cst {dimension_numbers = #tpu.dot_dimension_numbers<[1], [0], [0], [1], [0, 0, 1, 1], [], []>} : vector<96x144xbf16>, vector<144x48xbf16>, vector<96x48xf32> -> vector<96x48xf32>
    %4 = arith.truncf %3 : vector<96x48xf32> to vector<96x48xbf16>
    %c0_3 = arith.constant 0 : index
    %c0_4 = arith.constant 0 : index
    %5 = vector.load %arg2[%c0_3, %c0_4] : memref<48x32xbf16, #tpu.memory_space<vmem>>, vector<48x32xbf16>
    %cst_5 = arith.constant dense<0.000000e+00> : vector<96x32xf32>
    %6 = tpu.matmul %4, %5, %cst_5 {dimension_numbers = #tpu.dot_dimension_numbers<[1], [0], [0], [1], [0, 0, 1, 1], [], []>} : vector<96x48xbf16>, vector<48x32xbf16>, vector<96x32xf32> -> vector<96x32xf32>
    %c0_6 = arith.constant 0 : index
    %c0_7 = arith.constant 0 : index
    %7 = vector.load %arg3[%c0_6, %c0_7] : memref<96x1xf32, #tpu.memory_space<vmem>>, vector<96x1xf32>
    %8 = vector.broadcast %7 : vector<96x1xf32> to vector<96x32xf32>
    %9 = arith.mulf %6, %8 : vector<96x32xf32>
    %c0_8 = arith.constant 0 : index
    %c0_9 = arith.constant 0 : index
    %10 = vector.load %arg4[%c0_8, %c0_9] : memref<96x1xf32, #tpu.memory_space<vmem>>, vector<96x1xf32>
    %11 = vector.broadcast %10 : vector<96x1xf32> to vector<96x32xf32>
    %12 = arith.subf %9, %11 : vector<96x32xf32>
    %c0_10 = arith.constant 0 : index
    %c0_11 = arith.constant 0 : index
    %13 = vector.load %arg13[%c0_10, %c0_11] : memref<96x32xf32, #tpu.memory_space<vmem>>, vector<96x32xf32>
    tpu.vector_store %arg13[%c0_10, %c0_11], %12 {strides = array<i32>} : memref<96x32xf32, #tpu.memory_space<vmem>>, vector<96x32xf32>,
    %14 = arith.truncf %12 : vector<96x32xf32> to vector<96x32xbf16>
    %c0_12 = arith.constant 0 : index
    %c0_13 = arith.constant 0 : index
    %15 = vector.load %arg5[%c0_12, %c0_13] : memref<160x96xbf16, #tpu.memory_space<vmem>>, vector<160x96xbf16>
    %cst_14 = arith.constant dense<0.000000e+00> : vector<160x32xf32>
    %16 = tpu.matmul %15, %14, %cst_14 {dimension_numbers = #tpu.dot_dimension_numbers<[1], [0], [0], [1], [0, 0, 1, 1], [], []>} : vector<160x96xbf16>, vector<96x32xbf16>, vector<160x32xf32> -> vector<160x32xf32>
    %17 = arith.truncf %16 : vector<160x32xf32> to vector<160x32xbf16>
    %c0_15 = arith.constant 0 : index
    %c0_16 = arith.constant 0 : index
    %18 = vector.load %arg6[%c0_15, %c0_16] : memref<32x8xbf16, #tpu.memory_space<vmem>>, vector<32x8xbf16>
    %cst_17 = arith.constant dense<0.000000e+00> : vector<160x8xf32>
    %19 = tpu.matmul %17, %18, %cst_17 {dimension_numbers = #tpu.dot_dimension_numbers<[1], [0], [0], [1], [0, 0, 1, 1], [], []>} : vector<160x32xbf16>, vector<32x8xbf16>, vector<160x8xf32> -> vector<160x8xf32>
    %c0_18 = arith.constant 0 : index
    %c0_19 = arith.constant 0 : index
    %20 = vector.load %arg7[%c0_18, %c0_19] : memref<20x96xbf16, #tpu.memory_space<vmem>>, vector<20x96xbf16>
    %cst_20 = arith.constant dense<0.000000e+00> : vector<20x32xf32>
    %21 = tpu.matmul %20, %14, %cst_20 {dimension_numbers = #tpu.dot_dimension_numbers<[1], [0], [0], [1], [0, 0, 1, 1], [], []>} : vector<20x96xbf16>, vector<96x32xbf16>, vector<20x32xf32> -> vector<20x32xf32>
    %22 = arith.truncf %21 : vector<20x32xf32> to vector<20x32xbf16>
    %c0_21 = arith.constant 0 : index
    %c0_22 = arith.constant 0 : index
    %23 = vector.load %arg8[%c0_21, %c0_22] : memref<32x32xbf16, #tpu.memory_space<vmem>>, vector<32x32xbf16>
    %cst_23 = arith.constant dense<0.000000e+00> : vector<20x32xf32>
    %24 = tpu.matmul %22, %23, %cst_23 {dimension_numbers = #tpu.dot_dimension_numbers<[1], [0], [0], [1], [0, 0, 1, 1], [], []>} : vector<20x32xbf16>, vector<32x32xbf16>, vector<20x32xf32> -> vector<20x32xf32>
    %25 = arith.mulf %24, %24 : vector<20x32xf32>
    %cst_24 = arith.constant dense<0.000000e+00> : vector<20xf32>
    %26 = vector.multi_reduction <add>, %25, %cst_24 [1] : vector<20x32xf32> to vector<20xf32>
    %27 = vector.shape_cast %26 : vector<20xf32> to vector<20x1xf32>
    %cst_25 = arith.constant 9.99999996E-13 : f32
    %28 = vector.broadcast %cst_25 : f32 to vector<20x1xf32>
    %29 = arith.addf %27, %28 : vector<20x1xf32>
    %30 = math.rsqrt %29 : vector<20x1xf32>
    %31 = vector.broadcast %30 : vector<20x1xf32> to vector<20x32xf32>
    %32 = arith.mulf %24, %31 : vector<20x32xf32>
    %33 = arith.truncf %32 : vector<20x32xf32> to vector<20x32xbf16>
    %c0_26 = arith.constant 0 : index
    %c0_27 = arith.constant 0 : index
    %34 = vector.load %arg9[%c0_26, %c0_27] : memref<32x12xbf16, #tpu.memory_space<vmem>>, vector<32x12xbf16>
    %cst_28 = arith.constant dense<0.000000e+00> : vector<20x12xf32>
    %35 = tpu.matmul %33, %34, %cst_28 {dimension_numbers = #tpu.dot_dimension_numbers<[1], [0], [0], [1], [0, 0, 1, 1], [], []>} : vector<20x32xbf16>, vector<32x12xbf16>, vector<20x12xf32> -> vector<20x12xf32>
    %cst_29 = arith.constant 14.2857141 : f32
    %36 = vector.broadcast %cst_29 : f32 to vector<20x12xf32>
    %37 = arith.mulf %35, %36 : vector<20x12xf32>
    %cst_30 = arith.constant dense<0xFF800000> : vector<20xf32>
    %38 = vector.multi_reduction <maximumf>, %37, %cst_30 [1] : vector<20x12xf32> to vector<20xf32>
    %39 = vector.shape_cast %38 : vector<20xf32> to vector<20x1xf32>
    %40 = vector.broadcast %39 : vector<20x1xf32> to vector<20x12xf32>
    %41 = arith.subf %37, %40 : vector<20x12xf32>
    %42 = math.exp %41 : vector<20x12xf32>
    %cst_31 = arith.constant dense<0.000000e+00> : vector<20xf32>
    %43 = vector.multi_reduction <add>, %42, %cst_31 [1] : vector<20x12xf32> to vector<20xf32>
    %44 = vector.shape_cast %43 : vector<20xf32> to vector<20x1xf32>
    %45 = tpu.reciprocal %44 {approx = true} : vector<20x1xf32> -> vector<20x1xf32>
    %46 = vector.broadcast %45 : vector<20x1xf32> to vector<20x12xf32>
    %47 = arith.mulf %42, %46 : vector<20x12xf32>
    %cst_32 = arith.constant dense<0xFF800000> : vector<20xf32>
    %48 = vector.multi_reduction <maximumf>, %47, %cst_32 [1] : vector<20x12xf32> to vector<20xf32>
    %49 = vector.shape_cast %48 : vector<20xf32> to vector<20x1xf32>
    %50 = tpu.iota {dimensions = array<i32: 1>} : vector<20x12xi32>
    %51 = vector.broadcast %49 : vector<20x1xf32> to vector<20x12xf32>
    %52 = arith.cmpf oeq, %47, %51 : vector<20x12xf32>
    %c12_i32 = arith.constant 12 : i32
    %53 = vector.broadcast %c12_i32 : i32 to vector<20x12xi32>
    %54 = arith.select %52, %50, %53 : vector<20x12xi1>, vector<20x12xi32>
    %cst_33 = arith.constant dense<2147483647> : vector<20xi32>
    %55 = vector.multi_reduction <minsi>, %54, %cst_33 [1] : vector<20x12xi32> to vector<20xi32>
    %56 = vector.shape_cast %55 : vector<20xi32> to vector<20x1xi32>
    %c0_34 = arith.constant 0 : index
    %c0_35 = arith.constant 0 : index
    %57 = vector.load %arg15[%c0_34, %c0_35] : memref<20x1xi32, #tpu.memory_space<vmem>>, vector<20x1xi32>
    tpu.vector_store %arg15[%c0_34, %c0_35], %56 {strides = array<i32>} : memref<20x1xi32, #tpu.memory_space<vmem>>, vector<20x1xi32>,
    %58 = arith.negf %19 : vector<160x8xf32>
    %59 = math.exp %58 : vector<160x8xf32>
    %cst_36 = arith.constant 1.000000e+00 : f32
    %60 = vector.broadcast %cst_36 : f32 to vector<160x8xf32>
    %61 = arith.addf %60, %59 : vector<160x8xf32>
    %62 = arith.divf %60, %61 : vector<160x8xf32>
    %63 = arith.truncf %62 : vector<160x8xf32> to vector<160x8xbf16>
    %c0_37 = arith.constant 0 : index
    %c0_38 = arith.constant 0 : index
    %64 = vector.load %arg10[%c0_37, %c0_38] : memref<8x48xbf16, #tpu.memory_space<vmem>>, vector<8x48xbf16>
    %cst_39 = arith.constant dense<0.000000e+00> : vector<160x48xf32>
    %65 = tpu.matmul %63, %64, %cst_39 {dimension_numbers = #tpu.dot_dimension_numbers<[1], [0], [0], [1], [0, 0, 1, 1], [], []>} : vector<160x8xbf16>, vector<8x48xbf16>, vector<160x48xf32> -> vector<160x48xf32>
    %66 = arith.truncf %65 : vector<160x48xf32> to vector<160x48xbf16>
    %c0_40 = arith.constant 0 : index
    %c0_41 = arith.constant 0 : index
    %67 = vector.load %arg11[%c0_40, %c0_41] : memref<960x160xbf16, #tpu.memory_space<vmem>>, vector<240x160xbf16>
    %cst_42 = arith.constant dense<0.000000e+00> : vector<240x48xf32>
    %68 = tpu.matmul %67, %66, %cst_42 {dimension_numbers = #tpu.dot_dimension_numbers<[1], [0], [0], [1], [0, 0, 1, 1], [], []>} : vector<240x160xbf16>, vector<160x48xbf16>, vector<240x48xf32> -> vector<240x48xf32>
    %c0_43 = arith.constant 0 : index
    %c0_44 = arith.constant 0 : index
    %69 = vector.load %arg12[%c0_43, %c0_44] : memref<960x48xf32, #tpu.memory_space<vmem>>, vector<240x48xf32>
    tpu.vector_store %arg12[%c0_43, %c0_44], %68 {strides = array<i32>} : memref<960x48xf32, #tpu.memory_space<vmem>>, vector<240x48xf32>,
    %c240 = arith.constant 240 : index
    %c0_45 = arith.constant 0 : index
    %70 = vector.load %arg11[%c240, %c0_45] : memref<960x160xbf16, #tpu.memory_space<vmem>>, vector<240x160xbf16>
    %cst_46 = arith.constant dense<0.000000e+00> : vector<240x48xf32>
    %71 = tpu.matmul %70, %66, %cst_46 {dimension_numbers = #tpu.dot_dimension_numbers<[1], [0], [0], [1], [0, 0, 1, 1], [], []>} : vector<240x160xbf16>, vector<160x48xbf16>, vector<240x48xf32> -> vector<240x48xf32>
    %c240_47 = arith.constant 240 : index
    %c0_48 = arith.constant 0 : index
    %72 = vector.load %arg12[%c240_47, %c0_48] : memref<960x48xf32, #tpu.memory_space<vmem>>, vector<240x48xf32>
    tpu.vector_store %arg12[%c240_47, %c0_48], %71 {strides = array<i32>} : memref<960x48xf32, #tpu.memory_space<vmem>>, vector<240x48xf32>,
    %c480 = arith.constant 480 : index
    %c0_49 = arith.constant 0 : index
    %73 = vector.load %arg11[%c480, %c0_49] : memref<960x160xbf16, #tpu.memory_space<vmem>>, vector<240x160xbf16>
    %cst_50 = arith.constant dense<0.000000e+00> : vector<240x48xf32>
    %74 = tpu.matmul %73, %66, %cst_50 {dimension_numbers = #tpu.dot_dimension_numbers<[1], [0], [0], [1], [0, 0, 1, 1], [], []>} : vector<240x160xbf16>, vector<160x48xbf16>, vector<240x48xf32> -> vector<240x48xf32>
    %c480_51 = arith.constant 480 : index
    %c0_52 = arith.constant 0 : index
    %75 = vector.load %arg12[%c480_51, %c0_52] : memref<960x48xf32, #tpu.memory_space<vmem>>, vector<240x48xf32>
    tpu.vector_store %arg12[%c480_51, %c0_52], %74 {strides = array<i32>} : memref<960x48xf32, #tpu.memory_space<vmem>>, vector<240x48xf32>,
    %c720 = arith.constant 720 : index
    %c0_53 = arith.constant 0 : index
    %76 = vector.load %arg11[%c720, %c0_53] : memref<960x160xbf16, #tpu.memory_space<vmem>>, vector<240x160xbf16>
    %cst_54 = arith.constant dense<0.000000e+00> : vector<240x48xf32>
    %77 = tpu.matmul %76, %66, %cst_54 {dimension_numbers = #tpu.dot_dimension_numbers<[1], [0], [0], [1], [0, 0, 1, 1], [], []>} : vector<240x160xbf16>, vector<160x48xbf16>, vector<240x48xf32> -> vector<240x48xf32>
    %c720_55 = arith.constant 720 : index
    %c0_56 = arith.constant 0 : index
    %78 = vector.load %arg12[%c720_55, %c0_56] : memref<960x48xf32, #tpu.memory_space<vmem>>, vector<240x48xf32>
    tpu.vector_store %arg12[%c720_55, %c0_56], %77 {strides = array<i32>} : memref<960x48xf32, #tpu.memory_space<vmem>>, vector<240x48xf32>,
    %cst_57 = arith.constant -1.000000e+00 : f32
    %79 = vector.broadcast %cst_57 : f32 to vector<48x48xf32>
    %c0_i32 = arith.constant 0 : i32
    %80 = vector.broadcast %c0_i32 : i32 to vector<48x48xi32>
    %c0_58 = arith.constant 0 : index
    %c0_59 = arith.constant 0 : index
    %81 = vector.load %arg12[%c0_58, %c0_59] : memref<960x48xf32, #tpu.memory_space<vmem>>, vector<48x48xf32>
    %82 = vector.extract_strided_slice %49 {offsets = [0, 0], sizes = [1, 1], strides = [1, 1]} : vector<20x1xf32> to vector<1x1xf32>
    %83 = vector.broadcast %82 : vector<1x1xf32> to vector<48x48xf32>
    %84 = arith.mulf %81, %83 : vector<48x48xf32>
    %85 = arith.cmpf ogt, %84, %79 : vector<48x48xf32>
    %c0_i32_60 = arith.constant 0 : i32
    %86 = vector.broadcast %c0_i32_60 : i32 to vector<48x48xi32>
    %87 = arith.select %85, %86, %80 : vector<48x48xi1>, vector<48x48xi32>
    %88 = arith.select %85, %84, %79 : vector<48x48xi1>, vector<48x48xf32>
    %c48 = arith.constant 48 : index
    %c0_61 = arith.constant 0 : index
    %89 = vector.load %arg12[%c48, %c0_61] : memref<960x48xf32, #tpu.memory_space<vmem>>, vector<48x48xf32>
    %90 = vector.extract_strided_slice %49 {offsets = [1, 0], sizes = [1, 1], strides = [1, 1]} : vector<20x1xf32> to vector<1x1xf32>
    %91 = vector.broadcast %90 : vector<1x1xf32> to vector<48x48xf32>
    %92 = arith.mulf %89, %91 : vector<48x48xf32>
    %93 = arith.cmpf ogt, %92, %88 : vector<48x48xf32>
    %c1_i32 = arith.constant 1 : i32
    %94 = vector.broadcast %c1_i32 : i32 to vector<48x48xi32>
    %95 = arith.select %93, %94, %87 : vector<48x48xi1>, vector<48x48xi32>
    %96 = arith.select %93, %92, %88 : vector<48x48xi1>, vector<48x48xf32>
    %c96 = arith.constant 96 : index
    %c0_62 = arith.constant 0 : index
    %97 = vector.load %arg12[%c96, %c0_62] : memref<960x48xf32, #tpu.memory_space<vmem>>, vector<48x48xf32>
    %98 = vector.extract_strided_slice %49 {offsets = [2, 0], sizes = [1, 1], strides = [1, 1]} : vector<20x1xf32> to vector<1x1xf32>
    %99 = vector.broadcast %98 : vector<1x1xf32> to vector<48x48xf32>
    %100 = arith.mulf %97, %99 : vector<48x48xf32>
    %101 = arith.cmpf ogt, %100, %96 : vector<48x48xf32>
    %c2_i32 = arith.constant 2 : i32
    %102 = vector.broadcast %c2_i32 : i32 to vector<48x48xi32>
    %103 = arith.select %101, %102, %95 : vector<48x48xi1>, vector<48x48xi32>
    %104 = arith.select %101, %100, %96 : vector<48x48xi1>, vector<48x48xf32>
    %c144 = arith.constant 144 : index
    %c0_63 = arith.constant 0 : index
    %105 = vector.load %arg12[%c144, %c0_63] : memref<960x48xf32, #tpu.memory_space<vmem>>, vector<48x48xf32>
    %106 = vector.extract_strided_slice %49 {offsets = [3, 0], sizes = [1, 1], strides = [1, 1]} : vector<20x1xf32> to vector<1x1xf32>
    %107 = vector.broadcast %106 : vector<1x1xf32> to vector<48x48xf32>
    %108 = arith.mulf %105, %107 : vector<48x48xf32>
    %109 = arith.cmpf ogt, %108, %104 : vector<48x48xf32>
    %c3_i32 = arith.constant 3 : i32
    %110 = vector.broadcast %c3_i32 : i32 to vector<48x48xi32>
    %111 = arith.select %109, %110, %103 : vector<48x48xi1>, vector<48x48xi32>
    %112 = arith.select %109, %108, %104 : vector<48x48xi1>, vector<48x48xf32>
    %c192 = arith.constant 192 : index
    %c0_64 = arith.constant 0 : index
    %113 = vector.load %arg12[%c192, %c0_64] : memref<960x48xf32, #tpu.memory_space<vmem>>, vector<48x48xf32>
    %114 = vector.extract_strided_slice %49 {offsets = [4, 0], sizes = [1, 1], strides = [1, 1]} : vector<20x1xf32> to vector<1x1xf32>
    %115 = vector.broadcast %114 : vector<1x1xf32> to vector<48x48xf32>
    %116 = arith.mulf %113, %115 : vector<48x48xf32>
    %117 = arith.cmpf ogt, %116, %112 : vector<48x48xf32>
    %c4_i32 = arith.constant 4 : i32
    %118 = vector.broadcast %c4_i32 : i32 to vector<48x48xi32>
    %119 = arith.select %117, %118, %111 : vector<48x48xi1>, vector<48x48xi32>
    %120 = arith.select %117, %116, %112 : vector<48x48xi1>, vector<48x48xf32>
    %c240_65 = arith.constant 240 : index
    %c0_66 = arith.constant 0 : index
    %121 = vector.load %arg12[%c240_65, %c0_66] : memref<960x48xf32, #tpu.memory_space<vmem>>, vector<48x48xf32>
    %122 = vector.extract_strided_slice %49 {offsets = [5, 0], sizes = [1, 1], strides = [1, 1]} : vector<20x1xf32> to vector<1x1xf32>
    %123 = vector.broadcast %122 : vector<1x1xf32> to vector<48x48xf32>
    %124 = arith.mulf %121, %123 : vector<48x48xf32>
    %125 = arith.cmpf ogt, %124, %120 : vector<48x48xf32>
    %c5_i32 = arith.constant 5 : i32
    %126 = vector.broadcast %c5_i32 : i32 to vector<48x48xi32>
    %127 = arith.select %125, %126, %119 : vector<48x48xi1>, vector<48x48xi32>
    %128 = arith.select %125, %124, %120 : vector<48x48xi1>, vector<48x48xf32>
    %c288 = arith.constant 288 : index
    %c0_67 = arith.constant 0 : index
    %129 = vector.load %arg12[%c288, %c0_67] : memref<960x48xf32, #tpu.memory_space<vmem>>, vector<48x48xf32>
    %130 = vector.extract_strided_slice %49 {offsets = [6, 0], sizes = [1, 1], strides = [1, 1]} : vector<20x1xf32> to vector<1x1xf32>
    %131 = vector.broadcast %130 : vector<1x1xf32> to vector<48x48xf32>
    %132 = arith.mulf %129, %131 : vector<48x48xf32>
    %133 = arith.cmpf ogt, %132, %128 : vector<48x48xf32>
    %c6_i32 = arith.constant 6 : i32
    %134 = vector.broadcast %c6_i32 : i32 to vector<48x48xi32>
    %135 = arith.select %133, %134, %127 : vector<48x48xi1>, vector<48x48xi32>
    %136 = arith.select %133, %132, %128 : vector<48x48xi1>, vector<48x48xf32>
    %c336 = arith.constant 336 : index
    %c0_68 = arith.constant 0 : index
    %137 = vector.load %arg12[%c336, %c0_68] : memref<960x48xf32, #tpu.memory_space<vmem>>, vector<48x48xf32>
    %138 = vector.extract_strided_slice %49 {offsets = [7, 0], sizes = [1, 1], strides = [1, 1]} : vector<20x1xf32> to vector<1x1xf32>
    %139 = vector.broadcast %138 : vector<1x1xf32> to vector<48x48xf32>
    %140 = arith.mulf %137, %139 : vector<48x48xf32>
    %141 = arith.cmpf ogt, %140, %136 : vector<48x48xf32>
    %c7_i32 = arith.constant 7 : i32
    %142 = vector.broadcast %c7_i32 : i32 to vector<48x48xi32>
    %143 = arith.select %141, %142, %135 : vector<48x48xi1>, vector<48x48xi32>
    %144 = arith.select %141, %140, %136 : vector<48x48xi1>, vector<48x48xf32>
    %c384 = arith.constant 384 : index
    %c0_69 = arith.constant 0 : index
    %145 = vector.load %arg12[%c384, %c0_69] : memref<960x48xf32, #tpu.memory_space<vmem>>, vector<48x48xf32>
    %146 = vector.extract_strided_slice %49 {offsets = [8, 0], sizes = [1, 1], strides = [1, 1]} : vector<20x1xf32> to vector<1x1xf32>
    %147 = vector.broadcast %146 : vector<1x1xf32> to vector<48x48xf32>
    %148 = arith.mulf %145, %147 : vector<48x48xf32>
    %149 = arith.cmpf ogt, %148, %144 : vector<48x48xf32>
    %c8_i32 = arith.constant 8 : i32
    %150 = vector.broadcast %c8_i32 : i32 to vector<48x48xi32>
    %151 = arith.select %149, %150, %143 : vector<48x48xi1>, vector<48x48xi32>
    %152 = arith.select %149, %148, %144 : vector<48x48xi1>, vector<48x48xf32>
    %c432 = arith.constant 432 : index
    %c0_70 = arith.constant 0 : index
    %153 = vector.load %arg12[%c432, %c0_70] : memref<960x48xf32, #tpu.memory_space<vmem>>, vector<48x48xf32>
    %154 = vector.extract_strided_slice %49 {offsets = [9, 0], sizes = [1, 1], strides = [1, 1]} : vector<20x1xf32> to vector<1x1xf32>
    %155 = vector.broadcast %154 : vector<1x1xf32> to vector<48x48xf32>
    %156 = arith.mulf %153, %155 : vector<48x48xf32>
    %157 = arith.cmpf ogt, %156, %152 : vector<48x48xf32>
    %c9_i32 = arith.constant 9 : i32
    %158 = vector.broadcast %c9_i32 : i32 to vector<48x48xi32>
    %159 = arith.select %157, %158, %151 : vector<48x48xi1>, vector<48x48xi32>
    %160 = arith.select %157, %156, %152 : vector<48x48xi1>, vector<48x48xf32>
    %c480_71 = arith.constant 480 : index
    %c0_72 = arith.constant 0 : index
    %161 = vector.load %arg12[%c480_71, %c0_72] : memref<960x48xf32, #tpu.memory_space<vmem>>, vector<48x48xf32>
    %162 = vector.extract_strided_slice %49 {offsets = [10, 0], sizes = [1, 1], strides = [1, 1]} : vector<20x1xf32> to vector<1x1xf32>
    %163 = vector.broadcast %162 : vector<1x1xf32> to vector<48x48xf32>
    %164 = arith.mulf %161, %163 : vector<48x48xf32>
    %165 = arith.cmpf ogt, %164, %160 : vector<48x48xf32>
    %c10_i32 = arith.constant 10 : i32
    %166 = vector.broadcast %c10_i32 : i32 to vector<48x48xi32>
    %167 = arith.select %165, %166, %159 : vector<48x48xi1>, vector<48x48xi32>
    %168 = arith.select %165, %164, %160 : vector<48x48xi1>, vector<48x48xf32>
    %c528 = arith.constant 528 : index
    %c0_73 = arith.constant 0 : index
    %169 = vector.load %arg12[%c528, %c0_73] : memref<960x48xf32, #tpu.memory_space<vmem>>, vector<48x48xf32>
    %170 = vector.extract_strided_slice %49 {offsets = [11, 0], sizes = [1, 1], strides = [1, 1]} : vector<20x1xf32> to vector<1x1xf32>
    %171 = vector.broadcast %170 : vector<1x1xf32> to vector<48x48xf32>
    %172 = arith.mulf %169, %171 : vector<48x48xf32>
    %173 = arith.cmpf ogt, %172, %168 : vector<48x48xf32>
    %c11_i32 = arith.constant 11 : i32
    %174 = vector.broadcast %c11_i32 : i32 to vector<48x48xi32>
    %175 = arith.select %173, %174, %167 : vector<48x48xi1>, vector<48x48xi32>
    %176 = arith.select %173, %172, %168 : vector<48x48xi1>, vector<48x48xf32>
    %c576 = arith.constant 576 : index
    %c0_74 = arith.constant 0 : index
    %177 = vector.load %arg12[%c576, %c0_74] : memref<960x48xf32, #tpu.memory_space<vmem>>, vector<48x48xf32>
    %178 = vector.extract_strided_slice %49 {offsets = [12, 0], sizes = [1, 1], strides = [1, 1]} : vector<20x1xf32> to vector<1x1xf32>
    %179 = vector.broadcast %178 : vector<1x1xf32> to vector<48x48xf32>
    %180 = arith.mulf %177, %179 : vector<48x48xf32>
    %181 = arith.cmpf ogt, %180, %176 : vector<48x48xf32>
    %c12_i32_75 = arith.constant 12 : i32
    %182 = vector.broadcast %c12_i32_75 : i32 to vector<48x48xi32>
    %183 = arith.select %181, %182, %175 : vector<48x48xi1>, vector<48x48xi32>
    %184 = arith.select %181, %180, %176 : vector<48x48xi1>, vector<48x48xf32>
    %c624 = arith.constant 624 : index
    %c0_76 = arith.constant 0 : index
    %185 = vector.load %arg12[%c624, %c0_76] : memref<960x48xf32, #tpu.memory_space<vmem>>, vector<48x48xf32>
    %186 = vector.extract_strided_slice %49 {offsets = [13, 0], sizes = [1, 1], strides = [1, 1]} : vector<20x1xf32> to vector<1x1xf32>
    %187 = vector.broadcast %186 : vector<1x1xf32> to vector<48x48xf32>
    %188 = arith.mulf %185, %187 : vector<48x48xf32>
    %189 = arith.cmpf ogt, %188, %184 : vector<48x48xf32>
    %c13_i32 = arith.constant 13 : i32
    %190 = vector.broadcast %c13_i32 : i32 to vector<48x48xi32>
    %191 = arith.select %189, %190, %183 : vector<48x48xi1>, vector<48x48xi32>
    %192 = arith.select %189, %188, %184 : vector<48x48xi1>, vector<48x48xf32>
    %c672 = arith.constant 672 : index
    %c0_77 = arith.constant 0 : index
    %193 = vector.load %arg12[%c672, %c0_77] : memref<960x48xf32, #tpu.memory_space<vmem>>, vector<48x48xf32>
    %194 = vector.extract_strided_slice %49 {offsets = [14, 0], sizes = [1, 1], strides = [1, 1]} : vector<20x1xf32> to vector<1x1xf32>
    %195 = vector.broadcast %194 : vector<1x1xf32> to vector<48x48xf32>
    %196 = arith.mulf %193, %195 : vector<48x48xf32>
    %197 = arith.cmpf ogt, %196, %192 : vector<48x48xf32>
    %c14_i32 = arith.constant 14 : i32
    %198 = vector.broadcast %c14_i32 : i32 to vector<48x48xi32>
    %199 = arith.select %197, %198, %191 : vector<48x48xi1>, vector<48x48xi32>
    %200 = arith.select %197, %196, %192 : vector<48x48xi1>, vector<48x48xf32>
    %c720_78 = arith.constant 720 : index
    %c0_79 = arith.constant 0 : index
    %201 = vector.load %arg12[%c720_78, %c0_79] : memref<960x48xf32, #tpu.memory_space<vmem>>, vector<48x48xf32>
    %202 = vector.extract_strided_slice %49 {offsets = [15, 0], sizes = [1, 1], strides = [1, 1]} : vector<20x1xf32> to vector<1x1xf32>
    %203 = vector.broadcast %202 : vector<1x1xf32> to vector<48x48xf32>
    %204 = arith.mulf %201, %203 : vector<48x48xf32>
    %205 = arith.cmpf ogt, %204, %200 : vector<48x48xf32>
    %c15_i32 = arith.constant 15 : i32
    %206 = vector.broadcast %c15_i32 : i32 to vector<48x48xi32>
    %207 = arith.select %205, %206, %199 : vector<48x48xi1>, vector<48x48xi32>
    %208 = arith.select %205, %204, %200 : vector<48x48xi1>, vector<48x48xf32>
    %c768 = arith.constant 768 : index
    %c0_80 = arith.constant 0 : index
    %209 = vector.load %arg12[%c768, %c0_80] : memref<960x48xf32, #tpu.memory_space<vmem>>, vector<48x48xf32>
    %210 = vector.extract_strided_slice %49 {offsets = [16, 0], sizes = [1, 1], strides = [1, 1]} : vector<20x1xf32> to vector<1x1xf32>
    %211 = vector.broadcast %210 : vector<1x1xf32> to vector<48x48xf32>
    %212 = arith.mulf %209, %211 : vector<48x48xf32>
    %213 = arith.cmpf ogt, %212, %208 : vector<48x48xf32>
    %c16_i32 = arith.constant 16 : i32
    %214 = vector.broadcast %c16_i32 : i32 to vector<48x48xi32>
    %215 = arith.select %213, %214, %207 : vector<48x48xi1>, vector<48x48xi32>
    %216 = arith.select %213, %212, %208 : vector<48x48xi1>, vector<48x48xf32>
    %c816 = arith.constant 816 : index
    %c0_81 = arith.constant 0 : index
    %217 = vector.load %arg12[%c816, %c0_81] : memref<960x48xf32, #tpu.memory_space<vmem>>, vector<48x48xf32>
    %218 = vector.extract_strided_slice %49 {offsets = [17, 0], sizes = [1, 1], strides = [1, 1]} : vector<20x1xf32> to vector<1x1xf32>
    %219 = vector.broadcast %218 : vector<1x1xf32> to vector<48x48xf32>
    %220 = arith.mulf %217, %219 : vector<48x48xf32>
    %221 = arith.cmpf ogt, %220, %216 : vector<48x48xf32>
    %c17_i32 = arith.constant 17 : i32
    %222 = vector.broadcast %c17_i32 : i32 to vector<48x48xi32>
    %223 = arith.select %221, %222, %215 : vector<48x48xi1>, vector<48x48xi32>
    %224 = arith.select %221, %220, %216 : vector<48x48xi1>, vector<48x48xf32>
    %c864 = arith.constant 864 : index
    %c0_82 = arith.constant 0 : index
    %225 = vector.load %arg12[%c864, %c0_82] : memref<960x48xf32, #tpu.memory_space<vmem>>, vector<48x48xf32>
    %226 = vector.extract_strided_slice %49 {offsets = [18, 0], sizes = [1, 1], strides = [1, 1]} : vector<20x1xf32> to vector<1x1xf32>
    %227 = vector.broadcast %226 : vector<1x1xf32> to vector<48x48xf32>
    %228 = arith.mulf %225, %227 : vector<48x48xf32>
    %229 = arith.cmpf ogt, %228, %224 : vector<48x48xf32>
    %c18_i32 = arith.constant 18 : i32
    %230 = vector.broadcast %c18_i32 : i32 to vector<48x48xi32>
    %231 = arith.select %229, %230, %223 : vector<48x48xi1>, vector<48x48xi32>
    %232 = arith.select %229, %228, %224 : vector<48x48xi1>, vector<48x48xf32>
    %c912 = arith.constant 912 : index
    %c0_83 = arith.constant 0 : index
    %233 = vector.load %arg12[%c912, %c0_83] : memref<960x48xf32, #tpu.memory_space<vmem>>, vector<48x48xf32>
    %234 = vector.extract_strided_slice %49 {offsets = [19, 0], sizes = [1, 1], strides = [1, 1]} : vector<20x1xf32> to vector<1x1xf32>
    %235 = vector.broadcast %234 : vector<1x1xf32> to vector<48x48xf32>
    %236 = arith.mulf %233, %235 : vector<48x48xf32>
    %237 = arith.cmpf ogt, %236, %232 : vector<48x48xf32>
    %c19_i32 = arith.constant 19 : i32
    %238 = vector.broadcast %c19_i32 : i32 to vector<48x48xi32>
    %239 = arith.select %237, %238, %231 : vector<48x48xi1>, vector<48x48xi32>
    %240 = tpu.iota {dimensions = array<i32: 0>} : vector<20x1xi32>
    %241 = arith.sitofp %240 : vector<20x1xi32> to vector<20x1xf32>
    %c0_i32_84 = arith.constant 0 : i32
    %242 = vector.broadcast %c0_i32_84 : i32 to vector<48x48xi32>
    %c0_i32_85 = arith.constant 0 : i32
    %243 = vector.broadcast %c0_i32_85 : i32 to vector<20x1xi32>
    %244 = arith.cmpi eq, %56, %243 : vector<20x1xi32>
    %cst_86 = arith.constant -1.000000e+00 : f32
    %245 = vector.broadcast %cst_86 : f32 to vector<20x1xf32>
    %246 = arith.select %244, %49, %245 : vector<20x1xi1>, vector<20x1xf32>
    %cst_87 = arith.constant dense<0xFF800000> : vector<1xf32>
    %247 = vector.multi_reduction <maximumf>, %246, %cst_87 [0] : vector<20x1xf32> to vector<1xf32>
    %248 = vector.shape_cast %247 : vector<1xf32> to vector<1x1xf32>
    %249 = vector.broadcast %248 : vector<1x1xf32> to vector<20x1xf32>
    %250 = arith.cmpf oge, %246, %249 : vector<20x1xf32>
    %251 = arith.andi %244, %250 : vector<20x1xi1>
    %cst_88 = arith.constant 2.000000e+01 : f32
    %252 = vector.broadcast %cst_88 : f32 to vector<20x1xf32>
    %253 = arith.select %251, %241, %252 : vector<20x1xi1>, vector<20x1xf32>
    %cst_89 = arith.constant dense<0x7F800000> : vector<1xf32>
    %254 = vector.multi_reduction <minimumf>, %253, %cst_89 [0] : vector<20x1xf32> to vector<1xf32>
    %255 = vector.shape_cast %254 : vector<1xf32> to vector<1x1xf32>
    %256 = arith.fptosi %255 : vector<1x1xf32> to vector<1x1xi32>
    %257 = vector.broadcast %256 : vector<1x1xi32> to vector<48x48xi32>
    %258 = arith.cmpi eq, %239, %257 : vector<48x48xi32>
    %c0_i32_90 = arith.constant 0 : i32
    %259 = vector.broadcast %c0_i32_90 : i32 to vector<48x48xi32>
    %260 = arith.select %258, %259, %242 : vector<48x48xi1>, vector<48x48xi32>
    %c1_i32_91 = arith.constant 1 : i32
    %261 = vector.broadcast %c1_i32_91 : i32 to vector<20x1xi32>
    %262 = arith.cmpi eq, %56, %261 : vector<20x1xi32>
    %cst_92 = arith.constant -1.000000e+00 : f32
    %263 = vector.broadcast %cst_92 : f32 to vector<20x1xf32>
    %264 = arith.select %262, %49, %263 : vector<20x1xi1>, vector<20x1xf32>
    %cst_93 = arith.constant dense<0xFF800000> : vector<1xf32>
    %265 = vector.multi_reduction <maximumf>, %264, %cst_93 [0] : vector<20x1xf32> to vector<1xf32>
    %266 = vector.shape_cast %265 : vector<1xf32> to vector<1x1xf32>
    %267 = vector.broadcast %266 : vector<1x1xf32> to vector<20x1xf32>
    %268 = arith.cmpf oge, %264, %267 : vector<20x1xf32>
    %269 = arith.andi %262, %268 : vector<20x1xi1>
    %cst_94 = arith.constant 2.000000e+01 : f32
    %270 = vector.broadcast %cst_94 : f32 to vector<20x1xf32>
    %271 = arith.select %269, %241, %270 : vector<20x1xi1>, vector<20x1xf32>
    %cst_95 = arith.constant dense<0x7F800000> : vector<1xf32>
    %272 = vector.multi_reduction <minimumf>, %271, %cst_95 [0] : vector<20x1xf32> to vector<1xf32>
    %273 = vector.shape_cast %272 : vector<1xf32> to vector<1x1xf32>
    %274 = arith.fptosi %273 : vector<1x1xf32> to vector<1x1xi32>
    %275 = vector.broadcast %274 : vector<1x1xi32> to vector<48x48xi32>
    %276 = arith.cmpi eq, %239, %275 : vector<48x48xi32>
    %c1_i32_96 = arith.constant 1 : i32
    %277 = vector.broadcast %c1_i32_96 : i32 to vector<48x48xi32>
    %278 = arith.select %276, %277, %260 : vector<48x48xi1>, vector<48x48xi32>
    %c2_i32_97 = arith.constant 2 : i32
    %279 = vector.broadcast %c2_i32_97 : i32 to vector<20x1xi32>
    %280 = arith.cmpi eq, %56, %279 : vector<20x1xi32>
    %cst_98 = arith.constant -1.000000e+00 : f32
    %281 = vector.broadcast %cst_98 : f32 to vector<20x1xf32>
    %282 = arith.select %280, %49, %281 : vector<20x1xi1>, vector<20x1xf32>
    %cst_99 = arith.constant dense<0xFF800000> : vector<1xf32>
    %283 = vector.multi_reduction <maximumf>, %282, %cst_99 [0] : vector<20x1xf32> to vector<1xf32>
    %284 = vector.shape_cast %283 : vector<1xf32> to vector<1x1xf32>
    %285 = vector.broadcast %284 : vector<1x1xf32> to vector<20x1xf32>
    %286 = arith.cmpf oge, %282, %285 : vector<20x1xf32>
    %287 = arith.andi %280, %286 : vector<20x1xi1>
    %cst_100 = arith.constant 2.000000e+01 : f32
    %288 = vector.broadcast %cst_100 : f32 to vector<20x1xf32>
    %289 = arith.select %287, %241, %288 : vector<20x1xi1>, vector<20x1xf32>
    %cst_101 = arith.constant dense<0x7F800000> : vector<1xf32>
    %290 = vector.multi_reduction <minimumf>, %289, %cst_101 [0] : vector<20x1xf32> to vector<1xf32>
    %291 = vector.shape_cast %290 : vector<1xf32> to vector<1x1xf32>
    %292 = arith.fptosi %291 : vector<1x1xf32> to vector<1x1xi32>
    %293 = vector.broadcast %292 : vector<1x1xi32> to vector<48x48xi32>
    %294 = arith.cmpi eq, %239, %293 : vector<48x48xi32>
    %c2_i32_102 = arith.constant 2 : i32
    %295 = vector.broadcast %c2_i32_102 : i32 to vector<48x48xi32>
    %296 = arith.select %294, %295, %278 : vector<48x48xi1>, vector<48x48xi32>
    %c3_i32_103 = arith.constant 3 : i32
    %297 = vector.broadcast %c3_i32_103 : i32 to vector<20x1xi32>
    %298 = arith.cmpi eq, %56, %297 : vector<20x1xi32>
    %cst_104 = arith.constant -1.000000e+00 : f32
    %299 = vector.broadcast %cst_104 : f32 to vector<20x1xf32>
    %300 = arith.select %298, %49, %299 : vector<20x1xi1>, vector<20x1xf32>
    %cst_105 = arith.constant dense<0xFF800000> : vector<1xf32>
    %301 = vector.multi_reduction <maximumf>, %300, %cst_105 [0] : vector<20x1xf32> to vector<1xf32>
    %302 = vector.shape_cast %301 : vector<1xf32> to vector<1x1xf32>
    %303 = vector.broadcast %302 : vector<1x1xf32> to vector<20x1xf32>
    %304 = arith.cmpf oge, %300, %303 : vector<20x1xf32>
    %305 = arith.andi %298, %304 : vector<20x1xi1>
    %cst_106 = arith.constant 2.000000e+01 : f32
    %306 = vector.broadcast %cst_106 : f32 to vector<20x1xf32>
    %307 = arith.select %305, %241, %306 : vector<20x1xi1>, vector<20x1xf32>
    %cst_107 = arith.constant dense<0x7F800000> : vector<1xf32>
    %308 = vector.multi_reduction <minimumf>, %307, %cst_107 [0] : vector<20x1xf32> to vector<1xf32>
    %309 = vector.shape_cast %308 : vector<1xf32> to vector<1x1xf32>
    %310 = arith.fptosi %309 : vector<1x1xf32> to vector<1x1xi32>
    %311 = vector.broadcast %310 : vector<1x1xi32> to vector<48x48xi32>
    %312 = arith.cmpi eq, %239, %311 : vector<48x48xi32>
    %c3_i32_108 = arith.constant 3 : i32
    %313 = vector.broadcast %c3_i32_108 : i32 to vector<48x48xi32>
    %314 = arith.select %312, %313, %296 : vector<48x48xi1>, vector<48x48xi32>
    %c4_i32_109 = arith.constant 4 : i32
    %315 = vector.broadcast %c4_i32_109 : i32 to vector<20x1xi32>
    %316 = arith.cmpi eq, %56, %315 : vector<20x1xi32>
    %cst_110 = arith.constant -1.000000e+00 : f32
    %317 = vector.broadcast %cst_110 : f32 to vector<20x1xf32>
    %318 = arith.select %316, %49, %317 : vector<20x1xi1>, vector<20x1xf32>
    %cst_111 = arith.constant dense<0xFF800000> : vector<1xf32>
    %319 = vector.multi_reduction <maximumf>, %318, %cst_111 [0] : vector<20x1xf32> to vector<1xf32>
    %320 = vector.shape_cast %319 : vector<1xf32> to vector<1x1xf32>
    %321 = vector.broadcast %320 : vector<1x1xf32> to vector<20x1xf32>
    %322 = arith.cmpf oge, %318, %321 : vector<20x1xf32>
    %323 = arith.andi %316, %322 : vector<20x1xi1>
    %cst_112 = arith.constant 2.000000e+01 : f32
    %324 = vector.broadcast %cst_112 : f32 to vector<20x1xf32>
    %325 = arith.select %323, %241, %324 : vector<20x1xi1>, vector<20x1xf32>
    %cst_113 = arith.constant dense<0x7F800000> : vector<1xf32>
    %326 = vector.multi_reduction <minimumf>, %325, %cst_113 [0] : vector<20x1xf32> to vector<1xf32>
    %327 = vector.shape_cast %326 : vector<1xf32> to vector<1x1xf32>
    %328 = arith.fptosi %327 : vector<1x1xf32> to vector<1x1xi32>
    %329 = vector.broadcast %328 : vector<1x1xi32> to vector<48x48xi32>
    %330 = arith.cmpi eq, %239, %329 : vector<48x48xi32>
    %c4_i32_114 = arith.constant 4 : i32
    %331 = vector.broadcast %c4_i32_114 : i32 to vector<48x48xi32>
    %332 = arith.select %330, %331, %314 : vector<48x48xi1>, vector<48x48xi32>
    %c5_i32_115 = arith.constant 5 : i32
    %333 = vector.broadcast %c5_i32_115 : i32 to vector<20x1xi32>
    %334 = arith.cmpi eq, %56, %333 : vector<20x1xi32>
    %cst_116 = arith.constant -1.000000e+00 : f32
    %335 = vector.broadcast %cst_116 : f32 to vector<20x1xf32>
    %336 = arith.select %334, %49, %335 : vector<20x1xi1>, vector<20x1xf32>
    %cst_117 = arith.constant dense<0xFF800000> : vector<1xf32>
    %337 = vector.multi_reduction <maximumf>, %336, %cst_117 [0] : vector<20x1xf32> to vector<1xf32>
    %338 = vector.shape_cast %337 : vector<1xf32> to vector<1x1xf32>
    %339 = vector.broadcast %338 : vector<1x1xf32> to vector<20x1xf32>
    %340 = arith.cmpf oge, %336, %339 : vector<20x1xf32>
    %341 = arith.andi %334, %340 : vector<20x1xi1>
    %cst_118 = arith.constant 2.000000e+01 : f32
    %342 = vector.broadcast %cst_118 : f32 to vector<20x1xf32>
    %343 = arith.select %341, %241, %342 : vector<20x1xi1>, vector<20x1xf32>
    %cst_119 = arith.constant dense<0x7F800000> : vector<1xf32>
    %344 = vector.multi_reduction <minimumf>, %343, %cst_119 [0] : vector<20x1xf32> to vector<1xf32>
    %345 = vector.shape_cast %344 : vector<1xf32> to vector<1x1xf32>
    %346 = arith.fptosi %345 : vector<1x1xf32> to vector<1x1xi32>
    %347 = vector.broadcast %346 : vector<1x1xi32> to vector<48x48xi32>
    %348 = arith.cmpi eq, %239, %347 : vector<48x48xi32>
    %c5_i32_120 = arith.constant 5 : i32
    %349 = vector.broadcast %c5_i32_120 : i32 to vector<48x48xi32>
    %350 = arith.select %348, %349, %332 : vector<48x48xi1>, vector<48x48xi32>
    %c6_i32_121 = arith.constant 6 : i32
    %351 = vector.broadcast %c6_i32_121 : i32 to vector<20x1xi32>
    %352 = arith.cmpi eq, %56, %351 : vector<20x1xi32>
    %cst_122 = arith.constant -1.000000e+00 : f32
    %353 = vector.broadcast %cst_122 : f32 to vector<20x1xf32>
    %354 = arith.select %352, %49, %353 : vector<20x1xi1>, vector<20x1xf32>
    %cst_123 = arith.constant dense<0xFF800000> : vector<1xf32>
    %355 = vector.multi_reduction <maximumf>, %354, %cst_123 [0] : vector<20x1xf32> to vector<1xf32>
    %356 = vector.shape_cast %355 : vector<1xf32> to vector<1x1xf32>
    %357 = vector.broadcast %356 : vector<1x1xf32> to vector<20x1xf32>
    %358 = arith.cmpf oge, %354, %357 : vector<20x1xf32>
    %359 = arith.andi %352, %358 : vector<20x1xi1>
    %cst_124 = arith.constant 2.000000e+01 : f32
    %360 = vector.broadcast %cst_124 : f32 to vector<20x1xf32>
    %361 = arith.select %359, %241, %360 : vector<20x1xi1>, vector<20x1xf32>
    %cst_125 = arith.constant dense<0x7F800000> : vector<1xf32>
    %362 = vector.multi_reduction <minimumf>, %361, %cst_125 [0] : vector<20x1xf32> to vector<1xf32>
    %363 = vector.shape_cast %362 : vector<1xf32> to vector<1x1xf32>
    %364 = arith.fptosi %363 : vector<1x1xf32> to vector<1x1xi32>
    %365 = vector.broadcast %364 : vector<1x1xi32> to vector<48x48xi32>
    %366 = arith.cmpi eq, %239, %365 : vector<48x48xi32>
    %c6_i32_126 = arith.constant 6 : i32
    %367 = vector.broadcast %c6_i32_126 : i32 to vector<48x48xi32>
    %368 = arith.select %366, %367, %350 : vector<48x48xi1>, vector<48x48xi32>
    %c7_i32_127 = arith.constant 7 : i32
    %369 = vector.broadcast %c7_i32_127 : i32 to vector<20x1xi32>
    %370 = arith.cmpi eq, %56, %369 : vector<20x1xi32>
    %cst_128 = arith.constant -1.000000e+00 : f32
    %371 = vector.broadcast %cst_128 : f32 to vector<20x1xf32>
    %372 = arith.select %370, %49, %371 : vector<20x1xi1>, vector<20x1xf32>
    %cst_129 = arith.constant dense<0xFF800000> : vector<1xf32>
    %373 = vector.multi_reduction <maximumf>, %372, %cst_129 [0] : vector<20x1xf32> to vector<1xf32>
    %374 = vector.shape_cast %373 : vector<1xf32> to vector<1x1xf32>
    %375 = vector.broadcast %374 : vector<1x1xf32> to vector<20x1xf32>
    %376 = arith.cmpf oge, %372, %375 : vector<20x1xf32>
    %377 = arith.andi %370, %376 : vector<20x1xi1>
    %cst_130 = arith.constant 2.000000e+01 : f32
    %378 = vector.broadcast %cst_130 : f32 to vector<20x1xf32>
    %379 = arith.select %377, %241, %378 : vector<20x1xi1>, vector<20x1xf32>
    %cst_131 = arith.constant dense<0x7F800000> : vector<1xf32>
    %380 = vector.multi_reduction <minimumf>, %379, %cst_131 [0] : vector<20x1xf32> to vector<1xf32>
    %381 = vector.shape_cast %380 : vector<1xf32> to vector<1x1xf32>
    %382 = arith.fptosi %381 : vector<1x1xf32> to vector<1x1xi32>
    %383 = vector.broadcast %382 : vector<1x1xi32> to vector<48x48xi32>
    %384 = arith.cmpi eq, %239, %383 : vector<48x48xi32>
    %c7_i32_132 = arith.constant 7 : i32
    %385 = vector.broadcast %c7_i32_132 : i32 to vector<48x48xi32>
    %386 = arith.select %384, %385, %368 : vector<48x48xi1>, vector<48x48xi32>
    %c8_i32_133 = arith.constant 8 : i32
    %387 = vector.broadcast %c8_i32_133 : i32 to vector<20x1xi32>
    %388 = arith.cmpi eq, %56, %387 : vector<20x1xi32>
    %cst_134 = arith.constant -1.000000e+00 : f32
    %389 = vector.broadcast %cst_134 : f32 to vector<20x1xf32>
    %390 = arith.select %388, %49, %389 : vector<20x1xi1>, vector<20x1xf32>
    %cst_135 = arith.constant dense<0xFF800000> : vector<1xf32>
    %391 = vector.multi_reduction <maximumf>, %390, %cst_135 [0] : vector<20x1xf32> to vector<1xf32>
    %392 = vector.shape_cast %391 : vector<1xf32> to vector<1x1xf32>
    %393 = vector.broadcast %392 : vector<1x1xf32> to vector<20x1xf32>
    %394 = arith.cmpf oge, %390, %393 : vector<20x1xf32>
    %395 = arith.andi %388, %394 : vector<20x1xi1>
    %cst_136 = arith.constant 2.000000e+01 : f32
    %396 = vector.broadcast %cst_136 : f32 to vector<20x1xf32>
    %397 = arith.select %395, %241, %396 : vector<20x1xi1>, vector<20x1xf32>
    %cst_137 = arith.constant dense<0x7F800000> : vector<1xf32>
    %398 = vector.multi_reduction <minimumf>, %397, %cst_137 [0] : vector<20x1xf32> to vector<1xf32>
    %399 = vector.shape_cast %398 : vector<1xf32> to vector<1x1xf32>
    %400 = arith.fptosi %399 : vector<1x1xf32> to vector<1x1xi32>
    %401 = vector.broadcast %400 : vector<1x1xi32> to vector<48x48xi32>
    %402 = arith.cmpi eq, %239, %401 : vector<48x48xi32>
    %c8_i32_138 = arith.constant 8 : i32
    %403 = vector.broadcast %c8_i32_138 : i32 to vector<48x48xi32>
    %404 = arith.select %402, %403, %386 : vector<48x48xi1>, vector<48x48xi32>
    %c9_i32_139 = arith.constant 9 : i32
    %405 = vector.broadcast %c9_i32_139 : i32 to vector<20x1xi32>
    %406 = arith.cmpi eq, %56, %405 : vector<20x1xi32>
    %cst_140 = arith.constant -1.000000e+00 : f32
    %407 = vector.broadcast %cst_140 : f32 to vector<20x1xf32>
    %408 = arith.select %406, %49, %407 : vector<20x1xi1>, vector<20x1xf32>
    %cst_141 = arith.constant dense<0xFF800000> : vector<1xf32>
    %409 = vector.multi_reduction <maximumf>, %408, %cst_141 [0] : vector<20x1xf32> to vector<1xf32>
    %410 = vector.shape_cast %409 : vector<1xf32> to vector<1x1xf32>
    %411 = vector.broadcast %410 : vector<1x1xf32> to vector<20x1xf32>
    %412 = arith.cmpf oge, %408, %411 : vector<20x1xf32>
    %413 = arith.andi %406, %412 : vector<20x1xi1>
    %cst_142 = arith.constant 2.000000e+01 : f32
    %414 = vector.broadcast %cst_142 : f32 to vector<20x1xf32>
    %415 = arith.select %413, %241, %414 : vector<20x1xi1>, vector<20x1xf32>
    %cst_143 = arith.constant dense<0x7F800000> : vector<1xf32>
    %416 = vector.multi_reduction <minimumf>, %415, %cst_143 [0] : vector<20x1xf32> to vector<1xf32>
    %417 = vector.shape_cast %416 : vector<1xf32> to vector<1x1xf32>
    %418 = arith.fptosi %417 : vector<1x1xf32> to vector<1x1xi32>
    %419 = vector.broadcast %418 : vector<1x1xi32> to vector<48x48xi32>
    %420 = arith.cmpi eq, %239, %419 : vector<48x48xi32>
    %c9_i32_144 = arith.constant 9 : i32
    %421 = vector.broadcast %c9_i32_144 : i32 to vector<48x48xi32>
    %422 = arith.select %420, %421, %404 : vector<48x48xi1>, vector<48x48xi32>
    %c10_i32_145 = arith.constant 10 : i32
    %423 = vector.broadcast %c10_i32_145 : i32 to vector<20x1xi32>
    %424 = arith.cmpi eq, %56, %423 : vector<20x1xi32>
    %cst_146 = arith.constant -1.000000e+00 : f32
    %425 = vector.broadcast %cst_146 : f32 to vector<20x1xf32>
    %426 = arith.select %424, %49, %425 : vector<20x1xi1>, vector<20x1xf32>
    %cst_147 = arith.constant dense<0xFF800000> : vector<1xf32>
    %427 = vector.multi_reduction <maximumf>, %426, %cst_147 [0] : vector<20x1xf32> to vector<1xf32>
    %428 = vector.shape_cast %427 : vector<1xf32> to vector<1x1xf32>
    %429 = vector.broadcast %428 : vector<1x1xf32> to vector<20x1xf32>
    %430 = arith.cmpf oge, %426, %429 : vector<20x1xf32>
    %431 = arith.andi %424, %430 : vector<20x1xi1>
    %cst_148 = arith.constant 2.000000e+01 : f32
    %432 = vector.broadcast %cst_148 : f32 to vector<20x1xf32>
    %433 = arith.select %431, %241, %432 : vector<20x1xi1>, vector<20x1xf32>
    %cst_149 = arith.constant dense<0x7F800000> : vector<1xf32>
    %434 = vector.multi_reduction <minimumf>, %433, %cst_149 [0] : vector<20x1xf32> to vector<1xf32>
    %435 = vector.shape_cast %434 : vector<1xf32> to vector<1x1xf32>
    %436 = arith.fptosi %435 : vector<1x1xf32> to vector<1x1xi32>
    %437 = vector.broadcast %436 : vector<1x1xi32> to vector<48x48xi32>
    %438 = arith.cmpi eq, %239, %437 : vector<48x48xi32>
    %c10_i32_150 = arith.constant 10 : i32
    %439 = vector.broadcast %c10_i32_150 : i32 to vector<48x48xi32>
    %440 = arith.select %438, %439, %422 : vector<48x48xi1>, vector<48x48xi32>
    %441 = tpu.iota {dimensions = array<i32: 0>} : vector<12x48x48xi32>
    %442 = vector.shape_cast %440 : vector<48x48xi32> to vector<1x48x48xi32>
    %443 = vector.broadcast %442 : vector<1x48x48xi32> to vector<12x48x48xi32>
    %444 = arith.cmpi eq, %441, %443 : vector<12x48x48xi32>
    %445 = arith.extui %444 : vector<12x48x48xi1> to vector<12x48x48xi32>
    %c0_151 = arith.constant 0 : index
    %c0_152 = arith.constant 0 : index
    %c0_153 = arith.constant 0 : index
    %446 = vector.load %arg14[%c0_151, %c0_152, %c0_153] : memref<12x48x48xi32, #tpu.memory_space<vmem>>, vector<12x48x48xi32>
    tpu.vector_store %arg14[%c0_151, %c0_152, %c0_153], %445 {strides = array<i32>} : memref<12x48x48xi32, #tpu.memory_space<vmem>>, vector<12x48x48xi32>,
    return
  }
}

</mosaic_0001>

<bundles_post_ra>
// kernel: coseg_device_inference.1
= control target key start
LH: loop header
LB: loop body
LE: loop exit
PB: predicated region body
PF: predicated region fallthrough
CT: control target
= control target key end

     0   :  { %21 = vsyncpa [#allocation3], 0  ;;  %v9285_v3 = vmov 0   ;;  %vm141_vm0 = vcmask 130048   ;;  %s9263_s0 = inlined_call_operand.vmem [shape: f32[144,48], index: 0, kind: input, shape index: {}]   ;;  %s9264_s1 = inlined_call_operand.vmem [shape: bf16[96,144], index: 1, kind: input, shape index: {}]   ;;  %s9265_s2 = inlined_call_operand.vmem [shape: bf16[48,32], index: 2, kind: input, shape index: {}]   ;;  %s9266_s3 = inlined_call_operand.vmem [shape: f32[96,1], index: 3, kind: input, shape index: {}]   ;;  %s9267_s4 = inlined_call_operand.vmem [shape: f32[96,1], index: 4, kind: input, shape index: {}]   ;;  %s9268_s5 = inlined_call_operand.vmem [shape: bf16[160,96], index: 5, kind: input, shape index: {}]   ;;  %s9269_s6 = inlined_call_operand.vmem [shape: bf16[32,8], index: 6, kind: input, shape index: {}]   ;;  %s9270_s7 = inlined_call_operand.vmem [shape: bf16[20,96], index: 7, kind: input, shape index: {}]   ;;  %s9271_s8 = inlined_call_operand.vmem [shape: bf16[32,32], index: 8, kind: input, shape index: {}]   ;;  %s9272_s9 = inlined_call_operand.vmem [shape: bf16[32,12], index: 9, kind: input, shape index: {}]   ;;  %s9273_s10 = inlined_call_operand.vmem [shape: bf16[8,48], index: 10, kind: input, shape index: {}]   ;;  %s9274_s11 = inlined_call_operand.vmem [shape: bf16[960,160], index: 11, kind: input, shape index: {}]   ;;  %s9275_s12 = inlined_call_operand.hbm [shape: f32[960,48], index: 12, kind: output, shape index: {0}]   ;;  %s9276_s13 = inlined_call_operand.hbm [shape: f32[96,32], index: 13, kind: output, shape index: {1}]   ;;  %s9277_s14 = inlined_call_operand.hbm [shape: s32[12,48,48], index: 14, kind: output, shape index: {2}]   ;;  %s9278_s15 = inlined_call_operand.vmem [shape: s32[20,1], index: 15, kind: output, shape index: {3}]  }
   0x1   :  { %v60_v0 = vld [vmem:[%s9263_s0] sm:$0xff]  ;;  %v61_v1 = vld [vmem:[%s9263_s0 + $0x8] sm:$0xff]  ;;  %v62_v2 = vld [vmem:[%s9263_s0 + $0x10] sm:$0xff]  ;;  %160 = vmatprep.subr.bf16.mxu0 %v9285_v3  ;;  %5060 = vset.pattern.permute.xlu0 %v9285_v3 }
   0x2   :  { %v78_v4 = vpack.c.bf16 %v61_v1, %v60_v0  ;;  %v63_v5 = vld [vmem:[%s9263_s0 + $0x18] sm:$0xff]  ;;  %5061 = vset.pattern.permute.xlu1 %v9285_v3  ;;  %v64_v7 = vld [vmem:[%s9263_s0 + $0x20] sm:$0xff]  ;;  %v65_v8 = vld [vmem:[%s9263_s0 + $0x28] sm:$0xff] }
   0x3   :  { %v79_v6 = vpack.c.bf16 %v63_v5, %v62_v2  ;;  %v80_v9 = vpack.c.bf16 %v65_v8, %v64_v7  ;;  %v5064_v10 = vld [vmem:[%s9264_s1 + $0x4] ss:$8 sps:$4 sm:$0xff]   ;;  %v66_v11 = vld [vmem:[%s9263_s0 + $0x30] sm:$0xff]  ;;  %v67_v12 = vld [vmem:[%s9263_s0 + $0x38] sm:$0xff] }
   0x4   :  { %161 = vmatpush1.bf16.msra.mxu0 %v78_v4  ;;  %4552 = vmatprep.mubr.msk.bf16.mxu0 %vm141_vm0, %v5064_v10  ;;  %v81_v13 = vpack.c.bf16 %v67_v12, %v66_v11  ;;  %v68_v14 = vld [vmem:[%s9263_s0 + $0x40] sm:$0xff]  ;;  %v69_v15 = vld [vmem:[%s9263_s0 + $0x48] sm:$0xff]  ;;  %v70_v16 = vld [vmem:[%s9263_s0 + $0x50] sm:$0xff] }
   0x5   :  { %162 = vmatprep.subr.bf16.mxu0 %v9285_v3  ;;  %v71_v17 = vld [vmem:[%s9263_s0 + $0x58] sm:$0xff]  ;;  %v82_v18 = vpack.c.bf16 %v69_v15, %v68_v14  ;;  %v72_v19 = vld [vmem:[%s9263_s0 + $0x60] sm:$0xff]  ;;  %v73_v20 = vld [vmem:[%s9263_s0 + $0x68] sm:$0xff] }
   0x6   :  { %v83_v21 = vpack.c.bf16 %v71_v17, %v70_v16  ;;  %v74_v22 = vld [vmem:[%s9263_s0 + $0x70] sm:$0xff]  ;;  %v75_v23 = vld [vmem:[%s9263_s0 + $0x78] sm:$0xff]  ;;  %v84_v24 = vpack.c.bf16 %v73_v20, %v72_v19  ;;  %v76_v25 = vld [vmem:[%s9263_s0 + $0x80] sm:$0xff] }
   0x7   :  { %v77_v26 = vld [vmem:[%s9263_s0 + $0x88] sm:$0xff]  ;;  %v85_v27 = vpack.c.bf16 %v75_v23, %v74_v22  ;;  %v5065_v30 = vld [vmem:[%s9264_s1 + $0x14] ss:$8 sps:$4 sm:$0xff]   ;;  %v5067_v31 = vld [vmem:[%s9264_s1 + $0x10] ss:$8 sps:$4 sm:$0xff]  }
   0x8   :  { %163 = vmatpush1.bf16.msra.mxu0 %v79_v6  ;;  %v86_v28 = vpack.c.bf16 %v77_v26, %v76_v25  ;;  %v5062_v29 = vld [vmem:[%s9264_s1] ss:$8 sps:$4 sm:$0xff]   ;;  %v5068_v32 = vld [vmem:[%s9264_s1 + $0x24] ss:$8 sps:$4 sm:$0xff]   ;;  %v5071_v34 = vld [vmem:[%s9264_s1 + $0x34] ss:$8 sps:$4 sm:$0xff]  }
   0x9   :  { %164 = vmatprep.subr.bf16.mxu0 %v9285_v3  ;;  %v5070_v33 = vld [vmem:[%s9264_s1 + $0x20] ss:$8 sps:$4 sm:$0xff]   ;;  %v5073_v35 = vld [vmem:[%s9264_s1 + $0x30] ss:$8 sps:$4 sm:$0xff]   ;;  %v5074_v36 = vld [vmem:[%s9264_s1 + $0x44] ss:$8 sps:$4 sm:$0xff]  }
   0xa   :  { %v5076_v37 = vld [vmem:[%s9264_s1 + $0x40] ss:$8 sps:$4 sm:$0xff]   ;;  %v5077_v38 = vld [vmem:[%s9264_s1 + $0x54] ss:$8 sps:$4 sm:$0xff]  }
   0xc   :  { %165 = vmatpush1.bf16.msra.mxu0 %v80_v9 }
   0xd   :  { %166 = vmatprep.subr.bf16.mxu0 %v9285_v3 }
  0x10   :  { %167 = vmatpush1.bf16.msra.mxu0 %v81_v13 }
  0x11   :  { %168 = vmatprep.subr.bf16.mxu0 %v9285_v3 }
  0x14   :  { %169 = vmatpush1.bf16.msra.mxu0 %v82_v18 }
  0x15   :  { %170 = vmatprep.subr.bf16.mxu0 %v9285_v3 }
  0x18   :  { %171 = vmatpush1.bf16.msra.mxu0 %v83_v21 }
  0x19   :  { %172 = vmatprep.subr.bf16.mxu0 %v9285_v3 }
  0x1c   :  { %173 = vmatpush1.bf16.msra.mxu0 %v84_v24 }
  0x1d   :  { %174 = vmatprep.subr.bf16.mxu0 %v9285_v3 }
  0x20   :  { %175 = vmatpush1.bf16.msra.mxu0 %v85_v27 }
  0x21   :  { %176 = vmatprep.subr.bf16.mxu0 %v9285_v3 }
  0x24   :  { %177 = vmatpush1.bf16.msra.mxu0 %v86_v28 }
  0x27   :  { %193 = vmatmul.mubr.bf16.vlgmr.msra.gmra.mrb[0].mxu0 %v5062_v29 }
  0x28   :  { %4553 = vmatprep.mubr.msk.bf16.mxu0 %vm141_vm0, %v5065_v30 }
  0x2f   :  { %201 = vmatmul.mubr.bf16.gmra.mrb[4].mxu0 %v5067_v31 }
  0x30   :  { %4554 = vmatprep.mubr.msk.bf16.mxu0 %vm141_vm0, %v5068_v32 }
  0x37   :  { %209 = vmatmul.mubr.bf16.gmra.mrb[8].mxu0 %v5070_v33 }
  0x38   :  { %4555 = vmatprep.mubr.msk.bf16.mxu0 %vm141_vm0, %v5071_v34 }
  0x3f   :  { %217 = vmatmul.mubr.bf16.gmra.mrb[12].mxu0 %v5073_v35 }
  0x40   :  { %4556 = vmatprep.mubr.msk.bf16.mxu0 %vm141_vm0, %v5074_v36 }
  0x41   :  { %22 = vsyncpa [#allocation5], 0  ;;  %v5079_v39 = vld [vmem:[%s9264_s1 + $0x50] ss:$8 sps:$4 sm:$0xff]   ;;  %v5080_v40 = vld [vmem:[%s9265_s2] sm:$0xff]   ;;  %vm9279_vm1 = vcmask 392192  }
  0x42   :  { %4885 = vmatprep.subr.bf16.mxu1 %v5080_v40  ;;  %v5081_v41 = vld [vmem:[%s9265_s2 + $0x8] sm:$0xff]   ;;  %v5082_v42 = vld [vmem:[%s9265_s2 + $0x10] sm:$0xff]   ;;  %v371_v43 = vld [vmem:[%s9266_s3] sm:$0xff]  ;;  %vm628_vm2 = vcmask 785408   ;;  %vm539_vm3 = vcmask 261120   ;;  %vm1087_vm4 = vcmask 257024  }
  0x43   :  { %4886 = vmatpush3.bf16.msra.mxu1 %v5080_v40  ;;  %v455_v44 = vld [vmem:[%s9267_s4] sm:$0xff]  ;;  %385 = vperm.xlu0 %5060, %v371_v43   ;;  %v372_v45 = vld [vmem:[%s9266_s3 + $0x8] sm:$0xff]  ;;  %v373_v47 = vld [vmem:[%s9266_s3 + $0x10] sm:$0xff]  ;;  %vm9280_vm5 = vcmask 1043456   ;;  %vm1408_vm6 = vcmask 64512   ;;  %vm1175_vm7 = vcmask 97280  }
  0x44   :  { %4887 = vmatprep.subr.bf16.mxu1 %v5081_v41  ;;  %469 = vperm.xlu1 %5061, %v455_v44   ;;  %v456_v46 = vld [vmem:[%s9267_s4 + $0x8] sm:$0xff]  ;;  %v374_v48 = vld [vmem:[%s9266_s3 + $0x18] sm:$0xff]  ;;  %v457_v49 = vld [vmem:[%s9267_s4 + $0x10] sm:$0xff]  ;;  %vm1182_vm8 = vcmask 93184   ;;  %s5451_s17 = smov [#allocation2]  }
  0x45   :  { %v458_v50 = vld [vmem:[%s9267_s4 + $0x18] sm:$0xff]  ;;  %v375_v51 = vld [vmem:[%s9266_s3 + $0x20] sm:$0xff]  ;;  %v376_v52 = vld [vmem:[%s9266_s3 + $0x28] sm:$0xff]  ;;  %s4494_s18 = sshll.u32 %s5451_s17, 4  ;;  %s8582_s18 = int_to_ptr.vmem [resolvable:$true] %s4494_s18 }
  0x46   :  { %v459_v53 = vld [vmem:[%s9267_s4 + $0x20] sm:$0xff]  ;;  %v460_v54 = vld [vmem:[%s9267_s4 + $0x28] sm:$0xff]  ;;  %v377_v55 = vld [vmem:[%s9266_s3 + $0x30] sm:$0xff] }
  0x47   :  { %225 = vmatmul.mubr.bf16.gmra.mrb[16].mxu0 %v5076_v37  ;;  %4888 = vmatpush3.bf16.msra.mxu1 %v5081_v41  ;;  %v378_v56 = vld [vmem:[%s9266_s3 + $0x38] sm:$0xff]  ;;  %v461_v57 = vld [vmem:[%s9267_s4 + $0x30] sm:$0xff]  ;;  %v379_v59 = vld [vmem:[%s9266_s3 + $0x40] sm:$0xff] }
  0x48   :  { %4557 = vmatprep.mubr.msk.bf16.mxu0 %vm141_vm0, %v5077_v38  ;;  %4889 = vmatprep.subr.bf16.mxu1 %v5082_v42  ;;  %v462_v58 = vld [vmem:[%s9267_s4 + $0x38] sm:$0xff]  ;;  %v380_v60 = vld [vmem:[%s9266_s3 + $0x48] sm:$0xff]  ;;  %v463_v61 = vld [vmem:[%s9267_s4 + $0x40] sm:$0xff] }
  0x49   :  { %390 = vperm.xlu0 %5060, %v372_v45   ;;  %474 = vperm.xlu1 %5061, %v456_v46   ;;  %v464_v62 = vld [vmem:[%s9267_s4 + $0x48] sm:$0xff]  ;;  %v381_v63 = vld [vmem:[%s9266_s3 + $0x50] sm:$0xff]  ;;  %v382_v0 = vld [vmem:[%s9266_s3 + $0x58] sm:$0xff] }
  0x4a   :  { %v465_v1 = vld [vmem:[%s9267_s4 + $0x50] sm:$0xff]  ;;  %v466_v2 = vld [vmem:[%s9267_s4 + $0x58] sm:$0xff]  ;;  %v5083_v34 = vld [vmem:[%s9270_s7] sm:$0xff]  }
  0x4b   :  { %4890 = vmatpush3.bf16.msra.mxu1 %v5082_v42  ;;  %v5085_v35 = vld [vmem:[%s9268_s5] sm:$0xff]  }
  0x4d   :  { %395 = vperm.xlu0 %5060, %v373_v47   ;;  %400 = vperm.xlu1 %5061, %v374_v48  }
  0x4f   :  { %233 = vmatmul.mubr.bf16.gmra.mrb[20].mxu0 %v5079_v39 }
  0x50   :  { %4971 = vmatprep.mubr.msk.bf16.mxu0 %vm628_vm2, %v5083_v34 }
  0x51   :  { %479 = vperm.xlu0 %5060, %v457_v49   ;;  %484 = vperm.xlu1 %5061, %v458_v50  }
  0x55   :  { %405 = vperm.xlu0 %5060, %v375_v51   ;;  %410 = vperm.xlu1 %5061, %v376_v52  }
  0x59   :  { %489 = vperm.xlu0 %5060, %v459_v53   ;;  %494 = vperm.xlu1 %5061, %v460_v54  }
  0x5d   :  { %415 = vperm.xlu0 %5060, %v377_v55   ;;  %420 = vperm.xlu1 %5061, %v378_v56  }
  0x61   :  { %499 = vperm.xlu0 %5060, %v461_v57   ;;  %504 = vperm.xlu1 %5061, %v462_v58  }
  0x65   :  { %425 = vperm.xlu0 %5060, %v379_v59   ;;  %430 = vperm.xlu1 %5061, %v380_v60  }
  0x69   :  { %509 = vperm.xlu0 %5060, %v463_v61   ;;  %514 = vperm.xlu1 %5061, %v464_v62  }
  0x6d   :  { %435 = vperm.xlu0 %5060, %v381_v63   ;;  %440 = vperm.xlu1 %5061, %v382_v0  }
  0x71   :  { %519 = vperm.xlu0 %5060, %v465_v1   ;;  %524 = vperm.xlu1 %5061, %v466_v2  }
  0xc2   :  { %v386_v36 = vpop.permute.xlu0 %385 }
  0xc3   :  { %v470_v37 = vpop.permute.xlu1 %469 }
  0xc8   :  { %v391_v38 = vpop.permute.xlu0 %390  ;;  %v475_v39 = vpop.permute.xlu1 %474 }
  0xcc   :  { %v396_v40 = vpop.permute.xlu0 %395  ;;  %v401_v41 = vpop.permute.xlu1 %400 }
  0xd0   :  { %v480_v42 = vpop.permute.xlu0 %479  ;;  %v485_v43 = vpop.permute.xlu1 %484 }
  0xd4   :  { %v406_v44 = vpop.permute.xlu0 %405  ;;  %v411_v45 = vpop.permute.xlu1 %410 }
  0xd8   :  { %v490_v46 = vpop.permute.xlu0 %489  ;;  %v495_v47 = vpop.permute.xlu1 %494 }
  0xdc   :  { %v416_v56 = vpop.permute.xlu0 %415  ;;  %v421_v60 = vpop.permute.xlu1 %420 }
  0xe0   :  { %v500_v0 = vpop.permute.xlu0 %499  ;;  %v505_v1 = vpop.permute.xlu1 %504 }
  0xe4   :  { %v426_v2 = vpop.permute.xlu0 %425 }
  0xfa   :  { %v194_v4 = vpop.f32.mrb[0].mxu0 }
  0xfb   :  { %v196_v5 = vpop.f32.mrb[1].mxu0 }
  0xfc   :  { %v197_v6 = vpop.f32.mrb[2].mxu0 }
  0xfd   :  { %v241_v7 = vpack.c.bf16 %v197_v6, %v194_v4  ;;  %v199_v8 = vpop.f32.mrb[3].mxu0 }
  0xff   :  { %4891 = vmatprep.mubr.msk.bf16.mxu1 %vm9279_vm1, %v241_v7  ;;  %v431_v7 = vpop.permute.xlu1 %430 }
 0x102   :  { %v202_v9 = vpop.f32.mrb[4].mxu0 }
 0x103   :  { %v204_v10 = vpop.f32.mrb[5].mxu0 }
 0x104   :  { %v205_v11 = vpop.f32.mrb[6].mxu0 }
 0x105   :  { %v242_v12 = vpack.c.bf16 %v205_v11, %v202_v9  ;;  %v207_v13 = vpop.f32.mrb[7].mxu0 }
 0x107   :  { %4892 = vmatmul.mubr.msk.bf16.vlgmr.msra.gmra.mrb[0].mxu1 %vm9279_vm1, %v242_v12 }
 0x10a   :  { %v210_v14 = vpop.f32.mrb[8].mxu0 }
 0x10b   :  { %v212_v15 = vpop.f32.mrb[9].mxu0 }
 0x10c   :  { %v213_v16 = vpop.f32.mrb[10].mxu0 }
 0x10d   :  { %v243_v17 = vpack.c.bf16 %v213_v16, %v210_v14  ;;  %v215_v18 = vpop.f32.mrb[11].mxu0  ;;  %v510_v16 = vpop.permute.xlu0 %509 }
 0x10f   :  { %4895 = vmatprep.mubr.msk.bf16.mxu1 %vm9279_vm1, %v243_v17 }
 0x112   :  { %v218_v19 = vpop.f32.mrb[12].mxu0 }
 0x113   :  { %v220_v20 = vpop.f32.mrb[13].mxu0 }
 0x114   :  { %v221_v21 = vpop.f32.mrb[14].mxu0 }
 0x115   :  { %v244_v22 = vpack.c.bf16 %v221_v21, %v218_v19  ;;  %v223_v23 = vpop.f32.mrb[15].mxu0  ;;  %v515_v19 = vpop.permute.xlu1 %514 }
 0x116   :  { %v436_v21 = vpop.permute.xlu0 %435 }
 0x117   :  { %4896 = vmatmul.mubr.msk.bf16.gmra.mrb[4].mxu1 %vm9279_vm1, %v244_v22 }
 0x119   :  { %v441_v22 = vpop.permute.xlu1 %440 }
 0x11a   :  { %v226_v24 = vpop.f32.mrb[16].mxu0 }
 0x11b   :  { %v228_v25 = vpop.f32.mrb[17].mxu0 }
 0x11c   :  { %v229_v26 = vpop.f32.mrb[18].mxu0 }
 0x11d   :  { %v245_v27 = vpack.c.bf16 %v229_v26, %v226_v24  ;;  %v231_v28 = vpop.f32.mrb[19].mxu0  ;;  %v520_v26 = vpop.permute.xlu0 %519 }
 0x11f   :  { %4899 = vmatprep.mubr.msk.bf16.mxu1 %vm9279_vm1, %v245_v27 }
 0x122   :  { %v234_v29 = vpop.f32.mrb[20].mxu0 }
 0x123   :  { %v236_v30 = vpop.f32.mrb[21].mxu0 }
 0x124   :  { %v237_v31 = vpop.f32.mrb[22].mxu0 }
 0x125   :  { %v246_v32 = vpack.c.bf16 %v237_v31, %v234_v29  ;;  %v239_v33 = vpop.f32.mrb[23].mxu0 }
 0x127   :  { %4900 = vmatmul.mubr.msk.bf16.gmra.mrb[8].mxu1 %vm9279_vm1, %v246_v32  ;;  %v525_v32 = vpop.permute.xlu1 %524 }
 0x128   :  { %4915 = vmatprep.mubr.msk.bf16.mxu1 %vm628_vm2, %v5085_v35 }
 0x1da   :  { %v4893_v48 = vpop.f32.mrb[0].mxu1 }
 0x1db   :  { %v445_v49 = vmul.f32 %v4893_v48, %v396_v40  ;;  %v324_v50 = vpop.f32.mrb[1].mxu1  ;;  %v5084_v40 = vld [vmem:[%s9270_s7 + $0x8] ss:$0 sps:$4 sm:$0x33]   ;;  %v5093_v48 = vld [vmem:[%s9268_s5 + $0x40] sm:$0xff]  }
 0x1dc   :  { %v443_v51 = vmul.f32 %v386_v36, %v324_v50  ;;  %v4894_v52 = vpop.f32.mrb[2].mxu1  ;;  %v5096_v50 = vld [vmem:[%s9271_s8 + $0x8] sm:$0xff]  }
 0x1dd   :  { %v529_v53 = vsub.f32 %v445_v49, %v480_v42  ;;  %v446_v54 = vmul.f32 %v4894_v52, %v401_v41  ;;  %v327_v55 = vpop.f32.mrb[3].mxu1  ;;  %v5086_v41 = vld [vmem:[%s9268_s5 + $0x8] sm:$0xff]   ;;  %v5087_v42 = vld [vmem:[%s9268_s5 + $0x10] sm:$0xff]  }
 0x1de   :  { %v527_v57 = vsub.f32 %v443_v51, %v470_v37  ;;  %v444_v58 = vmul.f32 %v391_v38, %v327_v55  ;;  %v5094_v49 = vld [vmem:[%s9268_s5 + $0x48] sm:$0xff]   ;;  %v5097_v51 = vld [vmem:[%s9269_s6] sm:$0xff]  }
 0x1df   :  { %542 = vst.msk [vmem:[#allocation4 + $0x10] sm:$0xff] %vm539_vm3, %v529_v53  ;;  %v530_v59 = vsub.f32 %v446_v54, %v485_v43  ;;  %v5088_v43 = vld [vmem:[%s9268_s5 + $0x18] sm:$0xff]   ;;  %v5098_v52 = vld [vmem:[%s9269_s6 + $0x8] sm:$0xff]  }
 0x1e0   :  { %540 = vst.msk [vmem:[#allocation4] sm:$0xff] %vm539_vm3, %v527_v57  ;;  %v528_v61 = vsub.f32 %v444_v58, %v475_v39  ;;  %v5095_v39 = vld [vmem:[%s9271_s8] sm:$0xff]  }
 0x1e1   :  { %543 = vst.msk [vmem:[#allocation4 + $0x18] sm:$0xff] %vm539_vm3, %v530_v59  ;;  %v553_v62 = vpack.c.bf16 %v530_v59, %v529_v53 }
 0x1e2   :  { %541 = vst.msk [vmem:[#allocation4 + $0x8] sm:$0xff] %vm539_vm3, %v528_v61  ;;  %v552_v63 = vpack.c.bf16 %v528_v61, %v527_v57 }
 0x1e4   :  { %4903 = vmatprep.subr.bf16.mxu1 %v552_v63  ;;  %4959 = vmatprep.subr.bf16.mxu0 %v552_v63 }
 0x1e5   :  { %4904 = vmatpush3.bf16.msra.mxu1 %v552_v63  ;;  %4960 = vmatpush3.bf16.msra.mxu0 %v552_v63 }
 0x1e6   :  { %4905 = vmatprep.subr.bf16.mxu1 %v553_v62  ;;  %4961 = vmatprep.subr.bf16.mxu0 %v553_v62 }
 0x1e9   :  { %4906 = vmatpush3.bf16.msra.mxu1 %v553_v62  ;;  %4962 = vmatpush3.bf16.msra.mxu0 %v553_v62 }
 0x1ea   :  { %v4897_v4 = vpop.f32.mrb[4].mxu1 }
 0x1eb   :  { %v449_v5 = vmul.f32 %v4897_v4, %v416_v56  ;;  %v340_v6 = vpop.f32.mrb[5].mxu1 }
 0x1ec   :  { %v447_v8 = vmul.f32 %v406_v44, %v340_v6  ;;  %v4898_v9 = vpop.f32.mrb[6].mxu1  ;;  %v5089_v44 = vld [vmem:[%s9268_s5 + $0x20] sm:$0xff]  }
 0x1ed   :  { %v533_v10 = vsub.f32 %v449_v5, %v500_v0  ;;  %v450_v11 = vmul.f32 %v4898_v9, %v421_v60  ;;  %v343_v12 = vpop.f32.mrb[7].mxu1 }
 0x1ee   :  { %v531_v13 = vsub.f32 %v447_v8, %v490_v46  ;;  %v448_v14 = vmul.f32 %v411_v45, %v343_v12  ;;  %v5090_v45 = vld [vmem:[%s9268_s5 + $0x28] sm:$0xff]   ;;  %v5091_v46 = vld [vmem:[%s9268_s5 + $0x30] sm:$0xff]  }
 0x1ef   :  { %546 = vst.msk [vmem:[#allocation4 + $0x30] sm:$0xff] %vm539_vm3, %v533_v10  ;;  %v534_v15 = vsub.f32 %v450_v11, %v505_v1 }
 0x1f0   :  { %544 = vst.msk [vmem:[#allocation4 + $0x20] sm:$0xff] %vm539_vm3, %v531_v13  ;;  %v532_v17 = vsub.f32 %v448_v14, %v495_v47  ;;  %v5092_v47 = vld [vmem:[%s9268_s5 + $0x38] sm:$0xff]  }
 0x1f1   :  { %547 = vst.msk [vmem:[#allocation4 + $0x38] sm:$0xff] %vm539_vm3, %v534_v15  ;;  %v555_v18 = vpack.c.bf16 %v534_v15, %v533_v10 }
 0x1f2   :  { %545 = vst.msk [vmem:[#allocation4 + $0x28] sm:$0xff] %vm539_vm3, %v532_v17  ;;  %v554_v20 = vpack.c.bf16 %v532_v17, %v531_v13 }
 0x1f4   :  { %4907 = vmatprep.subr.bf16.mxu1 %v554_v20  ;;  %4963 = vmatprep.subr.bf16.mxu0 %v554_v20 }
 0x1f5   :  { %4908 = vmatpush3.bf16.msra.mxu1 %v554_v20  ;;  %4964 = vmatpush3.bf16.msra.mxu0 %v554_v20 }
 0x1f6   :  { %4909 = vmatprep.subr.bf16.mxu1 %v555_v18  ;;  %4965 = vmatprep.subr.bf16.mxu0 %v555_v18 }
 0x1f9   :  { %4910 = vmatpush3.bf16.msra.mxu1 %v555_v18  ;;  %4966 = vmatpush3.bf16.msra.mxu0 %v555_v18 }
 0x1fa   :  { %v4901_v23 = vpop.f32.mrb[8].mxu1 }
 0x1fb   :  { %v453_v24 = vmul.f32 %v4901_v23, %v436_v21  ;;  %v356_v25 = vpop.f32.mrb[9].mxu1 }
 0x1fc   :  { %v451_v27 = vmul.f32 %v426_v2, %v356_v25  ;;  %v4902_v28 = vpop.f32.mrb[10].mxu1 }
 0x1fd   :  { %v537_v29 = vsub.f32 %v453_v24, %v520_v26  ;;  %v454_v30 = vmul.f32 %v4902_v28, %v441_v22  ;;  %v359_v31 = vpop.f32.mrb[11].mxu1 }
 0x1fe   :  { %v535_v33 = vsub.f32 %v451_v27, %v510_v16  ;;  %v452_v34 = vmul.f32 %v431_v7, %v359_v31 }
 0x1ff   :  { %550 = vst.msk [vmem:[#allocation4 + $0x50] sm:$0xff] %vm539_vm3, %v537_v29  ;;  %v538_v35 = vsub.f32 %v454_v30, %v525_v32 }
 0x200   :  { %548 = vst.msk [vmem:[#allocation4 + $0x40] sm:$0xff] %vm539_vm3, %v535_v33  ;;  %v536_v36 = vsub.f32 %v452_v34, %v515_v19 }
 0x201   :  { %551 = vst.msk [vmem:[#allocation4 + $0x58] sm:$0xff] %vm539_vm3, %v538_v35  ;;  %v557_v37 = vpack.c.bf16 %v538_v35, %v537_v29 }
 0x202   :  { %549 = vst.msk [vmem:[#allocation4 + $0x48] sm:$0xff] %vm539_vm3, %v536_v36  ;;  %v556_v38 = vpack.c.bf16 %v536_v36, %v535_v33 }
 0x204   :  { %4911 = vmatprep.subr.bf16.mxu1 %v556_v38  ;;  %4967 = vmatprep.subr.bf16.mxu0 %v556_v38 }
 0x205   :  { %4912 = vmatpush3.bf16.msra.mxu1 %v556_v38  ;;  %4968 = vmatpush3.bf16.msra.mxu0 %v556_v38 }
 0x206   :  { %4913 = vmatprep.subr.bf16.mxu1 %v557_v37  ;;  %4969 = vmatprep.subr.bf16.mxu0 %v557_v37 }
 0x209   :  { %4914 = vmatpush3.bf16.msra.mxu1 %v557_v37  ;;  %4970 = vmatpush3.bf16.msra.mxu0 %v557_v37 }
 0x20a   :  { %4975 = vmatprep.subr.bf16.mxu0 %v5095_v39  ;;  %4935 = vmatprep.subr.bf16.mxu1 %v5097_v51 }
 0x20c   :  { %4972 = vmatmul.mubr.msk.bf16.vlgmr.msra.gmra.mrb[24].mxu0 %vm628_vm2, %v5084_v40  ;;  %4916 = vmatmul.mubr.msk.bf16.vlgmr.msra.gmra.mrb[12].mxu1 %vm628_vm2, %v5086_v41 }
 0x20d   :  { %4919 = vmatprep.mubr.msk.bf16.mxu1 %vm628_vm2, %v5087_v42  ;;  %4976 = vmatpush3.bf16.msra.mxu0 %v5095_v39 }
 0x20e   :  { %4977 = vmatprep.subr.bf16.mxu0 %v5096_v50  ;;  %4936 = vmatpush3.bf16.msra.mxu1 %v5097_v51 }
 0x20f   :  { %4937 = vmatprep.subr.bf16.mxu1 %v5098_v52 }
 0x211   :  { %4978 = vmatpush3.bf16.msra.mxu0 %v5096_v50 }
 0x212   :  { %4938 = vmatpush3.bf16.msra.mxu1 %v5098_v52 }
 0x213   :  { %1776 = vmatprep.subr.bf16.mxu1 %v9285_v3 }
 0x214   :  { %4920 = vmatmul.mubr.msk.bf16.gmra.mrb[16].mxu1 %vm628_vm2, %v5088_v43 }
 0x215   :  { %4923 = vmatprep.mubr.msk.bf16.mxu1 %vm628_vm2, %v5089_v44 }
 0x21c   :  { %4924 = vmatmul.mubr.msk.bf16.gmra.mrb[20].mxu1 %vm628_vm2, %v5090_v45 }
 0x21d   :  { %4927 = vmatprep.mubr.msk.bf16.mxu1 %vm628_vm2, %v5091_v46 }
 0x224   :  { %4928 = vmatmul.mubr.msk.bf16.gmra.mrb[24].mxu1 %vm628_vm2, %v5092_v47 }
 0x225   :  { %4931 = vmatprep.mubr.msk.bf16.mxu1 %vm628_vm2, %v5093_v48 }
 0x22c   :  { %4932 = vmatmul.mubr.msk.bf16.gmra.mrb[28].mxu1 %vm628_vm2, %v5094_v49 }
 0x2df   :  { %v4973_v53 = vpop.f32.mrb[24].mxu0  ;;  %v4917_v54 = vpop.f32.mrb[12].mxu1 }
 0x2e0   :  { %v992_v55 = vpop.f32.mrb[25].mxu0  ;;  %v693_v56 = vpop.f32.mrb[13].mxu1  ;;  %v1007_v0 = vpack.c.bf16 %v4973_v53, %v4973_v53 }
 0x2e1   :  { %v4974_v57 = vpop.f32.mrb[26].mxu0  ;;  %v4918_v58 = vpop.f32.mrb[14].mxu1 }
 0x2e2   :  { %v995_v59 = vpop.f32.mrb[27].mxu0  ;;  %v773_v60 = vpack.c.bf16 %v4918_v58, %v4917_v54  ;;  %v696_v61 = vpop.f32.mrb[15].mxu1 }
 0x2e3   :  { %v1006_v62 = vpack.c.bf16 %v995_v59, %v992_v55  ;;  %v772_v63 = vpack.c.bf16 %v696_v61, %v693_v56 }
 0x2e5   :  { %4979 = vmatprep.mubr.msk.bf16.mxu0 %vm539_vm3, %v1006_v62  ;;  %4939 = vmatprep.mubr.msk.bf16.mxu1 %vm539_vm3, %v772_v63 }
 0x2e6   :  { %4980 = vmatmul.mubr.msk.bf16.vlgmr.msra.gmra.mrb[28].mxu0 %vm539_vm3, %v1007_v0  ;;  %4940 = vmatmul.mubr.msk.bf16.vlgmr.msra.gmra.mrb[32].mxu1 %vm539_vm3, %v773_v60  ;;  %v5099_v60 = vld [vmem:[%s9272_s9] sm:$0xff]  }
 0x2e7   :  { %v4921_v1 = vpop.f32.mrb[16].mxu1  ;;  %4983 = vmatprep.subr.bf16.mxu0 %v5099_v60 }
 0x2e8   :  { %v709_v2 = vpop.f32.mrb[17].mxu1  ;;  %4984 = vmatpush3.bf16.msra.mxu0 %v5099_v60 }
 0x2e9   :  { %v4922_v4 = vpop.f32.mrb[18].mxu1 }
 0x2ea   :  { %v775_v5 = vpack.c.bf16 %v4922_v4, %v4921_v1  ;;  %v712_v6 = vpop.f32.mrb[19].mxu1  ;;  %v5100_v1 = vld [vmem:[%s9272_s9 + $0x8] sm:$0xff]  }
 0x2eb   :  { %v774_v7 = vpack.c.bf16 %v712_v6, %v709_v2  ;;  %4985 = vmatprep.subr.bf16.mxu0 %v5100_v1 }
 0x2ec   :  { %4986 = vmatpush3.bf16.msra.mxu0 %v5100_v1 }
 0x2ed   :  { %4943 = vmatprep.mubr.msk.bf16.mxu1 %vm539_vm3, %v774_v7 }
 0x2ee   :  { %4944 = vmatmul.mubr.msk.bf16.gmra.mrb[36].mxu1 %vm539_vm3, %v775_v5 }
 0x2ef   :  { %v4925_v8 = vpop.f32.mrb[20].mxu1 }
 0x2f0   :  { %v725_v9 = vpop.f32.mrb[21].mxu1 }
 0x2f1   :  { %v4926_v10 = vpop.f32.mrb[22].mxu1 }
 0x2f2   :  { %v777_v11 = vpack.c.bf16 %v4926_v10, %v4925_v8  ;;  %v728_v12 = vpop.f32.mrb[23].mxu1 }
 0x2f3   :  { %v776_v13 = vpack.c.bf16 %v728_v12, %v725_v9 }
 0x2f5   :  { %4947 = vmatprep.mubr.msk.bf16.mxu1 %vm539_vm3, %v776_v13 }
 0x2f6   :  { %4948 = vmatmul.mubr.msk.bf16.gmra.mrb[40].mxu1 %vm539_vm3, %v777_v11 }
 0x2f7   :  { %v4929_v14 = vpop.f32.mrb[24].mxu1 }
 0x2f8   :  { %v741_v15 = vpop.f32.mrb[25].mxu1 }
 0x2f9   :  { %v4930_v16 = vpop.f32.mrb[26].mxu1 }
 0x2fa   :  { %v779_v17 = vpack.c.bf16 %v4930_v16, %v4929_v14  ;;  %v744_v18 = vpop.f32.mrb[27].mxu1 }
 0x2fb   :  { %v778_v19 = vpack.c.bf16 %v744_v18, %v741_v15  ;;  %v5845_v18 = vld [vmem:[%s9273_s10] sm:$0xf] }
 0x2fc   :  { %5033 = vmatprep.subr.msk.bf16.mxu0 %vm9280_vm5, %v5845_v18 }
 0x2fd   :  { %4951 = vmatprep.mubr.msk.bf16.mxu1 %vm539_vm3, %v778_v19 }
 0x2fe   :  { %4952 = vmatmul.mubr.msk.bf16.gmra.mrb[44].mxu1 %vm539_vm3, %v779_v17 }
 0x2ff   :  { %v4933_v20 = vpop.f32.mrb[28].mxu1 }
 0x300   :  { %v757_v21 = vpop.f32.mrb[29].mxu1 }
 0x301   :  { %v4934_v22 = vpop.f32.mrb[30].mxu1 }
 0x302   :  { %v781_v23 = vpack.c.bf16 %v4934_v22, %v4933_v20  ;;  %v760_v24 = vpop.f32.mrb[31].mxu1 }
 0x303   :  { %v780_v25 = vpack.c.bf16 %v760_v24, %v757_v21 }
 0x305   :  { %4955 = vmatprep.mubr.msk.bf16.mxu1 %vm539_vm3, %v780_v25 }
 0x306   :  { %4956 = vmatmul.mubr.msk.bf16.gmra.mrb[48].mxu1 %vm539_vm3, %v781_v23 }
 0x3b9   :  { %v5814_v26 = vpop.f32.mrb[28].mxu0  ;;  %v4941_v27 = vpop.f32.mrb[32].mxu1 }
 0x3ba   :  { %v5816_v28 = vpop.f32.mrb[29].mxu0  ;;  %v862_v29 = vpop.f32.mrb[33].mxu1  ;;  %v1080_v35 = vmul.f32 %v5814_v26, %v5814_v26  ;;  %v4613_v38 = vmul.f32 -1.442695, %v4941_v27 }
 0x3bb   :  { %v1078_v30 = vmul.f32 %v5816_v28, %v5816_v28  ;;  %v4982_v31 = vpop.f32.mrb[30].mxu0  ;;  %v4942_v32 = vpop.f32.mrb[34].mxu1  ;;  %v4611_v39 = vmul.f32 -1.442695, %v862_v29 }
 0x3bc   :  { %v5820_v33 = vpop.f32.mrb[31].mxu0  ;;  %v865_v34 = vpop.f32.mrb[35].mxu1  ;;  %v4614_v41 = vmul.f32 -1.442695, %v4942_v32  ;;  %v1088_v43 = vsel %vm1087_vm4, %v1080_v35, 0.0  ;;  %5281 = vpow2.f32 %v4613_v38 }
 0x3bd   :  { %v1079_v36 = vmul.f32 %v5820_v33, %v5820_v33  ;;  %v1081_v37 = vsel %vm539_vm3, %v1078_v30, 0.0  ;;  %v4612_v42 = vmul.f32 -1.442695, %v865_v34  ;;  %5283 = vpow2.f32 %v4611_v39 }
 0x3be   :  { %1082 = vadd.xlane.f32.xlu0 %v1081_v37  ;;  %5285 = vpow2.f32 %v4614_v41 }
 0x3bf   :  { %v1084_v40 = vsel %vm539_vm3, %v1079_v36, 0.0  ;;  %5287 = vpow2.f32 %v4612_v42 }
 0x3c0   :  { %1085 = vadd.xlane.f32.xlu1 %v1084_v40 }
 0x3c1   :  { %v4945_v51 = vpop.f32.mrb[36].mxu1 }
 0x3c2   :  { %1089 = vadd.xlane.f32.xlu0 %v1088_v43  ;;  %v878_v53 = vpop.f32.mrb[37].mxu1  ;;  %v4617_v57 = vmul.f32 -1.442695, %v4945_v51 }
 0x3c3   :  { %v4946_v54 = vpop.f32.mrb[38].mxu1  ;;  %v4615_v56 = vmul.f32 -1.442695, %v878_v53 }
 0x3c4   :  { %v881_v55 = vpop.f32.mrb[39].mxu1  ;;  %v4618_v58 = vmul.f32 -1.442695, %v4946_v54 }
 0x3c5   :  { %v4616_v59 = vmul.f32 -1.442695, %v881_v55 }
 0x3c6   :  { %v5282_v44 = vpop.eup %5281 }
 0x3c7   :  { %v5284_v45 = vpop.eup %5283  ;;  %v1339_v48 = vadd.f32 1.0, %v5282_v44 }
 0x3c8   :  { %v5286_v46 = vpop.eup %5285  ;;  %v1337_v49 = vadd.f32 1.0, %v5284_v45 }
 0x3c9   :  { %v5288_v47 = vpop.eup %5287  ;;  %v1340_v50 = vadd.f32 1.0, %v5286_v46  ;;  %5289 = vrcp.f32 %v1339_v48  ;;  %v4949_v61 = vpop.f32.mrb[40].mxu1 }
 0x3ca   :  { %v1338_v52 = vadd.f32 1.0, %v5288_v47  ;;  %5291 = vrcp.f32 %v1337_v49  ;;  %v894_v62 = vpop.f32.mrb[41].mxu1  ;;  %v4621_v6 = vmul.f32 -1.442695, %v4949_v61 }
 0x3cb   :  { %5293 = vrcp.f32 %v1340_v50  ;;  %v4950_v63 = vpop.f32.mrb[42].mxu1  ;;  %v4619_v4 = vmul.f32 -1.442695, %v894_v62 }
 0x3cc   :  { %5295 = vrcp.f32 %v1338_v52  ;;  %v897_v0 = vpop.f32.mrb[43].mxu1  ;;  %v4622_v7 = vmul.f32 -1.442695, %v4950_v63 }
 0x3cd   :  { %5297 = vpow2.f32 %v4615_v56  ;;  %v4620_v8 = vmul.f32 -1.442695, %v897_v0 }
 0x3ce   :  { %5299 = vpow2.f32 %v4617_v57 }
 0x3cf   :  { %5301 = vpow2.f32 %v4618_v58 }
 0x3d0   :  { %5303 = vpow2.f32 %v4616_v59 }
 0x3d1   :  { %5305 = vpow2.f32 %v4619_v4  ;;  %v4953_v11 = vpop.f32.mrb[44].mxu1 }
 0x3d2   :  { %5307 = vpow2.f32 %v4621_v6  ;;  %v4625_v13 = vmul.f32 -1.442695, %v4953_v11  ;;  %v910_v14 = vpop.f32.mrb[45].mxu1 }
 0x3d3   :  { %v5834_v2 = vpop.eup %5289  ;;  %5309 = vpow2.f32 %v4622_v7  ;;  %v4954_v17 = vpop.f32.mrb[46].mxu1  ;;  %v4623_v24 = vmul.f32 -1.442695, %v910_v14 }
 0x3d4   :  { %v5836_v5 = vpop.eup %5291  ;;  %5311 = vpow2.f32 %v4620_v8  ;;  %v913_v21 = vpop.f32.mrb[47].mxu1  ;;  %v4626_v29 = vmul.f32 -1.442695, %v4954_v17 }
 0x3d5   :  { %v5838_v9 = vpop.eup %5293  ;;  %5313 = vpow2.f32 %v4625_v13  ;;  %v4624_v32 = vmul.f32 -1.442695, %v913_v21 }
 0x3d6   :  { %v5840_v10 = vpop.eup %5295  ;;  %v1398_v34 = vpack.c.bf16 %v5838_v9, %v5834_v2 }
 0x3d7   :  { %v5298_v12 = vpop.eup %5297  ;;  %v1397_v30 = vpack.c.bf16 %v5840_v10, %v5836_v5 }
 0x3d8   :  { %v5300_v15 = vpop.eup %5299  ;;  %v1341_v16 = vadd.f32 1.0, %v5298_v12 }
 0x3d9   :  { %v5302_v19 = vpop.eup %5301  ;;  %v1343_v20 = vadd.f32 1.0, %v5300_v15  ;;  %v4957_v25 = vpop.f32.mrb[48].mxu1 }
 0x3da   :  { %v5304_v22 = vpop.eup %5303  ;;  %5315 = vrcp.f32 %v1341_v16  ;;  %v1344_v23 = vadd.f32 1.0, %v5302_v19  ;;  %v926_v31 = vpop.f32.mrb[49].mxu1  ;;  %v4629_v35 = vmul.f32 -1.442695, %v4957_v25 }
 0x3db   :  { %5317 = vrcp.f32 %v1343_v20  ;;  %v1342_v27 = vadd.f32 1.0, %v5304_v22  ;;  %v5306_v36 = vpop.eup %5305  ;;  %v4958_v39 = vpop.f32.mrb[50].mxu1  ;;  %v4627_v47 = vmul.f32 -1.442695, %v926_v31 }
 0x3dc   :  { %5319 = vrcp.f32 %v1344_v23  ;;  %v5308_v37 = vpop.eup %5307  ;;  %v1345_v38 = vadd.f32 1.0, %v5306_v36  ;;  %v929_v42 = vpop.f32.mrb[51].mxu1  ;;  %v4630_v49 = vmul.f32 -1.442695, %v4958_v39 }
 0x3dd   :  { %5321 = vrcp.f32 %v1342_v27  ;;  %v5310_v40 = vpop.eup %5309  ;;  %v1347_v41 = vadd.f32 1.0, %v5308_v37  ;;  %v4628_v51 = vmul.f32 -1.442695, %v929_v42 }
 0x3de   :  { %5323 = vpow2.f32 %v4623_v24  ;;  %v5312_v43 = vpop.eup %5311  ;;  %v1348_v44 = vadd.f32 1.0, %v5310_v40 }
 0x3df   :  { %5325 = vpow2.f32 %v4626_v29  ;;  %v5314_v45 = vpop.eup %5313  ;;  %v1346_v46 = vadd.f32 1.0, %v5312_v43 }
 0x3e0   :  { %5327 = vpow2.f32 %v4624_v32  ;;  %v1351_v53 = vadd.f32 1.0, %v5314_v45 }
 0x3e1   :  { %5329 = vpow2.f32 %v4629_v35 }
 0x3e2   :  { %5331 = vrcp.f32 %v1345_v38 }
 0x3e3   :  { %5333 = vrcp.f32 %v1347_v41 }
 0x3e4   :  { %v5853_v48 = vpop.eup %5315  ;;  %5335 = vrcp.f32 %v1348_v44 }
 0x3e5   :  { %v5855_v50 = vpop.eup %5317  ;;  %5337 = vrcp.f32 %v1346_v46 }
 0x3e6   :  { %v5857_v52 = vpop.eup %5319  ;;  %5339 = vpow2.f32 %v4627_v47 }
 0x3e7   :  { %v5859_v54 = vpop.eup %5321  ;;  %v1400_v55 = vpack.c.bf16 %v5857_v52, %v5855_v50  ;;  %5341 = vpow2.f32 %v4630_v49 }
 0x3e8   :  { %v5324_v56 = vpop.eup %5323  ;;  %v1399_v57 = vpack.c.bf16 %v5859_v54, %v5853_v48  ;;  %5343 = vpow2.f32 %v4628_v51 }
 0x3e9   :  { %v5326_v58 = vpop.eup %5325  ;;  %v1349_v59 = vadd.f32 1.0, %v5324_v56  ;;  %5345 = vrcp.f32 %v1351_v53  ;;  %v1441_v53 = vsel %vm9280_vm5, %v5845_v18, 0 }
 0x3ea   :  { %v5328_v60 = vpop.eup %5327  ;;  %v1352_v61 = vadd.f32 1.0, %v5326_v58 }
 0x3eb   :  { %v5330_v62 = vpop.eup %5329  ;;  %5347 = vrcp.f32 %v1349_v59  ;;  %v1350_v63 = vadd.f32 1.0, %v5328_v60 }
 0x3ec   :  { %v5332_v0 = vpop.eup %5331  ;;  %5349 = vrcp.f32 %v1352_v61  ;;  %v1355_v7 = vadd.f32 1.0, %v5330_v62 }
 0x3ed   :  { %v5334_v1 = vpop.eup %5333  ;;  %5351 = vrcp.f32 %v1350_v63 }
 0x3ee   :  { %v5336_v4 = vpop.eup %5335  ;;  %5353 = vrcp.f32 %v1355_v7 }
 0x3ef   :  { %v5338_v6 = vpop.eup %5337  ;;  %v1402_v8 = vpack.c.bf16 %v5336_v4, %v5334_v1 }
 0x3f0   :  { %v1401_v11 = vpack.c.bf16 %v5338_v6, %v5332_v0  ;;  %v5340_v12 = vpop.eup %5339 }
 0x3f1   :  { %v5342_v13 = vpop.eup %5341  ;;  %v1353_v14 = vadd.f32 1.0, %v5340_v12 }
 0x3f2   :  { %v5344_v15 = vpop.eup %5343  ;;  %v1356_v16 = vadd.f32 1.0, %v5342_v13 }
 0x3f3   :  { %v5346_v17 = vpop.eup %5345  ;;  %5355 = vrcp.f32 %v1353_v14  ;;  %v1354_v19 = vadd.f32 1.0, %v5344_v15 }
 0x3f4   :  { %5357 = vrcp.f32 %v1356_v16 }
 0x3f5   :  { %v5348_v20 = vpop.eup %5347  ;;  %5359 = vrcp.f32 %v1354_v19 }
 0x3f6   :  { %v5350_v21 = vpop.eup %5349 }
 0x3f7   :  { %v5352_v22 = vpop.eup %5351  ;;  %v1404_v23 = vpack.c.bf16 %v5350_v21, %v5346_v17 }
 0x3f8   :  { %v1403_v24 = vpack.c.bf16 %v5352_v22, %v5348_v20  ;;  %v5354_v25 = vpop.eup %5353 }
 0x3fd   :  { %v5356_v27 = vpop.eup %5355 }
 0x3fe   :  { %v5358_v29 = vpop.eup %5357 }
 0x3ff   :  { %v5360_v31 = vpop.eup %5359  ;;  %v1406_v32 = vpack.c.bf16 %v5358_v29, %v5354_v25  ;;  %v5101_v25 = vld [vmem:[%s9274_s11] ss:$8 sps:$4 sm:$0xff]   ;;  %v5107_v29 = vld [vmem:[%s9274_s11 + $0x14] ss:$8 sps:$4 sm:$0xff]  }
 0x400   :  { %v1405_v35 = vpack.c.bf16 %v5360_v31, %v5356_v27  ;;  %v5104_v27 = vld [vmem:[%s9274_s11 + $0xf0] ss:$8 sps:$4 sm:$0xff]   ;;  %v5109_v31 = vld [vmem:[%s9274_s11 + $0x104] ss:$8 sps:$4 sm:$0xff]  }
 0x44b   :  { %v1083_v36 = vpop.xlane.xlu0 %1082 }
 0x44c   :  { %v1091_v37 = vadd.f32 1e-12, %v1083_v36  ;;  %v5113_v36 = vld [vmem:[%s9274_s11 + $0x24] ss:$8 sps:$4 sm:$0xff]  }
 0x44d   :  { %v1086_v38 = vpop.xlane.xlu1 %1085 }
 0x44e   :  { %5361 = vrsqrt.f32 %v1091_v37  ;;  %v1092_v39 = vadd.f32 1e-12, %v1086_v38  ;;  %v5115_v37 = vld [vmem:[%s9274_s11 + $0x114] ss:$8 sps:$4 sm:$0xff]   ;;  %v5117_v38 = vld [vmem:[%s9274_s11 + $0x20] ss:$8 sps:$4 sm:$0xff]  }
 0x44f   :  { %v1090_v40 = vpop.xlane.xlu0 %1089 }
 0x450   :  { %5363 = vrsqrt.f32 %v1092_v39  ;;  %v1093_v41 = vadd.f32 1e-12, %v1090_v40  ;;  %v5118_v39 = vld [vmem:[%s9274_s11 + $0x110] ss:$8 sps:$4 sm:$0xff]   ;;  %v5119_v40 = vld [vmem:[%s9274_s11 + $0x34] ss:$8 sps:$4 sm:$0xff]  }
 0x452   :  { %5365 = vrsqrt.f32 %v1093_v41  ;;  %v5121_v41 = vld [vmem:[%s9274_s11 + $0x124] ss:$8 sps:$4 sm:$0xff]  }
 0x458   :  { %v5362_v42 = vpop.eup %5361 }
 0x459   :  { %v1097_v44 = vmul.f32 %v5362_v42, %v5816_v28  ;;  %v5106_v28 = vld [vmem:[%s9274_s11 + $0xf4] ss:$8 sps:$4 sm:$0xff]   ;;  %v5123_v42 = vld [vmem:[%s9274_s11 + $0x30] ss:$8 sps:$4 sm:$0xff]  }
 0x45a   :  { %v5364_v43 = vpop.eup %5363 }
 0x45b   :  { %v1098_v45 = vmul.f32 %v5364_v43, %v5820_v33  ;;  %v5124_v43 = vld [vmem:[%s9274_s11 + $0x120] ss:$8 sps:$4 sm:$0xff]  }
 0x45c   :  { %v5366_v46 = vpop.eup %5365 }
 0x45d   :  { %v1099_v47 = vmul.f32 %v5366_v46, %v5814_v26  ;;  %v1100_v49 = vpack.c.bf16 %v1098_v45, %v1097_v44  ;;  %v5103_v26 = vld [vmem:[%s9274_s11 + $0x4] ss:$8 sps:$4 sm:$0xff]   ;;  %v5127_v45 = vld [vmem:[%s9274_s11 + $0x134] ss:$8 sps:$4 sm:$0xff]   ;;  %v5129_v46 = vld [vmem:[%s9274_s11 + $0x40] ss:$8 sps:$4 sm:$0xff]  }
 0x45e   :  { %4671 = vmatprep.mubr.msk.bf16.mxu1 %vm539_vm3, %v5103_v26  ;;  %v5125_v44 = vld [vmem:[%s9274_s11 + $0x44] ss:$8 sps:$4 sm:$0xff]   ;;  %v5136_v26 = vld [vmem:[%s9274_s11 + $0x140] ss:$8 sps:$4 sm:$0xff]  }
 0x45f   :  { %4987 = vmatprep.mubr.msk.bf16.mxu0 %vm539_vm3, %v1100_v49  ;;  %v1101_v51 = vpack.c.bf16 %v1099_v47, %v1099_v47  ;;  %v5130_v47 = vld [vmem:[%s9274_s11 + $0x130] ss:$8 sps:$4 sm:$0xff]   ;;  %v5131_v49 = vld [vmem:[%s9274_s11 + $0x54] ss:$8 sps:$4 sm:$0xff]  }
 0x461   :  { %4988 = vmatmul.mubr.msk.bf16.vlgmr.msra.gmra.mrb[32].mxu0 %vm539_vm3, %v1101_v51  ;;  %v5133_v51 = vld [vmem:[%s9274_s11 + $0x144] ss:$8 sps:$4 sm:$0xff]  }
 0x462   :  { %4992 = vmatpush3.bf16.msra.mxu0 %v1441_v53  ;;  %4993 = vmatprep.mubr.msk.bf16.mxu0 %vm1408_vm6, %v1397_v30  ;;  %v5135_v53 = vld [vmem:[%s9274_s11 + $0x50] ss:$8 sps:$4 sm:$0xff]  }
 0x463   :  { %2169 = vmatprep.subr.bf16.mxu0 %v9285_v3 }
 0x469   :  { %4994 = vmatmul.mubr.msk.bf16.vlgmr.msra.gmra.mrb[36].mxu0 %vm1408_vm6, %v1398_v34 }
 0x46a   :  { %4997 = vmatprep.mubr.msk.bf16.mxu0 %vm1408_vm6, %v1399_v57 }
 0x471   :  { %4998 = vmatmul.mubr.msk.bf16.gmra.mrb[40].mxu0 %vm1408_vm6, %v1400_v55 }
 0x472   :  { %5001 = vmatprep.mubr.msk.bf16.mxu0 %vm1408_vm6, %v1401_v11 }
 0x479   :  { %5002 = vmatmul.mubr.msk.bf16.gmra.mrb[44].mxu0 %vm1408_vm6, %v1402_v8 }
 0x47a   :  { %5005 = vmatprep.mubr.msk.bf16.mxu0 %vm1408_vm6, %v1403_v24 }
 0x481   :  { %5006 = vmatmul.mubr.msk.bf16.gmra.mrb[48].mxu0 %vm1408_vm6, %v1404_v23 }
 0x482   :  { %5009 = vmatprep.mubr.msk.bf16.mxu0 %vm1408_vm6, %v1405_v35  ;;  %v5112_v35 = vld [vmem:[%s9274_s11 + $0x100] ss:$8 sps:$4 sm:$0xff]  }
 0x489   :  { %5010 = vmatmul.mubr.msk.bf16.gmra.mrb[52].mxu0 %vm1408_vm6, %v1406_v32  ;;  %v5111_v32 = vld [vmem:[%s9274_s11 + $0x10] ss:$8 sps:$4 sm:$0xff]  }
 0x48a   :  { %4716 = vmatprep.mubr.msk.bf16.mxu0 %vm539_vm3, %v5106_v28  ;;  %v5137_v28 = vld [vmem:[%s9274_s11 + $0x64] ss:$8 sps:$4 sm:$0xff]  }
 0x534   :  { %v4989_v33 = vpop.f32.mrb[32].mxu0 }
 0x535   :  { %v1158_v2 = vpop.f32.mrb[33].mxu0  ;;  %v5895_v18 = vmul.f32 14.285714, %v4989_v33  ;;  %v5139_v33 = vld [vmem:[%s9274_s11 + $0x154] ss:$8 sps:$4 sm:$0xff]  }
 0x536   :  { %v5893_v5 = vmul.f32 14.285714, %v1158_v2  ;;  %v4990_v9 = vpop.f32.mrb[34].mxu0  ;;  %v5141_v2 = vld [vmem:[%s9274_s11 + $0x60] ss:$8 sps:$4 sm:$0xff]  }
 0x537   :  { %v1161_v10 = vpop.f32.mrb[35].mxu0  ;;  %v1183_v52 = vsel %vm1182_vm8, %v5895_v18, -inf  ;;  %v5142_v9 = vld [vmem:[%s9274_s11 + $0x150] ss:$8 sps:$4 sm:$0xff]  }
 0x538   :  { %v5897_v30 = vmul.f32 14.285714, %v1161_v10  ;;  %v1176_v34 = vsel %vm1175_vm7, %v5893_v5, -inf  ;;  %v5143_v10 = vld [vmem:[%s9274_s11 + $0x74] ss:$8 sps:$4 sm:$0xff]  }
 0x539   :  { %1177 = vmax.xlane.f32.xlu0 %v1176_v34  ;;  %v5145_v34 = vld [vmem:[%s9274_s11 + $0x164] ss:$8 sps:$4 sm:$0xff]  }
 0x53a   :  { %v1179_v48 = vsel %vm1175_vm7, %v5897_v30, -inf }
 0x53b   :  { %1180 = vmax.xlane.f32.xlu1 %v1179_v48  ;;  %v5147_v48 = vld [vmem:[%s9274_s11 + $0x70] ss:$8 sps:$4 sm:$0xff]  }
 0x53c   :  { %v4995_v50 = vpop.f32.mrb[36].mxu0 }
 0x53d   :  { %1184 = vmax.xlane.f32.xlu0 %v1183_v52  ;;  %v1477_v54 = vpop.f32.mrb[37].mxu0  ;;  %v5149_v52 = vld [vmem:[%s9274_s11 + $0x84] ss:$8 sps:$4 sm:$0xff]  }
 0x53e   :  { %v4996_v55 = vpop.f32.mrb[38].mxu0 }
 0x53f   :  { %v5905_v56 = vpack.c.bf16 %v4996_v55, %v4995_v50  ;;  %v1480_v57 = vpop.f32.mrb[39].mxu0  ;;  %v5148_v50 = vld [vmem:[%s9274_s11 + $0x160] ss:$8 sps:$4 sm:$0xff]  }
 0x540   :  { %v5907_v58 = vpack.c.bf16 %v1480_v57, %v1477_v54  ;;  %v5151_v54 = vld [vmem:[%s9274_s11 + $0x174] ss:$8 sps:$4 sm:$0xff]   ;;  %v5153_v55 = vld [vmem:[%s9274_s11 + $0x80] ss:$8 sps:$4 sm:$0xff]   ;;  %v5154_v57 = vld [vmem:[%s9274_s11 + $0x170] ss:$8 sps:$4 sm:$0xff]  }
 0x542   :  { %1777 = vmatpush1.bf16.msra.mxu1 %v5907_v58  ;;  %2170 = vmatpush1.bf16.msra.mxu0 %v5907_v58 }
 0x543   :  { %1778 = vmatprep.subr.bf16.mxu1 %v9285_v3  ;;  %2171 = vmatprep.subr.bf16.mxu0 %v9285_v3 }
 0x544   :  { %v4999_v59 = vpop.f32.mrb[40].mxu0 }
 0x545   :  { %v1493_v60 = vpop.f32.mrb[41].mxu0 }
 0x546   :  { %v5000_v61 = vpop.f32.mrb[42].mxu0  ;;  %1779 = vmatpush1.bf16.msra.mxu1 %v5905_v56  ;;  %2172 = vmatpush1.bf16.msra.mxu0 %v5905_v56 }
 0x547   :  { %v5915_v62 = vpack.c.bf16 %v5000_v61, %v4999_v59  ;;  %v1496_v63 = vpop.f32.mrb[43].mxu0  ;;  %1780 = vmatprep.subr.bf16.mxu1 %v9285_v3  ;;  %2173 = vmatprep.subr.bf16.mxu0 %v9285_v3  ;;  %v5155_v59 = vld [vmem:[%s9274_s11 + $0x94] ss:$8 sps:$4 sm:$0xff]   ;;  %v5159_v61 = vld [vmem:[%s9274_s11 + $0x90] ss:$8 sps:$4 sm:$0xff]  }
 0x548   :  { %v5919_v0 = vpack.c.bf16 %v1496_v63, %v1493_v60  ;;  %v5157_v60 = vld [vmem:[%s9274_s11 + $0x184] ss:$8 sps:$4 sm:$0xff]   ;;  %v5160_v63 = vld [vmem:[%s9274_s11 + $0x180] ss:$8 sps:$4 sm:$0xff]  }
 0x54a   :  { %1781 = vmatpush1.bf16.msra.mxu1 %v5919_v0  ;;  %2174 = vmatpush1.bf16.msra.mxu0 %v5919_v0 }
 0x54b   :  { %1782 = vmatprep.subr.bf16.mxu1 %v9285_v3  ;;  %2175 = vmatprep.subr.bf16.mxu0 %v9285_v3 }
 0x54c   :  { %v5003_v1 = vpop.f32.mrb[44].mxu0 }
 0x54d   :  { %v1509_v4 = vpop.f32.mrb[45].mxu0 }
 0x54e   :  { %v5004_v6 = vpop.f32.mrb[46].mxu0  ;;  %1783 = vmatpush1.bf16.msra.mxu1 %v5915_v62  ;;  %2176 = vmatpush1.bf16.msra.mxu0 %v5915_v62 }
 0x54f   :  { %v5927_v7 = vpack.c.bf16 %v5004_v6, %v5003_v1  ;;  %v1512_v8 = vpop.f32.mrb[47].mxu0  ;;  %1784 = vmatprep.subr.bf16.mxu1 %v9285_v3  ;;  %2177 = vmatprep.subr.bf16.mxu0 %v9285_v3  ;;  %v5161_v1 = vld [vmem:[%s9274_s11 + $0xa4] ss:$8 sps:$4 sm:$0xff]   ;;  %v5165_v6 = vld [vmem:[%s9274_s11 + $0xa0] ss:$8 sps:$4 sm:$0xff]  }
 0x550   :  { %v5931_v11 = vpack.c.bf16 %v1512_v8, %v1509_v4  ;;  %v5163_v4 = vld [vmem:[%s9274_s11 + $0x194] ss:$8 sps:$4 sm:$0xff]   ;;  %v5166_v8 = vld [vmem:[%s9274_s11 + $0x190] ss:$8 sps:$4 sm:$0xff]  }
 0x552   :  { %1785 = vmatpush1.bf16.msra.mxu1 %v5931_v11  ;;  %2178 = vmatpush1.bf16.msra.mxu0 %v5931_v11 }
 0x553   :  { %1786 = vmatprep.subr.bf16.mxu1 %v9285_v3  ;;  %2179 = vmatprep.subr.bf16.mxu0 %v9285_v3 }
 0x554   :  { %v5007_v12 = vpop.f32.mrb[48].mxu0 }
 0x555   :  { %v1525_v13 = vpop.f32.mrb[49].mxu0 }
 0x556   :  { %v5008_v14 = vpop.f32.mrb[50].mxu0  ;;  %1787 = vmatpush1.bf16.msra.mxu1 %v5927_v7  ;;  %2180 = vmatpush1.bf16.msra.mxu0 %v5927_v7 }
 0x557   :  { %v5939_v15 = vpack.c.bf16 %v5008_v14, %v5007_v12  ;;  %v1528_v16 = vpop.f32.mrb[51].mxu0  ;;  %1788 = vmatprep.subr.bf16.mxu1 %v9285_v3  ;;  %2181 = vmatprep.subr.bf16.mxu0 %v9285_v3  ;;  %v5167_v12 = vld [vmem:[%s9274_s11 + $0xb4] ss:$8 sps:$4 sm:$0xff]   ;;  %v5171_v14 = vld [vmem:[%s9274_s11 + $0xb0] ss:$8 sps:$4 sm:$0xff]  }
 0x558   :  { %v5943_v17 = vpack.c.bf16 %v1528_v16, %v1525_v13  ;;  %v5169_v13 = vld [vmem:[%s9274_s11 + $0x1a4] ss:$8 sps:$4 sm:$0xff]   ;;  %v5172_v16 = vld [vmem:[%s9274_s11 + $0x1a0] ss:$8 sps:$4 sm:$0xff]  }
 0x55a   :  { %1789 = vmatpush1.bf16.msra.mxu1 %v5943_v17  ;;  %2182 = vmatpush1.bf16.msra.mxu0 %v5943_v17 }
 0x55b   :  { %1790 = vmatprep.subr.bf16.mxu1 %v9285_v3  ;;  %2183 = vmatprep.subr.bf16.mxu0 %v9285_v3 }
 0x55c   :  { %v5011_v19 = vpop.f32.mrb[52].mxu0 }
 0x55d   :  { %v1541_v20 = vpop.f32.mrb[53].mxu0 }
 0x55e   :  { %v5012_v21 = vpop.f32.mrb[54].mxu0  ;;  %1791 = vmatpush1.bf16.msra.mxu1 %v5939_v15  ;;  %2184 = vmatpush1.bf16.msra.mxu0 %v5939_v15 }
 0x55f   :  { %v5951_v22 = vpack.c.bf16 %v5012_v21, %v5011_v19  ;;  %v1544_v23 = vpop.f32.mrb[55].mxu0  ;;  %1792 = vmatprep.subr.bf16.mxu1 %v9285_v3  ;;  %2185 = vmatprep.subr.bf16.mxu0 %v9285_v3  ;;  %v5173_v19 = vld [vmem:[%s9274_s11 + $0xc4] ss:$8 sps:$4 sm:$0xff]   ;;  %v5177_v21 = vld [vmem:[%s9274_s11 + $0xc0] ss:$8 sps:$4 sm:$0xff]  }
 0x560   :  { %v5955_v24 = vpack.c.bf16 %v1544_v23, %v1541_v20  ;;  %v5175_v20 = vld [vmem:[%s9274_s11 + $0x1b4] ss:$8 sps:$4 sm:$0xff]   ;;  %v5178_v23 = vld [vmem:[%s9274_s11 + $0x1b0] ss:$8 sps:$4 sm:$0xff]  }
 0x562   :  { %1793 = vmatpush1.bf16.msra.mxu1 %v5955_v24  ;;  %2186 = vmatpush1.bf16.msra.mxu0 %v5955_v24 }
 0x563   :  { %1794 = vmatprep.subr.bf16.mxu1 %v9285_v3  ;;  %2187 = vmatprep.subr.bf16.mxu0 %v9285_v3 }
 0x566   :  { %1795 = vmatpush1.bf16.msra.mxu1 %v5951_v22  ;;  %2188 = vmatpush1.bf16.msra.mxu0 %v5951_v22 }
 0x567   :  { %2562 = vmatprep.subr.bf16.mxu1 %v9285_v3  ;;  %2955 = vmatprep.subr.bf16.mxu0 %v9285_v3 }
 0x569   :  { %1809 = vmatmul.mubr.bf16.vlgmr.msra.gmra.mrb[52].mxu1 %v5101_v25  ;;  %2202 = vmatmul.mubr.bf16.vlgmr.msra.gmra.mrb[56].mxu0 %v5104_v27  ;;  %v5179_v27 = vld [vmem:[%s9274_s11 + $0xd4] ss:$8 sps:$4 sm:$0xff]  }
 0x56a   :  { %4672 = vmatprep.mubr.msk.bf16.mxu1 %vm539_vm3, %v5107_v29  ;;  %4717 = vmatprep.mubr.msk.bf16.mxu0 %vm539_vm3, %v5109_v31  ;;  %v5181_v29 = vld [vmem:[%s9274_s11 + $0x1c4] ss:$8 sps:$4 sm:$0xff]  }
 0x56b   :  { %2563 = vmatpush1.bf16.msra.mxu1 %v5907_v58  ;;  %2956 = vmatpush1.bf16.msra.mxu0 %v5907_v58 }
 0x56c   :  { %2564 = vmatprep.subr.bf16.mxu1 %v9285_v3  ;;  %2957 = vmatprep.subr.bf16.mxu0 %v9285_v3 }
 0x56f   :  { %2565 = vmatpush1.bf16.msra.mxu1 %v5905_v56  ;;  %2958 = vmatpush1.bf16.msra.mxu0 %v5905_v56 }
 0x570   :  { %2566 = vmatprep.subr.bf16.mxu1 %v9285_v3  ;;  %2959 = vmatprep.subr.bf16.mxu0 %v9285_v3 }
 0x571   :  { %1817 = vmatmul.mubr.bf16.gmra.mrb[56].mxu1 %v5111_v32  ;;  %2210 = vmatmul.mubr.bf16.gmra.mrb[60].mxu0 %v5112_v35 }
 0x572   :  { %4673 = vmatprep.mubr.msk.bf16.mxu1 %vm539_vm3, %v5113_v36  ;;  %4718 = vmatprep.mubr.msk.bf16.mxu0 %vm539_vm3, %v5115_v37 }
 0x573   :  { %2567 = vmatpush1.bf16.msra.mxu1 %v5919_v0  ;;  %2960 = vmatpush1.bf16.msra.mxu0 %v5919_v0 }
 0x574   :  { %2568 = vmatprep.subr.bf16.mxu1 %v9285_v3  ;;  %2961 = vmatprep.subr.bf16.mxu0 %v9285_v3 }
 0x577   :  { %2569 = vmatpush1.bf16.msra.mxu1 %v5915_v62  ;;  %2962 = vmatpush1.bf16.msra.mxu0 %v5915_v62 }
 0x578   :  { %2570 = vmatprep.subr.bf16.mxu1 %v9285_v3  ;;  %2963 = vmatprep.subr.bf16.mxu0 %v9285_v3 }
 0x579   :  { %1825 = vmatmul.mubr.bf16.gmra.mrb[60].mxu1 %v5117_v38  ;;  %2218 = vmatmul.mubr.bf16.gmra.mrb[64].mxu0 %v5118_v39 }
 0x57a   :  { %4674 = vmatprep.mubr.msk.bf16.mxu1 %vm539_vm3, %v5119_v40  ;;  %4719 = vmatprep.mubr.msk.bf16.mxu0 %vm539_vm3, %v5121_v41  ;;  %v5185_v41 = vld [vmem:[%s9274_s11 + $0xe4] ss:$8 sps:$4 sm:$0xff]  }
 0x57b   :  { %2571 = vmatpush1.bf16.msra.mxu1 %v5931_v11  ;;  %2964 = vmatpush1.bf16.msra.mxu0 %v5931_v11 }
 0x57c   :  { %2572 = vmatprep.subr.bf16.mxu1 %v9285_v3  ;;  %2965 = vmatprep.subr.bf16.mxu0 %v9285_v3 }
 0x57f   :  { %2573 = vmatpush1.bf16.msra.mxu1 %v5927_v7  ;;  %2966 = vmatpush1.bf16.msra.mxu0 %v5927_v7 }
 0x580   :  { %2574 = vmatprep.subr.bf16.mxu1 %v9285_v3  ;;  %2967 = vmatprep.subr.bf16.mxu0 %v9285_v3 }
 0x581   :  { %1833 = vmatmul.mubr.bf16.gmra.mrb[64].mxu1 %v5123_v42  ;;  %2226 = vmatmul.mubr.bf16.gmra.mrb[68].mxu0 %v5124_v43  ;;  %v5187_v42 = vld [vmem:[%s9274_s11 + $0x1d4] ss:$8 sps:$4 sm:$0xff]   ;;  %v5189_v43 = vld [vmem:[%s9274_s11 + $0xe0] ss:$8 sps:$4 sm:$0xff]  }
 0x582   :  { %4675 = vmatprep.mubr.msk.bf16.mxu1 %vm539_vm3, %v5125_v44  ;;  %4720 = vmatprep.mubr.msk.bf16.mxu0 %vm539_vm3, %v5127_v45  ;;  %v5190_v44 = vld [vmem:[%s9274_s11 + $0x1d0] ss:$8 sps:$4 sm:$0xff]  }
 0x583   :  { %2575 = vmatpush1.bf16.msra.mxu1 %v5943_v17  ;;  %2968 = vmatpush1.bf16.msra.mxu0 %v5943_v17 }
 0x584   :  { %2576 = vmatprep.subr.bf16.mxu1 %v9285_v3  ;;  %2969 = vmatprep.subr.bf16.mxu0 %v9285_v3 }
 0x587   :  { %2577 = vmatpush1.bf16.msra.mxu1 %v5939_v15  ;;  %2970 = vmatpush1.bf16.msra.mxu0 %v5939_v15 }
 0x588   :  { %2578 = vmatprep.subr.bf16.mxu1 %v9285_v3  ;;  %2971 = vmatprep.subr.bf16.mxu0 %v9285_v3 }
 0x589   :  { %1841 = vmatmul.mubr.bf16.gmra.mrb[68].mxu1 %v5129_v46  ;;  %2234 = vmatmul.mubr.bf16.gmra.mrb[72].mxu0 %v5130_v47  ;;  %v5193_v46 = vld [vmem:[%s9274_s11 + $0x1e4] ss:$8 sps:$4 sm:$0xff]  }
 0x58a   :  { %4676 = vmatprep.mubr.msk.bf16.mxu1 %vm539_vm3, %v5131_v49  ;;  %4721 = vmatprep.mubr.msk.bf16.mxu0 %vm539_vm3, %v5133_v51  ;;  %v5196_v49 = vld [vmem:[%s9274_s11 + $0x2d4] ss:$8 sps:$4 sm:$0xff]  }
 0x58b   :  { %2579 = vmatpush1.bf16.msra.mxu1 %v5955_v24  ;;  %2972 = vmatpush1.bf16.msra.mxu0 %v5955_v24 }
 0x58c   :  { %2580 = vmatprep.subr.bf16.mxu1 %v9285_v3  ;;  %2973 = vmatprep.subr.bf16.mxu0 %v9285_v3 }
 0x58f   :  { %2581 = vmatpush1.bf16.msra.mxu1 %v5951_v22  ;;  %2974 = vmatpush1.bf16.msra.mxu0 %v5951_v22 }
 0x590   :  { %5013 = vmatprep.subr.bf16.mxu1 %v9285_v3 }
 0x591   :  { %1849 = vmatmul.mubr.bf16.gmra.mrb[72].mxu1 %v5135_v53  ;;  %2242 = vmatmul.mubr.bf16.gmra.mrb[76].mxu0 %v5136_v26 }
 0x592   :  { %4677 = vmatprep.mubr.msk.bf16.mxu1 %vm539_vm3, %v5137_v28  ;;  %4722 = vmatprep.mubr.msk.bf16.mxu0 %vm539_vm3, %v5139_v33  ;;  %v5191_v28 = vld [vmem:[%s9274_s11 + $0x1e0] ss:$8 sps:$4 sm:$0xff]   ;;  %v5194_v33 = vld [vmem:[%s9274_s11 + $0x2d0] ss:$8 sps:$4 sm:$0xff]  }
 0x599   :  { %1857 = vmatmul.mubr.bf16.gmra.mrb[76].mxu1 %v5141_v2  ;;  %2250 = vmatmul.mubr.bf16.gmra.mrb[80].mxu0 %v5142_v9  ;;  %v5197_v2 = vld [vmem:[%s9274_s11 + $0x1f4] ss:$8 sps:$4 sm:$0xff]   ;;  %v5199_v9 = vld [vmem:[%s9274_s11 + $0x2e4] ss:$8 sps:$4 sm:$0xff]  }
 0x59a   :  { %4678 = vmatprep.mubr.msk.bf16.mxu1 %vm539_vm3, %v5143_v10  ;;  %4723 = vmatprep.mubr.msk.bf16.mxu0 %vm539_vm3, %v5145_v34  ;;  %v5201_v10 = vld [vmem:[%s9274_s11 + $0x1f0] ss:$8 sps:$4 sm:$0xff]   ;;  %v5202_v34 = vld [vmem:[%s9274_s11 + $0x2e0] ss:$8 sps:$4 sm:$0xff]  }
 0x5a1   :  { %1865 = vmatmul.mubr.bf16.gmra.mrb[80].mxu1 %v5147_v48  ;;  %2258 = vmatmul.mubr.bf16.gmra.mrb[84].mxu0 %v5148_v50  ;;  %v5203_v48 = vld [vmem:[%s9274_s11 + $0x204] ss:$8 sps:$4 sm:$0xff]   ;;  %v5205_v50 = vld [vmem:[%s9274_s11 + $0x2f4] ss:$8 sps:$4 sm:$0xff]  }
 0x5a2   :  { %4679 = vmatprep.mubr.msk.bf16.mxu1 %vm539_vm3, %v5149_v52  ;;  %4724 = vmatprep.mubr.msk.bf16.mxu0 %vm539_vm3, %v5151_v54  ;;  %v5209_v52 = vld [vmem:[%s9274_s11 + $0x214] ss:$8 sps:$4 sm:$0xff]   ;;  %v5211_v54 = vld [vmem:[%s9274_s11 + $0x304] ss:$8 sps:$4 sm:$0xff]  }
 0x5a9   :  { %1873 = vmatmul.mubr.bf16.gmra.mrb[84].mxu1 %v5153_v55  ;;  %2266 = vmatmul.mubr.bf16.gmra.mrb[88].mxu0 %v5154_v57  ;;  %v5215_v55 = vld [vmem:[%s9274_s11 + $0x224] ss:$8 sps:$4 sm:$0xff]   ;;  %v5217_v57 = vld [vmem:[%s9274_s11 + $0x314] ss:$8 sps:$4 sm:$0xff]  }
 0x5aa   :  { %4680 = vmatprep.mubr.msk.bf16.mxu1 %vm539_vm3, %v5155_v59  ;;  %4725 = vmatprep.mubr.msk.bf16.mxu0 %vm539_vm3, %v5157_v60  ;;  %v5221_v59 = vld [vmem:[%s9274_s11 + $0x234] ss:$8 sps:$4 sm:$0xff]   ;;  %v5223_v60 = vld [vmem:[%s9274_s11 + $0x324] ss:$8 sps:$4 sm:$0xff]  }
 0x5b1   :  { %1881 = vmatmul.mubr.bf16.gmra.mrb[88].mxu1 %v5159_v61  ;;  %2274 = vmatmul.mubr.bf16.gmra.mrb[92].mxu0 %v5160_v63  ;;  %v5227_v61 = vld [vmem:[%s9274_s11 + $0x244] ss:$8 sps:$4 sm:$0xff]   ;;  %v5229_v63 = vld [vmem:[%s9274_s11 + $0x334] ss:$8 sps:$4 sm:$0xff]  }
 0x5b2   :  { %4681 = vmatprep.mubr.msk.bf16.mxu1 %vm539_vm3, %v5161_v1  ;;  %4726 = vmatprep.mubr.msk.bf16.mxu0 %vm539_vm3, %v5163_v4  ;;  %v5232_v1 = vld [vmem:[%s9274_s11 + $0x330] ss:$8 sps:$4 sm:$0xff]   ;;  %v5233_v4 = vld [vmem:[%s9274_s11 + $0x254] ss:$8 sps:$4 sm:$0xff]  }
 0x5b9   :  { %1889 = vmatmul.mubr.bf16.gmra.mrb[92].mxu1 %v5165_v6  ;;  %2282 = vmatmul.mubr.bf16.gmra.mrb[96].mxu0 %v5166_v8  ;;  %v5237_v6 = vld [vmem:[%s9274_s11 + $0x250] ss:$8 sps:$4 sm:$0xff]   ;;  %v5238_v8 = vld [vmem:[%s9274_s11 + $0x340] ss:$8 sps:$4 sm:$0xff]  }
 0x5ba   :  { %4682 = vmatprep.mubr.msk.bf16.mxu1 %vm539_vm3, %v5167_v12  ;;  %4727 = vmatprep.mubr.msk.bf16.mxu0 %vm539_vm3, %v5169_v13  ;;  %v5239_v12 = vld [vmem:[%s9274_s11 + $0x264] ss:$8 sps:$4 sm:$0xff]   ;;  %v5241_v13 = vld [vmem:[%s9274_s11 + $0x354] ss:$8 sps:$4 sm:$0xff]  }
 0x5c1   :  { %1897 = vmatmul.mubr.bf16.gmra.mrb[96].mxu1 %v5171_v14  ;;  %2290 = vmatmul.mubr.bf16.gmra.mrb[100].mxu0 %v5172_v16  ;;  %v5243_v14 = vld [vmem:[%s9274_s11 + $0x260] ss:$8 sps:$4 sm:$0xff]   ;;  %v5244_v16 = vld [vmem:[%s9274_s11 + $0x350] ss:$8 sps:$4 sm:$0xff]  }
 0x5c2   :  { %4683 = vmatprep.mubr.msk.bf16.mxu1 %vm539_vm3, %v5173_v19  ;;  %4728 = vmatprep.mubr.msk.bf16.mxu0 %vm539_vm3, %v5175_v20  ;;  %v5245_v19 = vld [vmem:[%s9274_s11 + $0x274] ss:$8 sps:$4 sm:$0xff]   ;;  %v5247_v20 = vld [vmem:[%s9274_s11 + $0x364] ss:$8 sps:$4 sm:$0xff]  }
 0x5c6   :  { %v1178_v25 = vpop.xlane.xlu0 %1177 }
 0x5c7   :  { %v1186_v31 = vsub.f32 %v5893_v5, %v1178_v25  ;;  %v5183_v5 = vld [vmem:[%s9274_s11 + $0xd0] ss:$8 sps:$4 sm:$0xff]   ;;  %v5251_v25 = vld [vmem:[%s9274_s11 + $0x284] ss:$8 sps:$4 sm:$0xff]  }
 0x5c8   :  { %v1181_v32 = vpop.xlane.xlu1 %1180 }
 0x5c9   :  { %v1189_v35 = vmul.f32 1.442695, %v1186_v31  ;;  %v1187_v36 = vsub.f32 %v5897_v30, %v1181_v32  ;;  %1905 = vmatmul.mubr.bf16.gmra.mrb[100].mxu1 %v5177_v21  ;;  %2298 = vmatmul.mubr.bf16.gmra.mrb[104].mxu0 %v5178_v23  ;;  %v5184_v30 = vld [vmem:[%s9274_s11 + $0x1c0] ss:$8 sps:$4 sm:$0xff]   ;;  %v5249_v21 = vld [vmem:[%s9274_s11 + $0x270] ss:$8 sps:$4 sm:$0xff]  }
 0x5ca   :  { %v1185_v37 = vpop.xlane.xlu0 %1184  ;;  %4684 = vmatprep.mubr.msk.bf16.mxu1 %vm539_vm3, %v5179_v27  ;;  %4729 = vmatprep.mubr.msk.bf16.mxu0 %vm539_vm3, %v5181_v29  ;;  %v5250_v23 = vld [vmem:[%s9274_s11 + $0x360] ss:$8 sps:$4 sm:$0xff]   ;;  %v5253_v27 = vld [vmem:[%s9274_s11 + $0x374] ss:$8 sps:$4 sm:$0xff]   ;;  %v5256_v31 = vld [vmem:[%s9274_s11 + $0x370] ss:$8 sps:$4 sm:$0xff]  }
 0x5cb   :  { %5367 = vpow2.f32 %v1189_v35  ;;  %v1191_v38 = vmul.f32 1.442695, %v1187_v36  ;;  %v1188_v39 = vsub.f32 %v5895_v18, %v1185_v37  ;;  %v5255_v29 = vld [vmem:[%s9274_s11 + $0x280] ss:$8 sps:$4 sm:$0xff]   ;;  %v5257_v32 = vld [vmem:[%s9274_s11 + $0x294] ss:$8 sps:$4 sm:$0xff]  }
 0x5cc   :  { %v5259_v35 = vld [vmem:[%s9274_s11 + $0x384] ss:$8 sps:$4 sm:$0xff]   ;;  %v5261_v36 = vld [vmem:[%s9274_s11 + $0x290] ss:$8 sps:$4 sm:$0xff]   ;;  %v5262_v37 = vld [vmem:[%s9274_s11 + $0x380] ss:$8 sps:$4 sm:$0xff]  }
 0x5cd   :  { %5369 = vpow2.f32 %v1191_v38  ;;  %v1193_v40 = vmul.f32 1.442695, %v1188_v39  ;;  %v5263_v38 = vld [vmem:[%s9274_s11 + $0x2a4] ss:$8 sps:$4 sm:$0xff]   ;;  %v5265_v39 = vld [vmem:[%s9274_s11 + $0x394] ss:$8 sps:$4 sm:$0xff]  }
 0x5cf   :  { %5371 = vpow2.f32 %v1193_v40 }
 0x5d1   :  { %1913 = vmatmul.mubr.bf16.gmra.mrb[104].mxu1 %v5183_v5  ;;  %2306 = vmatmul.mubr.bf16.gmra.mrb[108].mxu0 %v5184_v30  ;;  %v5267_v30 = vld [vmem:[%s9274_s11 + $0x2a0] ss:$8 sps:$4 sm:$0xff]  }
 0x5d2   :  { %4685 = vmatprep.mubr.msk.bf16.mxu1 %vm539_vm3, %v5185_v41  ;;  %4730 = vmatprep.mubr.msk.bf16.mxu0 %vm539_vm3, %v5187_v42  ;;  %v5268_v41 = vld [vmem:[%s9274_s11 + $0x390] ss:$8 sps:$4 sm:$0xff]  }
 0x5d5   :  { %v6203_v18 = vpop.eup %5367 }
 0x5d6   :  { %v1195_v45 = vsel %vm1175_vm7, %v6203_v18, 0.0 }
 0x5d7   :  { %v6216_v47 = vpop.eup %5369  ;;  %1196 = vadd.xlane.f32.xlu1 %v1195_v45 }
 0x5d8   :  { %v1198_v51 = vsel %vm1175_vm7, %v6216_v47, 0.0 }
 0x5d9   :  { %v6223_v53 = vpop.eup %5371  ;;  %1921 = vmatmul.mubr.bf16.gmra.mrb[108].mxu1 %v5189_v43  ;;  %2314 = vmatmul.mubr.bf16.gmra.mrb[112].mxu0 %v5190_v44  ;;  %v5269_v44 = vld [vmem:[%s9274_s11 + $0x2b4] ss:$8 sps:$4 sm:$0xff]  }
 0x5da   :  { %1199 = vadd.xlane.f32.xlu0 %v1198_v51  ;;  %v1201_v26 = vsel %vm1182_vm8, %v6223_v53, 0.0  ;;  %4761 = vmatprep.mubr.msk.bf16.mxu1 %vm539_vm3, %v5193_v46 }
 0x5db   :  { %1202 = vadd.xlane.f32.xlu1 %v1201_v26  ;;  %4806 = vmatprep.mubr.msk.bf16.mxu0 %vm539_vm3, %v5196_v49 }
 0x5e1   :  { %2595 = vmatmul.mubr.bf16.vlgmr.msra.gmra.mrb[112].mxu1 %v5191_v28  ;;  %2988 = vmatmul.mubr.bf16.vlgmr.msra.gmra.mrb[116].mxu0 %v5194_v33  ;;  %v5271_v33 = vld [vmem:[%s9274_s11 + $0x2b0] ss:$8 sps:$4 sm:$0xff]  }
 0x5e2   :  { %4762 = vmatprep.mubr.msk.bf16.mxu1 %vm539_vm3, %v5197_v2  ;;  %4807 = vmatprep.mubr.msk.bf16.mxu0 %vm539_vm3, %v5199_v9 }
 0x5e3   :  { %5023 = vmatpush1.bf16.msra.mxu1 %v5907_v58  ;;  %v5207_v58 = vld [vmem:[%s9274_s11 + $0x200] ss:$8 sps:$4 sm:$0xff]  }
 0x5e4   :  { %5014 = vmatprep.subr.bf16.mxu1 %v9285_v3 }
 0x5e7   :  { %5024 = vmatpush1.bf16.msra.mxu1 %v5905_v56  ;;  %v5208_v56 = vld [vmem:[%s9274_s11 + $0x2f0] ss:$8 sps:$4 sm:$0xff]  }
 0x5e8   :  { %5015 = vmatprep.subr.bf16.mxu1 %v9285_v3 }
 0x5e9   :  { %2603 = vmatmul.mubr.bf16.gmra.mrb[116].mxu1 %v5201_v10  ;;  %2996 = vmatmul.mubr.bf16.gmra.mrb[120].mxu0 %v5202_v34  ;;  %v5272_v10 = vld [vmem:[%s9274_s11 + $0x2c4] ss:$8 sps:$4 sm:$0xff]  }
 0x5ea   :  { %4763 = vmatprep.mubr.msk.bf16.mxu1 %vm539_vm3, %v5203_v48  ;;  %4808 = vmatprep.mubr.msk.bf16.mxu0 %vm539_vm3, %v5205_v50 }
 0x5eb   :  { %5025 = vmatpush1.bf16.msra.mxu1 %v5919_v0  ;;  %v5213_v0 = vld [vmem:[%s9274_s11 + $0x210] ss:$8 sps:$4 sm:$0xff]  }
 0x5ec   :  { %5016 = vmatprep.subr.bf16.mxu1 %v9285_v3 }
 0x5ef   :  { %5026 = vmatpush1.bf16.msra.mxu1 %v5915_v62  ;;  %v5214_v62 = vld [vmem:[%s9274_s11 + $0x300] ss:$8 sps:$4 sm:$0xff]  }
 0x5f0   :  { %5017 = vmatprep.subr.bf16.mxu1 %v9285_v3 }
 0x5f1   :  { %2611 = vmatmul.mubr.bf16.gmra.mrb[120].mxu1 %v5207_v58  ;;  %3004 = vmatmul.mubr.bf16.gmra.mrb[124].mxu0 %v5208_v56 }
 0x5f2   :  { %4764 = vmatprep.mubr.msk.bf16.mxu1 %vm539_vm3, %v5209_v52  ;;  %4809 = vmatprep.mubr.msk.bf16.mxu0 %vm539_vm3, %v5211_v54  ;;  %v5274_v54 = vld [vmem:[%s9274_s11 + $0x2c0] ss:$8 sps:$4 sm:$0xff]  }
 0x5f3   :  { %5027 = vmatpush1.bf16.msra.mxu1 %v5931_v11  ;;  %v5219_v11 = vld [vmem:[%s9274_s11 + $0x220] ss:$8 sps:$4 sm:$0xff]  }
 0x5f4   :  { %5018 = vmatprep.subr.bf16.mxu1 %v9285_v3 }
 0x5f7   :  { %5028 = vmatpush1.bf16.msra.mxu1 %v5927_v7  ;;  %v5220_v7 = vld [vmem:[%s9274_s11 + $0x310] ss:$8 sps:$4 sm:$0xff]  }
 0x5f8   :  { %5019 = vmatprep.subr.bf16.mxu1 %v9285_v3 }
 0x5f9   :  { %2619 = vmatmul.mubr.bf16.gmra.mrb[124].mxu1 %v5213_v0  ;;  %3012 = vmatmul.mubr.bf16.gmra.mrb[128].mxu0 %v5214_v62 }
 0x5fa   :  { %4765 = vmatprep.mubr.msk.bf16.mxu1 %vm539_vm3, %v5215_v55  ;;  %4810 = vmatprep.mubr.msk.bf16.mxu0 %vm539_vm3, %v5217_v57  ;;  %v5277_v55 = vld [vmem:[%s9274_s11 + $0x3a4] ss:$8 sps:$4 sm:$0xff]  }
 0x5fb   :  { %5029 = vmatpush1.bf16.msra.mxu1 %v5943_v17  ;;  %v5225_v17 = vld [vmem:[%s9274_s11 + $0x230] ss:$8 sps:$4 sm:$0xff]  }
 0x5fc   :  { %5020 = vmatprep.subr.bf16.mxu1 %v9285_v3 }
 0x5ff   :  { %5030 = vmatpush1.bf16.msra.mxu1 %v5939_v15  ;;  %v5226_v15 = vld [vmem:[%s9274_s11 + $0x320] ss:$8 sps:$4 sm:$0xff]  }
 0x600   :  { %5021 = vmatprep.subr.bf16.mxu1 %v9285_v3 }
 0x601   :  { %2627 = vmatmul.mubr.bf16.gmra.mrb[128].mxu1 %v5219_v11  ;;  %3020 = vmatmul.mubr.bf16.gmra.mrb[132].mxu0 %v5220_v7 }
 0x602   :  { %4766 = vmatprep.mubr.msk.bf16.mxu1 %vm539_vm3, %v5221_v59  ;;  %4811 = vmatprep.mubr.msk.bf16.mxu0 %vm539_vm3, %v5223_v60 }
 0x603   :  { %5031 = vmatpush1.bf16.msra.mxu1 %v5955_v24  ;;  %v5231_v24 = vld [vmem:[%s9274_s11 + $0x240] ss:$8 sps:$4 sm:$0xff]  }
 0x604   :  { %5022 = vmatprep.subr.bf16.mxu1 %v9285_v3 }
 0x607   :  { %5032 = vmatpush1.bf16.msra.mxu1 %v5951_v22  ;;  %v5235_v22 = vld [vmem:[%s9274_s11 + $0x344] ss:$8 sps:$4 sm:$0xff]  }
 0x609   :  { %2635 = vmatmul.mubr.bf16.gmra.mrb[132].mxu1 %v5225_v17  ;;  %3028 = vmatmul.mubr.bf16.gmra.mrb[136].mxu0 %v5226_v15  ;;  %v5275_v15 = vld [vmem:[%s9274_s11 + $0x3a0] ss:$8 sps:$4 sm:$0xff]  }
 0x60a   :  { %4767 = vmatprep.mubr.msk.bf16.mxu1 %vm539_vm3, %v5227_v61  ;;  %4812 = vmatprep.mubr.msk.bf16.mxu0 %vm539_vm3, %v5229_v63 }
 0x611   :  { %2643 = vmatmul.mubr.bf16.gmra.mrb[136].mxu1 %v5231_v24  ;;  %3036 = vmatmul.mubr.bf16.gmra.mrb[140].mxu0 %v5232_v1  ;;  %v5278_v24 = vld [vmem:[%s9274_s11 + $0x3b4] ss:$8 sps:$4 sm:$0xff]  }
 0x612   :  { %4768 = vmatprep.mubr.msk.bf16.mxu1 %vm539_vm3, %v5233_v4  ;;  %4813 = vmatprep.mubr.msk.bf16.mxu0 %vm539_vm3, %v5235_v22 }
 0x619   :  { %2651 = vmatmul.mubr.bf16.gmra.mrb[140].mxu1 %v5237_v6  ;;  %3044 = vmatmul.mubr.bf16.gmra.mrb[144].mxu0 %v5238_v8 }
 0x61a   :  { %4769 = vmatprep.mubr.msk.bf16.mxu1 %vm539_vm3, %v5239_v12  ;;  %4814 = vmatprep.mubr.msk.bf16.mxu0 %vm539_vm3, %v5241_v13  ;;  %v5280_v13 = vld [vmem:[%s9274_s11 + $0x3b0] ss:$8 sps:$4 sm:$0xff]  }
 0x621   :  { %2659 = vmatmul.mubr.bf16.gmra.mrb[144].mxu1 %v5243_v14  ;;  %3052 = vmatmul.mubr.bf16.gmra.mrb[148].mxu0 %v5244_v16 }
 0x622   :  { %4770 = vmatprep.mubr.msk.bf16.mxu1 %vm539_vm3, %v5245_v19  ;;  %4815 = vmatprep.mubr.msk.bf16.mxu0 %vm539_vm3, %v5247_v20 }
 0x629   :  { %2667 = vmatmul.mubr.bf16.gmra.mrb[148].mxu1 %v5249_v21  ;;  %3060 = vmatmul.mubr.bf16.gmra.mrb[152].mxu0 %v5250_v23 }
 0x62a   :  { %4771 = vmatprep.mubr.msk.bf16.mxu1 %vm539_vm3, %v5251_v25  ;;  %4816 = vmatprep.mubr.msk.bf16.mxu0 %vm539_vm3, %v5253_v27 }
 0x631   :  { %2675 = vmatmul.mubr.bf16.gmra.mrb[152].mxu1 %v5255_v29  ;;  %3068 = vmatmul.mubr.bf16.gmra.mrb[156].mxu0 %v5256_v31 }
 0x632   :  { %4772 = vmatprep.mubr.msk.bf16.mxu1 %vm539_vm3, %v5257_v32  ;;  %4817 = vmatprep.mubr.msk.bf16.mxu0 %vm539_vm3, %v5259_v35 }
 0x639   :  { %2683 = vmatmul.mubr.bf16.gmra.mrb[156].mxu1 %v5261_v36  ;;  %3076 = vmatmul.mubr.bf16.gmra.mrb[160].mxu0 %v5262_v37 }
 0x63a   :  { %4773 = vmatprep.mubr.msk.bf16.mxu1 %vm539_vm3, %v5263_v38  ;;  %4818 = vmatprep.mubr.msk.bf16.mxu0 %vm539_vm3, %v5265_v39 }
 0x63c   :  { %v1810_v40 = vpop.f32.mrb[52].mxu1  ;;  %v2203_v5 = vpop.f32.mrb[56].mxu0 }
 0x63d   :  { %1929 = vst.msk [vmem:[#allocation2] sm:$0xff] %vm9279_vm1, %v1810_v40  ;;  %2322 = vst.msk [vmem:[#allocation2 + $0xf0] sm:$0xff] %vm9279_vm1, %v2203_v5  ;;  %v1812_v42 = vpop.f32.mrb[53].mxu1  ;;  %v2205_v43 = vpop.f32.mrb[57].mxu0 }
 0x63e   :  { %v1813_v45 = vpop.f32.mrb[54].mxu1  ;;  %v2206_v46 = vpop.f32.mrb[58].mxu0 }
 0x63f   :  { %1930 = vst.msk [vmem:[#allocation2 + $0x8] sm:$0xff] %vm9279_vm1, %v1813_v45  ;;  %2323 = vst.msk [vmem:[#allocation2 + $0xf8] sm:$0xff] %vm9279_vm1, %v2206_v46  ;;  %v1815_v49 = vpop.f32.mrb[55].mxu1  ;;  %v2208_v51 = vpop.f32.mrb[59].mxu0 }
 0x641   :  { %2691 = vmatmul.mubr.bf16.gmra.mrb[160].mxu1 %v5267_v30  ;;  %3084 = vmatmul.mubr.bf16.gmra.mrb[164].mxu0 %v5268_v41 }
 0x642   :  { %4774 = vmatprep.mubr.msk.bf16.mxu1 %vm539_vm3, %v5269_v44 }
 0x644   :  { %v1818_v26 = vpop.f32.mrb[56].mxu1  ;;  %v2211_v28 = vpop.f32.mrb[60].mxu0 }
 0x645   :  { %1931 = vst.msk [vmem:[#allocation2 + $0x10] sm:$0xff] %vm9279_vm1, %v1818_v26  ;;  %2324 = vst.msk [vmem:[#allocation2 + $0x100] sm:$0xff] %vm9279_vm1, %v2211_v28  ;;  %v1820_v2 = vpop.f32.mrb[57].mxu1  ;;  %v2213_v9 = vpop.f32.mrb[61].mxu0 }
 0x646   :  { %v1821_v34 = vpop.f32.mrb[58].mxu1  ;;  %v2214_v48 = vpop.f32.mrb[62].mxu0 }
 0x647   :  { %1932 = vst.msk [vmem:[#allocation2 + $0x18] sm:$0xff] %vm9279_vm1, %v1821_v34  ;;  %2325 = vst.msk [vmem:[#allocation2 + $0x108] sm:$0xff] %vm9279_vm1, %v2214_v48  ;;  %v1823_v50 = vpop.f32.mrb[59].mxu1  ;;  %v2216_v58 = vpop.f32.mrb[63].mxu0 }
 0x649   :  { %2699 = vmatmul.mubr.bf16.gmra.mrb[164].mxu1 %v5271_v33 }
 0x64a   :  { %4775 = vmatprep.mubr.msk.bf16.mxu1 %vm539_vm3, %v5272_v10 }
 0x64c   :  { %v1826_v56 = vpop.f32.mrb[60].mxu1  ;;  %v2219_v52 = vpop.f32.mrb[64].mxu0 }
 0x64d   :  { %1933 = vst.msk [vmem:[#allocation2 + $0x20] sm:$0xff] %vm9279_vm1, %v1826_v56  ;;  %2326 = vst.msk [vmem:[#allocation2 + $0x110] sm:$0xff] %vm9279_vm1, %v2219_v52  ;;  %v1828_v0 = vpop.f32.mrb[61].mxu1  ;;  %v2221_v62 = vpop.f32.mrb[65].mxu0 }
 0x64e   :  { %v1829_v57 = vpop.f32.mrb[62].mxu1  ;;  %v2222_v11 = vpop.f32.mrb[66].mxu0 }
 0x64f   :  { %1934 = vst.msk [vmem:[#allocation2 + $0x28] sm:$0xff] %vm9279_vm1, %v1829_v57  ;;  %2327 = vst.msk [vmem:[#allocation2 + $0x118] sm:$0xff] %vm9279_vm1, %v2222_v11  ;;  %v1831_v7 = vpop.f32.mrb[63].mxu1  ;;  %v2224_v59 = vpop.f32.mrb[67].mxu0 }
 0x651   :  { %2707 = vmatmul.mubr.bf16.gmra.mrb[168].mxu1 %v5274_v54 }
 0x652   :  { %4819 = vmatprep.mubr.msk.bf16.mxu1 %vm539_vm3, %v5277_v55 }
 0x654   :  { %v1834_v60 = vpop.f32.mrb[64].mxu1  ;;  %v2227_v17 = vpop.f32.mrb[68].mxu0 }
 0x655   :  { %1935 = vst.msk [vmem:[#allocation2 + $0x30] sm:$0xff] %vm9279_vm1, %v1834_v60  ;;  %2328 = vst.msk [vmem:[#allocation2 + $0x120] sm:$0xff] %vm9279_vm1, %v2227_v17  ;;  %v1836_v61 = vpop.f32.mrb[65].mxu1  ;;  %v2229_v63 = vpop.f32.mrb[69].mxu0 }
 0x656   :  { %v1837_v1 = vpop.f32.mrb[66].mxu1  ;;  %v2230_v4 = vpop.f32.mrb[70].mxu0 }
 0x657   :  { %1936 = vst.msk [vmem:[#allocation2 + $0x38] sm:$0xff] %vm9279_vm1, %v1837_v1  ;;  %2329 = vst.msk [vmem:[#allocation2 + $0x128] sm:$0xff] %vm9279_vm1, %v2230_v4  ;;  %v1839_v22 = vpop.f32.mrb[67].mxu1  ;;  %v2232_v6 = vpop.f32.mrb[71].mxu0 }
 0x659   :  { %3092 = vmatmul.mubr.bf16.vlgmr.msra.gmra.mrb[172].mxu1 %v5275_v15 }
 0x65a   :  { %4820 = vmatprep.mubr.msk.bf16.mxu1 %vm539_vm3, %v5278_v24 }
 0x65c   :  { %v1842_v8 = vpop.f32.mrb[68].mxu1  ;;  %v2235_v12 = vpop.f32.mrb[72].mxu0 }
 0x65d   :  { %1937 = vst.msk [vmem:[#allocation2 + $0x40] sm:$0xff] %vm9279_vm1, %v1842_v8  ;;  %2330 = vst.msk [vmem:[#allocation2 + $0x130] sm:$0xff] %vm9279_vm1, %v2235_v12  ;;  %v1844_v14 = vpop.f32.mrb[69].mxu1  ;;  %v2237_v16 = vpop.f32.mrb[73].mxu0 }
 0x65e   :  { %v1845_v19 = vpop.f32.mrb[70].mxu1  ;;  %v2238_v20 = vpop.f32.mrb[74].mxu0 }
 0x65f   :  { %1938 = vst.msk [vmem:[#allocation2 + $0x48] sm:$0xff] %vm9279_vm1, %v1845_v19  ;;  %2331 = vst.msk [vmem:[#allocation2 + $0x138] sm:$0xff] %vm9279_vm1, %v2238_v20  ;;  %v1847_v21 = vpop.f32.mrb[71].mxu1  ;;  %v2240_v23 = vpop.f32.mrb[75].mxu0 }
 0x661   :  { %3100 = vmatmul.mubr.bf16.gmra.mrb[176].mxu1 %v5280_v13 }
 0x664   :  { %v1197_v25 = vpop.xlane.xlu1 %1196  ;;  %v1850_v27 = vpop.f32.mrb[72].mxu1 }
 0x665   :  { %5373 = vrcp.f32 %v1197_v25  ;;  %1939 = vst.msk [vmem:[#allocation2 + $0x50] sm:$0xff] %vm9279_vm1, %v1850_v27  ;;  %v2243_v29 = vpop.f32.mrb[76].mxu0  ;;  %v1852_v31 = vpop.f32.mrb[73].mxu1 }
 0x666   :  { %2332 = vst.msk [vmem:[#allocation2 + $0x140] sm:$0xff] %vm9279_vm1, %v2243_v29  ;;  %v2245_v32 = vpop.f32.mrb[77].mxu0  ;;  %v1853_v35 = vpop.f32.mrb[74].mxu1 }
 0x667   :  { %v1200_v36 = vpop.xlane.xlu0 %1199  ;;  %1940 = vst.msk [vmem:[#allocation2 + $0x58] sm:$0xff] %vm9279_vm1, %v1853_v35  ;;  %v2246_v37 = vpop.f32.mrb[78].mxu0 }
 0x668   :  { %5375 = vrcp.f32 %v1200_v36  ;;  %v1203_v38 = vpop.xlane.xlu1 %1202  ;;  %2333 = vst.msk [vmem:[#allocation2 + $0x148] sm:$0xff] %vm9279_vm1, %v2246_v37  ;;  %v1855_v39 = vpop.f32.mrb[75].mxu1 }
 0x669   :  { %5377 = vrcp.f32 %v1203_v38  ;;  %v2248_v40 = vpop.f32.mrb[79].mxu0 }
 0x66c   :  { %v1858_v5 = vpop.f32.mrb[76].mxu1  ;;  %v2251_v30 = vpop.f32.mrb[80].mxu0 }
 0x66d   :  { %1941 = vst.msk [vmem:[#allocation2 + $0x60] sm:$0xff] %vm9279_vm1, %v1858_v5  ;;  %2334 = vst.msk [vmem:[#allocation2 + $0x150] sm:$0xff] %vm9279_vm1, %v2251_v30  ;;  %v1860_v41 = vpop.f32.mrb[77].mxu1  ;;  %v2253_v42 = vpop.f32.mrb[81].mxu0 }
 0x66e   :  { %v1861_v43 = vpop.f32.mrb[78].mxu1  ;;  %v2254_v44 = vpop.f32.mrb[82].mxu0 }
 0x66f   :  { %v5374_v45 = vpop.eup %5373  ;;  %1942 = vst.msk [vmem:[#allocation2 + $0x68] sm:$0xff] %vm9279_vm1, %v1861_v43  ;;  %2335 = vst.msk [vmem:[#allocation2 + $0x158] sm:$0xff] %vm9279_vm1, %v2254_v44  ;;  %v1863_v46 = vpop.f32.mrb[79].mxu1 }
 0x670   :  { %v2256_v49 = vpop.f32.mrb[83].mxu0  ;;  %v6479_v51 = vmul.f32 %v5374_v45, %v6203_v18 }
 0x672   :  { %v5376_v26 = vpop.eup %5375  ;;  %v1210_v28 = vsel %vm1175_vm7, %v6479_v51, -inf }
 0x673   :  { %v5378_v33 = vpop.eup %5377  ;;  %1211 = vmax.xlane.f32.xlu0 %v1210_v28  ;;  %v6484_v2 = vmul.f32 %v5376_v26, %v6216_v47 }
 0x674   :  { %v6487_v9 = vmul.f32 %v5378_v33, %v6223_v53  ;;  %v1866_v10 = vpop.f32.mrb[80].mxu1  ;;  %v2259_v34 = vpop.f32.mrb[84].mxu0 }
 0x675   :  { %v1213_v48 = vsel %vm1175_vm7, %v6484_v2, -inf  ;;  %1943 = vst.msk [vmem:[#allocation2 + $0x70] sm:$0xff] %vm9279_vm1, %v1866_v10  ;;  %2336 = vst.msk [vmem:[#allocation2 + $0x160] sm:$0xff] %vm9279_vm1, %v2259_v34  ;;  %v1868_v18 = vpop.f32.mrb[81].mxu1  ;;  %v2261_v50 = vpop.f32.mrb[85].mxu0 }
 0x676   :  { %1214 = vmax.xlane.f32.xlu1 %v1213_v48  ;;  %v1216_v58 = vsel %vm1182_vm8, %v6487_v9, -inf  ;;  %v1869_v47 = vpop.f32.mrb[82].mxu1  ;;  %v2262_v56 = vpop.f32.mrb[86].mxu0 }
 0x677   :  { %1217 = vmax.xlane.f32.xlu0 %v1216_v58  ;;  %1944 = vst.msk [vmem:[#allocation2 + $0x78] sm:$0xff] %vm9279_vm1, %v1869_v47  ;;  %2337 = vst.msk [vmem:[#allocation2 + $0x168] sm:$0xff] %vm9279_vm1, %v2262_v56  ;;  %v1871_v53 = vpop.f32.mrb[83].mxu1  ;;  %v2264_v52 = vpop.f32.mrb[87].mxu0 }
 0x67c   :  { %v1874_v54 = vpop.f32.mrb[84].mxu1  ;;  %v2267_v0 = vpop.f32.mrb[88].mxu0 }
 0x67d   :  { %1945 = vst.msk [vmem:[#allocation2 + $0x80] sm:$0xff] %vm9279_vm1, %v1874_v54  ;;  %2338 = vst.msk [vmem:[#allocation2 + $0x170] sm:$0xff] %vm9279_vm1, %v2267_v0  ;;  %v1876_v62 = vpop.f32.mrb[85].mxu1  ;;  %v2269_v55 = vpop.f32.mrb[89].mxu0 }
 0x67e   :  { %v1877_v57 = vpop.f32.mrb[86].mxu1  ;;  %v2270_v11 = vpop.f32.mrb[90].mxu0  ;;  %v3203_v3 = vld [vmem:[#allocation2 + $0x78] sm:$0xff] }
 0x67f   :  { %1946 = vst.msk [vmem:[#allocation2 + $0x88] sm:$0xff] %vm9279_vm1, %v1877_v57  ;;  %2339 = vst.msk [vmem:[#allocation2 + $0x178] sm:$0xff] %vm9279_vm1, %v2270_v11  ;;  %v1879_v7 = vpop.f32.mrb[87].mxu1  ;;  %v2272_v59 = vpop.f32.mrb[91].mxu0 }
 0x684   :  { %v1882_v60 = vpop.f32.mrb[88].mxu1  ;;  %v2275_v17 = vpop.f32.mrb[92].mxu0 }
 0x685   :  { %1947 = vst.msk [vmem:[#allocation2 + $0x90] sm:$0xff] %vm9279_vm1, %v1882_v60  ;;  %2340 = vst.msk [vmem:[#allocation2 + $0x180] sm:$0xff] %vm9279_vm1, %v2275_v17  ;;  %v1884_v15 = vpop.f32.mrb[89].mxu1  ;;  %v2277_v61 = vpop.f32.mrb[93].mxu0 }
 0x686   :  { %v1885_v63 = vpop.f32.mrb[90].mxu1  ;;  %v2278_v24 = vpop.f32.mrb[94].mxu0 }
 0x687   :  { %1948 = vst.msk [vmem:[#allocation2 + $0x98] sm:$0xff] %vm9279_vm1, %v1885_v63  ;;  %2341 = vst.msk [vmem:[#allocation2 + $0x188] sm:$0xff] %vm9279_vm1, %v2278_v24  ;;  %v1887_v1 = vpop.f32.mrb[91].mxu1  ;;  %v2280_v4 = vpop.f32.mrb[95].mxu0 }
 0x68c   :  { %v1890_v22 = vpop.f32.mrb[92].mxu1  ;;  %v2283_v6 = vpop.f32.mrb[96].mxu0 }
 0x68d   :  { %1949 = vst.msk [vmem:[#allocation2 + $0xa0] sm:$0xff] %vm9279_vm1, %v1890_v22  ;;  %2342 = vst.msk [vmem:[#allocation2 + $0x190] sm:$0xff] %vm9279_vm1, %v2283_v6  ;;  %v1892_v8 = vpop.f32.mrb[93].mxu1  ;;  %v2285_v12 = vpop.f32.mrb[97].mxu0 }
 0x68e   :  { %v1893_v13 = vpop.f32.mrb[94].mxu1  ;;  %v2286_v14 = vpop.f32.mrb[98].mxu0 }
 0x68f   :  { %1950 = vst.msk [vmem:[#allocation2 + $0xa8] sm:$0xff] %vm9279_vm1, %v1893_v13  ;;  %2343 = vst.msk [vmem:[#allocation2 + $0x198] sm:$0xff] %vm9279_vm1, %v2286_v14  ;;  %v1895_v16 = vpop.f32.mrb[95].mxu1  ;;  %v2288_v19 = vpop.f32.mrb[99].mxu0 }
 0x694   :  { %v1898_v20 = vpop.f32.mrb[96].mxu1  ;;  %v2291_v21 = vpop.f32.mrb[100].mxu0 }
 0x695   :  { %1951 = vst.msk [vmem:[#allocation2 + $0xb0] sm:$0xff] %vm9279_vm1, %v1898_v20  ;;  %2344 = vst.msk [vmem:[#allocation2 + $0x1a0] sm:$0xff] %vm9279_vm1, %v2291_v21  ;;  %v1900_v23 = vpop.f32.mrb[97].mxu1  ;;  %v2293_v25 = vpop.f32.mrb[101].mxu0 }
 0x696   :  { %v1901_v27 = vpop.f32.mrb[98].mxu1  ;;  %v2294_v29 = vpop.f32.mrb[102].mxu0 }
 0x697   :  { %1952 = vst.msk [vmem:[#allocation2 + $0xb8] sm:$0xff] %vm9279_vm1, %v1901_v27  ;;  %2345 = vst.msk [vmem:[#allocation2 + $0x1a8] sm:$0xff] %vm9279_vm1, %v2294_v29  ;;  %v1903_v31 = vpop.f32.mrb[99].mxu1  ;;  %v2296_v32 = vpop.f32.mrb[103].mxu0 }
 0x69c   :  { %v1906_v35 = vpop.f32.mrb[100].mxu1  ;;  %v2299_v36 = vpop.f32.mrb[104].mxu0 }
 0x69d   :  { %1953 = vst.msk [vmem:[#allocation2 + $0xc0] sm:$0xff] %vm9279_vm1, %v1906_v35  ;;  %2346 = vst.msk [vmem:[#allocation2 + $0x1b0] sm:$0xff] %vm9279_vm1, %v2299_v36  ;;  %v1908_v37 = vpop.f32.mrb[101].mxu1  ;;  %v2301_v38 = vpop.f32.mrb[105].mxu0 }
 0x69e   :  { %v1909_v39 = vpop.f32.mrb[102].mxu1  ;;  %v2302_v40 = vpop.f32.mrb[106].mxu0 }
 0x69f   :  { %1954 = vst.msk [vmem:[#allocation2 + $0xc8] sm:$0xff] %vm9279_vm1, %v1909_v39  ;;  %2347 = vst.msk [vmem:[#allocation2 + $0x1b8] sm:$0xff] %vm9279_vm1, %v2302_v40  ;;  %v1911_v5 = vpop.f32.mrb[103].mxu1  ;;  %v2304_v30 = vpop.f32.mrb[107].mxu0 }
 0x6a4   :  { %v1914_v41 = vpop.f32.mrb[104].mxu1  ;;  %v2307_v42 = vpop.f32.mrb[108].mxu0 }
 0x6a5   :  { %1955 = vst.msk [vmem:[#allocation2 + $0xd0] sm:$0xff] %vm9279_vm1, %v1914_v41  ;;  %2348 = vst.msk [vmem:[#allocation2 + $0x1c0] sm:$0xff] %vm9279_vm1, %v2307_v42  ;;  %v1916_v43 = vpop.f32.mrb[105].mxu1  ;;  %v2309_v44 = vpop.f32.mrb[109].mxu0 }
 0x6a6   :  { %v1917_v45 = vpop.f32.mrb[106].mxu1  ;;  %v2310_v46 = vpop.f32.mrb[110].mxu0 }
 0x6a7   :  { %1956 = vst.msk [vmem:[#allocation2 + $0xd8] sm:$0xff] %vm9279_vm1, %v1917_v45  ;;  %2349 = vst.msk [vmem:[#allocation2 + $0x1c8] sm:$0xff] %vm9279_vm1, %v2310_v46  ;;  %v1919_v49 = vpop.f32.mrb[107].mxu1  ;;  %v2312_v26 = vpop.f32.mrb[111].mxu0 }
 0x6ac   :  { %v1922_v28 = vpop.f32.mrb[108].mxu1  ;;  %v2315_v33 = vpop.f32.mrb[112].mxu0 }
 0x6ad   :  { %1957 = vst.msk [vmem:[#allocation2 + $0xe0] sm:$0xff] %vm9279_vm1, %v1922_v28  ;;  %2350 = vst.msk [vmem:[#allocation2 + $0x1d0] sm:$0xff] %vm9279_vm1, %v2315_v33  ;;  %v1924_v10 = vpop.f32.mrb[109].mxu1  ;;  %v2317_v34 = vpop.f32.mrb[113].mxu0 }
 0x6ae   :  { %v1925_v48 = vpop.f32.mrb[110].mxu1  ;;  %v2318_v18 = vpop.f32.mrb[114].mxu0 }
 0x6af   :  { %1958 = vst.msk [vmem:[#allocation2 + $0xe8] sm:$0xff] %vm9279_vm1, %v1925_v48  ;;  %2351 = vst.msk [vmem:[#allocation2 + $0x1d8] sm:$0xff] %vm9279_vm1, %v2318_v18  ;;  %v1927_v50 = vpop.f32.mrb[111].mxu1  ;;  %v2320_v58 = vpop.f32.mrb[115].mxu0 }
 0x6b4   :  { %v2596_v47 = vpop.f32.mrb[112].mxu1  ;;  %v2989_v56 = vpop.f32.mrb[116].mxu0 }
 0x6b5   :  { %2715 = vst.msk [vmem:[#allocation2 + $0x1e0] sm:$0xff] %vm9279_vm1, %v2596_v47  ;;  %3108 = vst.msk [vmem:[#allocation2 + $0x2d0] sm:$0xff] %vm9279_vm1, %v2989_v56  ;;  %v2598_v53 = vpop.f32.mrb[113].mxu1  ;;  %v2991_v52 = vpop.f32.mrb[117].mxu0 }
 0x6b6   :  { %v2599_v54 = vpop.f32.mrb[114].mxu1  ;;  %v2992_v0 = vpop.f32.mrb[118].mxu0 }
 0x6b7   :  { %2716 = vst.msk [vmem:[#allocation2 + $0x1e8] sm:$0xff] %vm9279_vm1, %v2599_v54  ;;  %3109 = vst.msk [vmem:[#allocation2 + $0x2d8] sm:$0xff] %vm9279_vm1, %v2992_v0  ;;  %v2601_v62 = vpop.f32.mrb[115].mxu1  ;;  %v2994_v55 = vpop.f32.mrb[119].mxu0 }
 0x6bc   :  { %v2604_v57 = vpop.f32.mrb[116].mxu1  ;;  %v2997_v11 = vpop.f32.mrb[120].mxu0 }
 0x6bd   :  { %2717 = vst.msk [vmem:[#allocation2 + $0x1f0] sm:$0xff] %vm9279_vm1, %v2604_v57  ;;  %3110 = vst.msk [vmem:[#allocation2 + $0x2e0] sm:$0xff] %vm9279_vm1, %v2997_v11  ;;  %v2606_v7 = vpop.f32.mrb[117].mxu1  ;;  %v2999_v59 = vpop.f32.mrb[121].mxu0 }
 0x6be   :  { %v2607_v60 = vpop.f32.mrb[118].mxu1  ;;  %v3000_v17 = vpop.f32.mrb[122].mxu0 }
 0x6bf   :  { %2718 = vst.msk [vmem:[#allocation2 + $0x1f8] sm:$0xff] %vm9279_vm1, %v2607_v60  ;;  %3111 = vst.msk [vmem:[#allocation2 + $0x2e8] sm:$0xff] %vm9279_vm1, %v3000_v17  ;;  %v2609_v15 = vpop.f32.mrb[119].mxu1  ;;  %v3002_v61 = vpop.f32.mrb[123].mxu0 }
 0x6c0   :  { %v1219_v15 = vlaneseq }
 0x6c4   :  { %v2612_v63 = vpop.f32.mrb[120].mxu1  ;;  %v3005_v24 = vpop.f32.mrb[124].mxu0 }
 0x6c5   :  { %2719 = vst.msk [vmem:[#allocation2 + $0x200] sm:$0xff] %vm9279_vm1, %v2612_v63  ;;  %3112 = vst.msk [vmem:[#allocation2 + $0x2f0] sm:$0xff] %vm9279_vm1, %v3005_v24  ;;  %v2614_v1 = vpop.f32.mrb[121].mxu1  ;;  %v3007_v4 = vpop.f32.mrb[125].mxu0 }
 0x6c6   :  { %v2615_v22 = vpop.f32.mrb[122].mxu1  ;;  %v3008_v6 = vpop.f32.mrb[126].mxu0  ;;  %v1220_v4 = vand.u32 127, %v1219_v15 }
 0x6c7   :  { %2720 = vst.msk [vmem:[#allocation2 + $0x208] sm:$0xff] %vm9279_vm1, %v2615_v22  ;;  %3113 = vst.msk [vmem:[#allocation2 + $0x2f8] sm:$0xff] %vm9279_vm1, %v3008_v6  ;;  %v2617_v8 = vpop.f32.mrb[123].mxu1  ;;  %v3010_v12 = vpop.f32.mrb[127].mxu0 }
 0x6cc   :  { %v2620_v13 = vpop.f32.mrb[124].mxu1  ;;  %v3013_v14 = vpop.f32.mrb[128].mxu0 }
 0x6cd   :  { %2721 = vst.msk [vmem:[#allocation2 + $0x210] sm:$0xff] %vm9279_vm1, %v2620_v13  ;;  %3114 = vst.msk [vmem:[#allocation2 + $0x300] sm:$0xff] %vm9279_vm1, %v3013_v14  ;;  %v2622_v16 = vpop.f32.mrb[125].mxu1  ;;  %v3015_v19 = vpop.f32.mrb[129].mxu0 }
 0x6ce   :  { %v2623_v20 = vpop.f32.mrb[126].mxu1  ;;  %v3016_v21 = vpop.f32.mrb[130].mxu0 }
 0x6cf   :  { %2722 = vst.msk [vmem:[#allocation2 + $0x218] sm:$0xff] %vm9279_vm1, %v2623_v20  ;;  %3115 = vst.msk [vmem:[#allocation2 + $0x308] sm:$0xff] %vm9279_vm1, %v3016_v21  ;;  %v2625_v23 = vpop.f32.mrb[127].mxu1  ;;  %v3018_v25 = vpop.f32.mrb[131].mxu0 }
 0x6d4   :  { %v2628_v27 = vpop.f32.mrb[128].mxu1  ;;  %v3021_v29 = vpop.f32.mrb[132].mxu0 }
 0x6d5   :  { %2723 = vst.msk [vmem:[#allocation2 + $0x220] sm:$0xff] %vm9279_vm1, %v2628_v27  ;;  %3116 = vst.msk [vmem:[#allocation2 + $0x310] sm:$0xff] %vm9279_vm1, %v3021_v29  ;;  %v2630_v31 = vpop.f32.mrb[129].mxu1  ;;  %v3023_v32 = vpop.f32.mrb[133].mxu0 }
 0x6d6   :  { %v2631_v35 = vpop.f32.mrb[130].mxu1  ;;  %v3024_v36 = vpop.f32.mrb[134].mxu0 }
 0x6d7   :  { %2724 = vst.msk [vmem:[#allocation2 + $0x228] sm:$0xff] %vm9279_vm1, %v2631_v35  ;;  %3117 = vst.msk [vmem:[#allocation2 + $0x318] sm:$0xff] %vm9279_vm1, %v3024_v36  ;;  %v2633_v37 = vpop.f32.mrb[131].mxu1  ;;  %v3026_v38 = vpop.f32.mrb[135].mxu0 }
 0x6dc   :  { %v2636_v39 = vpop.f32.mrb[132].mxu1  ;;  %v3029_v40 = vpop.f32.mrb[136].mxu0 }
 0x6dd   :  { %2725 = vst.msk [vmem:[#allocation2 + $0x230] sm:$0xff] %vm9279_vm1, %v2636_v39  ;;  %3118 = vst.msk [vmem:[#allocation2 + $0x320] sm:$0xff] %vm9279_vm1, %v3029_v40  ;;  %v2638_v5 = vpop.f32.mrb[133].mxu1  ;;  %v3031_v30 = vpop.f32.mrb[137].mxu0 }
 0x6de   :  { %v2639_v41 = vpop.f32.mrb[134].mxu1  ;;  %v3032_v42 = vpop.f32.mrb[138].mxu0 }
 0x6df   :  { %2726 = vst.msk [vmem:[#allocation2 + $0x238] sm:$0xff] %vm9279_vm1, %v2639_v41  ;;  %3119 = vst.msk [vmem:[#allocation2 + $0x328] sm:$0xff] %vm9279_vm1, %v3032_v42  ;;  %v2641_v43 = vpop.f32.mrb[135].mxu1  ;;  %v3034_v44 = vpop.f32.mrb[139].mxu0 }
 0x6e4   :  { %v2644_v45 = vpop.f32.mrb[136].mxu1  ;;  %v3037_v46 = vpop.f32.mrb[140].mxu0 }
 0x6e5   :  { %2727 = vst.msk [vmem:[#allocation2 + $0x240] sm:$0xff] %vm9279_vm1, %v2644_v45  ;;  %3120 = vst.msk [vmem:[#allocation2 + $0x330] sm:$0xff] %vm9279_vm1, %v3037_v46  ;;  %v2646_v49 = vpop.f32.mrb[137].mxu1  ;;  %v3039_v26 = vpop.f32.mrb[141].mxu0 }
 0x6e6   :  { %v2647_v28 = vpop.f32.mrb[138].mxu1  ;;  %v3040_v33 = vpop.f32.mrb[142].mxu0 }
 0x6e7   :  { %2728 = vst.msk [vmem:[#allocation2 + $0x248] sm:$0xff] %vm9279_vm1, %v2647_v28  ;;  %3121 = vst.msk [vmem:[#allocation2 + $0x338] sm:$0xff] %vm9279_vm1, %v3040_v33  ;;  %v2649_v10 = vpop.f32.mrb[139].mxu1  ;;  %v3042_v34 = vpop.f32.mrb[143].mxu0 }
 0x6ec   :  { %v2652_v48 = vpop.f32.mrb[140].mxu1  ;;  %v3045_v18 = vpop.f32.mrb[144].mxu0 }
 0x6ed   :  { %2729 = vst.msk [vmem:[#allocation2 + $0x250] sm:$0xff] %vm9279_vm1, %v2652_v48  ;;  %3122 = vst.msk [vmem:[#allocation2 + $0x340] sm:$0xff] %vm9279_vm1, %v3045_v18  ;;  %v2654_v50 = vpop.f32.mrb[141].mxu1  ;;  %v3047_v58 = vpop.f32.mrb[145].mxu0 }
 0x6ee   :  { %v2655_v47 = vpop.f32.mrb[142].mxu1  ;;  %v3048_v56 = vpop.f32.mrb[146].mxu0 }
 0x6ef   :  { %2730 = vst.msk [vmem:[#allocation2 + $0x258] sm:$0xff] %vm9279_vm1, %v2655_v47  ;;  %3123 = vst.msk [vmem:[#allocation2 + $0x348] sm:$0xff] %vm9279_vm1, %v3048_v56  ;;  %v2657_v53 = vpop.f32.mrb[143].mxu1  ;;  %v3050_v52 = vpop.f32.mrb[147].mxu0 }
 0x6f4   :  { %v2660_v54 = vpop.f32.mrb[144].mxu1  ;;  %v3053_v0 = vpop.f32.mrb[148].mxu0 }
 0x6f5   :  { %2731 = vst.msk [vmem:[#allocation2 + $0x260] sm:$0xff] %vm9279_vm1, %v2660_v54  ;;  %3124 = vst.msk [vmem:[#allocation2 + $0x350] sm:$0xff] %vm9279_vm1, %v3053_v0  ;;  %v2662_v62 = vpop.f32.mrb[145].mxu1  ;;  %v3055_v55 = vpop.f32.mrb[149].mxu0 }
 0x6f6   :  { %v2663_v57 = vpop.f32.mrb[146].mxu1  ;;  %v3056_v11 = vpop.f32.mrb[150].mxu0 }
 0x6f7   :  { %2732 = vst.msk [vmem:[#allocation2 + $0x268] sm:$0xff] %vm9279_vm1, %v2663_v57  ;;  %3125 = vst.msk [vmem:[#allocation2 + $0x358] sm:$0xff] %vm9279_vm1, %v3056_v11  ;;  %v2665_v7 = vpop.f32.mrb[147].mxu1  ;;  %v3058_v59 = vpop.f32.mrb[151].mxu0 }
 0x6fc   :  { %v2668_v60 = vpop.f32.mrb[148].mxu1  ;;  %v3061_v17 = vpop.f32.mrb[152].mxu0 }
 0x6fd   :  { %2733 = vst.msk [vmem:[#allocation2 + $0x270] sm:$0xff] %vm9279_vm1, %v2668_v60  ;;  %3126 = vst.msk [vmem:[#allocation2 + $0x360] sm:$0xff] %vm9279_vm1, %v3061_v17  ;;  %v2670_v61 = vpop.f32.mrb[149].mxu1  ;;  %v3063_v63 = vpop.f32.mrb[153].mxu0 }
 0x6fe   :  { %v2671_v24 = vpop.f32.mrb[150].mxu1  ;;  %v3064_v1 = vpop.f32.mrb[154].mxu0  ;;  %v6621_v63 = vshrl.u32 %v1219_v15, 7 }
 0x6ff   :  { %2734 = vst.msk [vmem:[#allocation2 + $0x278] sm:$0xff] %vm9279_vm1, %v2671_v24  ;;  %3127 = vst.msk [vmem:[#allocation2 + $0x368] sm:$0xff] %vm9279_vm1, %v3064_v1  ;;  %v2673_v22 = vpop.f32.mrb[151].mxu1  ;;  %v3066_v6 = vpop.f32.mrb[155].mxu0 }
 0x700   :  { %v6566_v8 = vpop.xlane.xlu0 %1211  ;;  %v6627_v22 = vsub.s32 0, %v6621_v63 }
 0x701   :  { %9426 = vst [vmem:[#allocation9_spill] sm:$0xff] %v6566_v8  ;;  %vm1221_vm9 = vcmp.eq.f32.partialorder %v6479_v51, %v6566_v8 }
 0x702   :  { %v1224_v12 = vsel %vm1221_vm9, %v1220_v4, 12  ;;  %9430 = vst [vmem:[#allocation13_spill] sm:$0xff] %v6627_v22  ;;  %v6637_v15 = vrot.slane %v6566_v8, %v6627_v22 }
 0x703   :  { %v6570_v13 = vpop.xlane.xlu1 %1214  ;;  %v6573_v14 = vsel %vm1175_vm7, %v1224_v12, 2147483647 }
 0x704   :  { %9427 = vst [vmem:[#allocation10_spill] sm:$0xff] %v6570_v13  ;;  %v2676_v16 = vpop.f32.mrb[152].mxu1  ;;  %v3069_v19 = vpop.f32.mrb[156].mxu0  ;;  %v1229_v20 = vshra.s32 %v6573_v14, 16  ;;  %vm1222_vm10 = vcmp.eq.f32.partialorder %v6484_v2, %v6570_v13  ;;  %v1228_v61 = vand.u32 65535, %v6573_v14 }
 0x705   :  { %2735 = vst.msk [vmem:[#allocation2 + $0x280] sm:$0xff] %vm9279_vm1, %v2676_v16  ;;  %3128 = vst.msk [vmem:[#allocation2 + $0x370] sm:$0xff] %vm9279_vm1, %v3069_v19  ;;  %v2678_v21 = vpop.f32.mrb[153].mxu1  ;;  %v1225_v23 = vsel %vm1222_vm10, %v1220_v4, 12  ;;  %v3071_v51 = vpop.f32.mrb[157].mxu0  ;;  %v3142_v19 = vld [vmem:[#allocation2 + $0x20] sm:$0xff] }
 0x706   :  { %v2679_v25 = vpop.f32.mrb[154].mxu1  ;;  %v6580_v27 = vcvt.s32.f32 %v1229_v20  ;;  %v6583_v29 = vsel %vm1175_vm7, %v1225_v23, 2147483647  ;;  %v3072_v31 = vpop.f32.mrb[158].mxu0  ;;  %v3138_v21 = vld [vmem:[#allocation2] sm:$0xff]  ;;  %v3152_v23 = vmul.f32 %v6637_v15, %v3142_v19  ;;  %v6642_v51 = vsub.s32 1, %v6621_v63 }
 0x707   :  { %2736 = vst.msk [vmem:[#allocation2 + $0x288] sm:$0xff] %vm9279_vm1, %v2679_v25  ;;  %v1244_v32 = vshra.s32 %v6583_v29, 16  ;;  %v2681_v35 = vpop.f32.mrb[155].mxu1  ;;  %3129 = vst.msk [vmem:[#allocation2 + $0x378] sm:$0xff] %vm9279_vm1, %v3072_v31  ;;  %v3074_v2 = vpop.f32.mrb[159].mxu0  ;;  %v1243_v24 = vand.u32 65535, %v6583_v29  ;;  %v3148_v25 = vmul.f32 %v6637_v15, %v3138_v21 }
 0x708   :  { %1232 = vmin.xlane.f32.xlu1 %v6580_v27  ;;  %v6589_v36 = vpop.xlane.xlu0 %1217  ;;  %9432 = vst [vmem:[#allocation15_spill] sm:$0xff] %v6642_v51  ;;  %vm3158_vm14 = vcmp.gt.f32.partialorder %v3152_v23, -1.0  ;;  %v6649_v31 = vrot.slane %v6566_v8, %v6642_v51  ;;  %v6654_v2 = vsub.s32 2, %v6621_v63 }
 0x709   :  { %9428 = vst [vmem:[#allocation11_spill] sm:$0xff] %v6589_v36  ;;  %v6591_v37 = vcvt.s32.f32 %v1244_v32  ;;  %vm1223_vm11 = vcmp.eq.f32.partialorder %v6487_v9, %v6589_v36  ;;  %v1245_v16 = vcvt.s32.f32 %v1243_v24  ;;  %v3170_v32 = vld [vmem:[#allocation2 + $0x50] sm:$0xff]  ;;  %vm3154_vm0 = vcmp.gt.f32.partialorder %v3148_v25, -1.0 }
 0x70a   :  { %v1226_v30 = vsel %vm1223_vm11, %v1220_v4, 12  ;;  %v1230_v4 = vcvt.s32.f32 %v1228_v61 }
 0x70b   :  { %1247 = vmin.xlane.f32.xlu0 %v6591_v37  ;;  %v6599_v43 = vsel %vm1182_vm8, %v1226_v30, 2147483647  ;;  %v6665_v30 = vrot.slane %v6566_v8, %v6654_v2 }
 0x70c   :  { %v2684_v38 = vpop.f32.mrb[156].mxu1  ;;  %v3077_v39 = vpop.f32.mrb[160].mxu0  ;;  %v1259_v9 = vshra.s32 %v6599_v43, 16  ;;  %v1258_v20 = vand.u32 65535, %v6599_v43  ;;  %v3204_v43 = vld [vmem:[#allocation2 + $0x80] sm:$0xff] }
 0x70d   :  { %2737 = vst.msk [vmem:[#allocation2 + $0x290] sm:$0xff] %vm9279_vm1, %v2684_v38  ;;  %3130 = vst.msk [vmem:[#allocation2 + $0x380] sm:$0xff] %vm9279_vm1, %v3077_v39  ;;  %v2686_v40 = vpop.f32.mrb[157].mxu1  ;;  %v3079_v5 = vpop.f32.mrb[161].mxu0  ;;  %v6656_v38 = vsel %vm3158_vm14, %v3152_v23, -1.0  ;;  %v3143_v39 = vld [vmem:[#allocation2 + $0x28] sm:$0xff] }
 0x70e   :  { %v2687_v41 = vpop.f32.mrb[158].mxu1  ;;  %v3080_v42 = vpop.f32.mrb[162].mxu0  ;;  %v6604_v46 = vcvt.s32.f32 %v1259_v9  ;;  %v1260_v29 = vcvt.s32.f32 %v1258_v20  ;;  %v3166_v40 = vld [vmem:[#allocation2 + $0x30] sm:$0xff]  ;;  %v6659_v5 = vmul.f32 %v6649_v31, %v3170_v32  ;;  %v6675_v9 = vsub.s32 3, %v6621_v63  ;;  %v3268_v20 = vld [vmem:[#allocation2 + $0xc0] sm:$0xff]  ;;  %v3239_v32 = vld [vmem:[#allocation2 + $0xb8] sm:$0xff] }
 0x70f   :  { %2738 = vst.msk [vmem:[#allocation2 + $0x298] sm:$0xff] %vm9279_vm1, %v2687_v41  ;;  %3131 = vst.msk [vmem:[#allocation2 + $0x388] sm:$0xff] %vm9279_vm1, %v3080_v42  ;;  %v2689_v44 = vpop.f32.mrb[159].mxu1  ;;  %v3082_v45 = vpop.f32.mrb[163].mxu0  ;;  %v6667_v41 = vsel %vm3154_vm0, %v3148_v25, -1.0  ;;  %v3168_v25 = vld [vmem:[#allocation2 + $0x40] sm:$0xff] }
 0x710   :  { %1262 = vmin.xlane.f32.xlu1 %v6604_v46  ;;  %vm3186_vm2 = vcmp.gt.f32.partialorder %v6659_v5, %v6656_v38  ;;  %v3153_v44 = vmul.f32 %v6637_v15, %v3143_v39  ;;  %v6672_v45 = vmul.f32 %v6649_v31, %v3166_v40  ;;  %9434 = vst [vmem:[#allocation17_spill] sm:$0xff] %v6675_v9  ;;  %v9283_v39 = vsub.s32 6, %v6621_v63 }
 0x712   :  { %vm3182_vm3 = vcmp.gt.f32.partialorder %v6672_v45, %v6667_v41  ;;  %vm3159_vm6 = vcmp.gt.f32.partialorder %v3153_v44, -1.0 }
 0x714   :  { %v2692_v49 = vpop.f32.mrb[160].mxu1  ;;  %v3085_v26 = vpop.f32.mrb[164].mxu0 }
 0x715   :  { %2739 = vst.msk [vmem:[#allocation2 + $0x2a0] sm:$0xff] %vm9279_vm1, %v2692_v49  ;;  %3132 = vst.msk [vmem:[#allocation2 + $0x390] sm:$0xff] %vm9279_vm1, %v3085_v26  ;;  %v2694_v28 = vpop.f32.mrb[161].mxu1  ;;  %v3087_v33 = vpop.f32.mrb[165].mxu0  ;;  %v3200_v49 = vld [vmem:[#allocation2 + $0x60] sm:$0xff]  ;;  %v6687_v26 = vmul.f32 %v6665_v30, %v3204_v43 }
 0x716   :  { %v2695_v10 = vpop.f32.mrb[162].mxu1  ;;  %v3088_v34 = vpop.f32.mrb[166].mxu0  ;;  %v3167_v28 = vld [vmem:[#allocation2 + $0x38] sm:$0xff] }
 0x717   :  { %2740 = vst.msk [vmem:[#allocation2 + $0x2a8] sm:$0xff] %vm9279_vm1, %v2695_v10  ;;  %3133 = vst.msk [vmem:[#allocation2 + $0x398] sm:$0xff] %vm9279_vm1, %v3088_v34  ;;  %v2697_v48 = vpop.f32.mrb[163].mxu1  ;;  %v3090_v18 = vpop.f32.mrb[167].mxu0  ;;  %v3171_v33 = vld [vmem:[#allocation2 + $0x58] sm:$0xff]  ;;  %v6693_v10 = vrot.slane %v6566_v8, %v6675_v9  ;;  %v6700_v34 = vsel %vm3182_vm3, %v6672_v45, %v6667_v41 }
 0x718   :  { %v3238_v48 = vld [vmem:[#allocation2 + $0xb0] sm:$0xff]  ;;  %v6703_v18 = vmul.f32 %v6665_v30, %v3200_v49 }
 0x71a   :  { %vm3216_vm8 = vcmp.gt.f32.partialorder %v6703_v18, %v6700_v34 }
 0x71c   :  { %v2700_v50 = vpop.f32.mrb[164].mxu1 }
 0x71d   :  { %2741 = vst.msk [vmem:[#allocation2 + $0x2b0] sm:$0xff] %vm9279_vm1, %v2700_v50  ;;  %v2702_v58 = vpop.f32.mrb[165].mxu1 }
 0x71e   :  { %v2703_v47 = vpop.f32.mrb[166].mxu1  ;;  %v9282_v58 = vsub.s32 4, %v6621_v63 }
 0x71f   :  { %2742 = vst.msk [vmem:[#allocation2 + $0x2b8] sm:$0xff] %vm9279_vm1, %v2703_v47  ;;  %v2705_v56 = vpop.f32.mrb[167].mxu1  ;;  %v6708_v47 = vsel %vm3159_vm6, %v3153_v44, -1.0 }
 0x720   :  { %v6711_v56 = vmul.f32 %v6649_v31, %v3167_v28  ;;  %v6826_v28 = vmul.f32 %v6649_v31, %v3168_v25  ;;  %v6857_v25 = vrot.slane %v6566_v8, %v9283_v39 }
 0x722   :  { %9436 = vst [vmem:[#allocation19_spill] sm:$0xff] %v6711_v56  ;;  %9442 = vst [vmem:[#allocation25_spill] sm:$0xff] %v6826_v28 }
 0x724   :  { %v2708_v53 = vpop.f32.mrb[168].mxu1 }
 0x725   :  { %2743 = vst.msk [vmem:[#allocation2 + $0x2c0] sm:$0xff] %vm9279_vm1, %v2708_v53  ;;  %v2710_v52 = vpop.f32.mrb[169].mxu1  ;;  %v3140_v53 = vld [vmem:[#allocation2 + $0x10] sm:$0xff] }
 0x726   :  { %v2711_v54 = vpop.f32.mrb[170].mxu1 }
 0x727   :  { %2744 = vst.msk [vmem:[#allocation2 + $0x2c8] sm:$0xff] %vm9279_vm1, %v2711_v54  ;;  %v2713_v0 = vpop.f32.mrb[171].mxu1  ;;  %v6721_v54 = vmul.f32 %v6649_v31, %v3171_v33  ;;  %v3169_v33 = vld [vmem:[#allocation2 + $0x48] sm:$0xff] }
 0x728   :  { %v3234_v0 = vld [vmem:[#allocation2 + $0x90] sm:$0xff] }
 0x729   :  { %vm3187_vm10 = vcmp.gt.f32.partialorder %v6721_v54, %v6708_v47  ;;  %v6748_v61 = vmul.f32 %v6693_v10, %v3234_v0  ;;  %v3302_v0 = vld [vmem:[#allocation2 + $0xf0] sm:$0xff] }
 0x72c   :  { %v3093_v62 = vpop.f32.mrb[172].mxu1 }
 0x72d   :  { %3134 = vst.msk [vmem:[#allocation2 + $0x3a0] sm:$0xff] %vm9279_vm1, %v3093_v62  ;;  %v3095_v55 = vpop.f32.mrb[173].mxu1  ;;  %v6726_v62 = vmul.f32 %v6693_v10, %v3238_v48 }
 0x72e   :  { %v3096_v57 = vpop.f32.mrb[174].mxu1  ;;  %v3201_v55 = vld [vmem:[#allocation2 + $0x68] sm:$0xff] }
 0x72f   :  { %3135 = vst.msk [vmem:[#allocation2 + $0x3a8] sm:$0xff] %vm9279_vm1, %v3096_v57  ;;  %v3098_v11 = vpop.f32.mrb[175].mxu1  ;;  %v3205_v57 = vld [vmem:[#allocation2 + $0x88] sm:$0xff] }
 0x730   :  { %v6737_v11 = vrot.slane %v6566_v8, %v9282_v58  ;;  %v6776_v19 = vmul.f32 %v6665_v30, %v3205_v57  ;;  %v3202_v57 = vld [vmem:[#allocation2 + $0x70] sm:$0xff] }
 0x732   :  { %v6804_v40 = vmul.f32 %v6737_v11, %v3268_v20  ;;  %v3273_v20 = vld [vmem:[#allocation2 + $0xe8] sm:$0xff] }
 0x734   :  { %v3101_v7 = vpop.f32.mrb[176].mxu1 }
 0x735   :  { %3136 = vst.msk [vmem:[#allocation2 + $0x3b0] sm:$0xff] %vm9279_vm1, %v3101_v7  ;;  %v3103_v59 = vpop.f32.mrb[177].mxu1  ;;  %v6744_v7 = vsel %vm3216_vm8, %v6703_v18, %v6700_v34  ;;  %v3477_v18 = vld [vmem:[#allocation2 + $0x208] sm:$0xff] }
 0x736   :  { %v3104_v60 = vpop.f32.mrb[178].mxu1  ;;  %v3150_v59 = vmul.f32 %v6637_v15, %v3140_v53  ;;  %v6836_v53 = vmul.f32 %v6693_v10, %v3239_v32  ;;  %v6867_v32 = vmul.f32 %v6649_v31, %v3169_v33 }
 0x737   :  { %3137 = vst.msk [vmem:[#allocation2 + $0x3b8] sm:$0xff] %vm9279_vm1, %v3104_v60  ;;  %v3106_v17 = vpop.f32.mrb[179].mxu1  ;;  %v3141_v60 = vld [vmem:[#allocation2 + $0x18] sm:$0xff] }
 0x738   :  { %v3272_v17 = vld [vmem:[#allocation2 + $0xe0] sm:$0xff]  ;;  %vm3156_vm14 = vcmp.gt.f32.partialorder %v3150_v59, -1.0  ;;  %v3151_v23 = vmul.f32 %v6637_v15, %v3141_v60  ;;  %9445 = vst [vmem:[#allocation28_spill] sm:$0xff] %v6867_v32 }
 0x739   :  { %v6781_v21 = vmul.f32 %v6737_v11, %v3272_v17  ;;  %v6813_v43 = vsel %vm3156_vm14, %v3150_v59, -1.0  ;;  %v3269_v59 = vld [vmem:[#allocation2 + $0xc8] sm:$0xff] }
 0x73a   :  { %9440 = vst [vmem:[#allocation23_spill] sm:$0xff] %v6813_v43  ;;  %vm9288_vm1 = vcmp.gt.f32.partialorder %v6826_v28, %v6813_v43 }
 0x73b   :  { %v6885_v31 = vsel %vm9288_vm1, %v6826_v28, %v6813_v43  ;;  %v3236_v43 = vld [vmem:[#allocation2 + $0xa0] sm:$0xff] }
 0x73c   :  { %9447 = vst [vmem:[#allocation30_spill] sm:$0xff] %v6885_v31 }
 0x795   :  { %v6624_v1 = vpop.xlane.xlu1 %1232 }
 0x796   :  { %9429 = vst [vmem:[#allocation12_spill] sm:$0xff] %v6624_v1  ;;  %vm1234_vm12 = vcmp.eq.f32.partialorder %v6580_v27, %v6624_v1  ;;  %v3303_v1 = vld [vmem:[#allocation2 + $0xf8] sm:$0xff] }
 0x797   :  { %v1235_v6 = vsel %vm1234_vm12, %v1230_v4, inf  ;;  %v9284_v4 = vsub.s32 5, %v6621_v63  ;;  %vm9297_vm12 = vcmp.gt.f32.partialorder %v6748_v61, %v6744_v7 }
 0x798   :  { %v6631_v12 = vpop.xlane.xlu0 %1247  ;;  %1236 = vmin.xlane.f32.xlu0 %v1235_v6  ;;  %v6763_v6 = vsel %vm3187_vm10, %v6721_v54, %v6708_v47  ;;  %v3338_v47 = vld [vmem:[#allocation2 + $0x130] sm:$0xff]  ;;  %v3405_v54 = vld [vmem:[#allocation2 + $0x188] sm:$0xff] }
 0x799   :  { %9431 = vst [vmem:[#allocation14_spill] sm:$0xff] %v6631_v12  ;;  %vm1249_vm13 = vcmp.eq.f32.partialorder %v6591_v37, %v6631_v12  ;;  %v3139_v37 = vld [vmem:[#allocation2 + $0x8] sm:$0xff] }
 0x79a   :  { %v1250_v14 = vsel %vm1249_vm13, %v1245_v16, inf  ;;  %v3149_v42 = vmul.f32 %v6637_v15, %v3139_v37  ;;  %v6766_v16 = vmul.f32 %v6665_v30, %v3201_v55  ;;  %v6800_v15 = vsel %vm9297_vm12, %v6748_v61, %v6744_v7  ;;  %v3306_v37 = vld [vmem:[#allocation2 + $0x110] sm:$0xff] }
 0x79b   :  { %1251 = vmin.xlane.f32.xlu1 %v1250_v14  ;;  %vm9295_vm6 = vcmp.gt.f32.partialorder %v6804_v40, %v6800_v15 }
 0x79c   :  { %vm3155_vm4 = vcmp.gt.f32.partialorder %v3149_v42, -1.0  ;;  %9438 = vst [vmem:[#allocation21_spill] sm:$0xff] %v6766_v16 }
 0x79d   :  { %v6645_v27 = vpop.xlane.xlu1 %1262  ;;  %v6705_v50 = vsel %vm3155_vm4, %v3149_v42, -1.0  ;;  %vm3157_vm4 = vcmp.gt.f32.partialorder %v3151_v23, -1.0 }
 0x79e   :  { %9433 = vst [vmem:[#allocation16_spill] sm:$0xff] %v6645_v27  ;;  %vm1264_vm15 = vcmp.eq.f32.partialorder %v6604_v46, %v6645_v27  ;;  %v6682_v46 = vsel %vm3186_vm2, %v6659_v5, %v6656_v38  ;;  %9435 = vst [vmem:[#allocation18_spill] sm:$0xff] %v6705_v50  ;;  %vm9291_vm9 = vcmp.gt.f32.partialorder %v6711_v56, %v6705_v50  ;;  %v6850_v17 = vsel %vm3157_vm4, %v3151_v23, -1.0  ;;  %v3340_v23 = vld [vmem:[#allocation2 + $0x140] sm:$0xff] }
 0x79f   :  { %v1265_v35 = vsel %vm1264_vm15, %v1260_v29, inf  ;;  %vm3220_vm7 = vcmp.gt.f32.partialorder %v6687_v26, %v6682_v46  ;;  %v6755_v24 = vsel %vm9291_vm9, %v6711_v56, %v6705_v50  ;;  %v3235_v29 = vld [vmem:[#allocation2 + $0x98] sm:$0xff]  ;;  %vm3221_vm15 = vcmp.gt.f32.partialorder %v6776_v19, %v6763_v6  ;;  %9443 = vst [vmem:[#allocation26_spill] sm:$0xff] %v6850_v17 }
 0x7a0   :  { %1266 = vmin.xlane.f32.xlu0 %v1265_v35  ;;  %v6718_v52 = vsel %vm3220_vm7, %v6687_v26, %v6682_v46  ;;  %9437 = vst [vmem:[#allocation20_spill] sm:$0xff] %v6755_v24  ;;  %vm9281_vm13 = vcmp.gt.f32.partialorder %v6766_v16, %v6755_v24  ;;  %v6793_v35 = vrot.slane %v6566_v8, %v9284_v4  ;;  %v3341_v26 = vld [vmem:[#allocation2 + $0x148] sm:$0xff] }
 0x7a1   :  { %vm3254_vm11 = vcmp.gt.f32.partialorder %v6726_v62, %v6718_v52  ;;  %v6811_v42 = vsel %vm9281_vm13, %v6766_v16, %v6755_v24  ;;  %v6820_v44 = vsel %vm3221_vm15, %v6776_v19, %v6763_v6  ;;  %v6823_v49 = vmul.f32 %v6693_v10, %v3235_v29 }
 0x7a2   :  { %v6773_v14 = vsel %vm3254_vm11, %v6726_v62, %v6718_v52  ;;  %9439 = vst [vmem:[#allocation22_spill] sm:$0xff] %v6811_v42  ;;  %v6841_v55 = vmul.f32 %v6793_v35, %v3306_v37  ;;  %vm3255_vm5 = vcmp.gt.f32.partialorder %v6836_v53, %v6820_v44  ;;  %v6864_v29 = vsel %vm9295_vm6, %v6804_v40, %v6800_v15 }
 0x7a3   :  { %vm3288_vm0 = vcmp.gt.f32.partialorder %v6781_v21, %v6773_v14  ;;  %9441 = vst [vmem:[#allocation24_spill] sm:$0xff] %v6823_v49  ;;  %vm9290_vm14 = vcmp.gt.f32.partialorder %v6823_v49, %v6811_v42  ;;  %9444 = vst [vmem:[#allocation27_spill] sm:$0xff] %v6864_v29  ;;  %v3808_v37 = vadd.s32 8, %v6621_v63  ;;  %v6871_v58 = vmul.f32 %v6793_v35, %v3302_v0 }
 0x7a4   :  { %v6833_v48 = vsel %vm3288_vm0, %v6781_v21, %v6773_v14  ;;  %v6878_v39 = vsel %vm9290_vm14, %v6823_v49, %v6811_v42  ;;  %v6892_v33 = vsel %vm3255_vm5, %v6836_v53, %v6820_v44  ;;  %v6895_v0 = vmul.f32 %v6737_v11, %v3269_v59  ;;  %v3336_v59 = vld [vmem:[#allocation2 + $0x120] sm:$0xff]  ;;  %v3307_v42 = vld [vmem:[#allocation2 + $0x118] sm:$0xff] }
 0x7a5   :  { %vm3322_vm13 = vcmp.gt.f32.partialorder %v6841_v55, %v6833_v48  ;;  %9446 = vst [vmem:[#allocation29_spill] sm:$0xff] %v6878_v39  ;;  %v6898_v4 = vmul.f32 %v6665_v30, %v3202_v57  ;;  %vm9309_vm4 = vcmp.gt.f32.partialorder %v6867_v32, %v6850_v17  ;;  %v6910_v27 = vmul.f32 %v6737_v11, %v3273_v20  ;;  %v3375_v14 = vld [vmem:[#allocation2 + $0x178] sm:$0xff]  ;;  %v3372_v44 = vld [vmem:[#allocation2 + $0x160] sm:$0xff] }
 0x7a6   :  { %9448 = vst [vmem:[#allocation31_spill] sm:$0xff] %v6895_v0  ;;  %v6907_v60 = vsel %vm3322_vm13, %v6841_v55, %v6833_v48  ;;  %vm9315_vm1 = vcmp.gt.f32.partialorder %v6871_v58, %v6864_v29  ;;  %v3809_v57 = vadd.s32 16, %v6621_v63  ;;  %v6916_v12 = vmul.f32 %v6857_v25, %v3340_v23  ;;  %v3439_v53 = vld [vmem:[#allocation2 + $0x1b8] sm:$0xff] }
 0x7a7   :  { %9449 = vst [vmem:[#allocation32_spill] sm:$0xff] %v6898_v4  ;;  %vm9311_vm14 = vcmp.gt.f32.partialorder %v6895_v0, %v6878_v39  ;;  %vm9310_vm9 = vcmp.gt.f32.partialorder %v6898_v4, %v6885_v31  ;;  %v6923_v20 = vcvt.s32.f32 %v6621_v63  ;;  %v6925_v28 = vcvt.s32.f32 %v3808_v37 }
 0x7a8   :  { %vm3289_vm6 = vcmp.gt.f32.partialorder %v6910_v27, %v6892_v33  ;;  %v6934_v23 = vsel %vm9309_vm4, %v6867_v32, %v6850_v17  ;;  %vm3356_vm12 = vcmp.gt.f32.partialorder %v6916_v12, %v6907_v60  ;;  %v9453_v49 = vsub.s32 7, %v6621_v63  ;;  %v3374_v17 = vld [vmem:[#allocation2 + $0x170] sm:$0xff] }
 0x7a9   :  { %9450 = vst [vmem:[#allocation33_spill] sm:$0xff] %v6923_v20  ;;  %9451 = vst [vmem:[#allocation34_spill] sm:$0xff] %v6925_v28  ;;  %v6948_v37 = vsel %vm9315_vm1, %v6871_v58, %v6864_v29  ;;  %v6951_v28 = vmul.f32 %v6665_v30, %v3203_v3  ;;  %v9456_v32 = vmov 0   ;;  %v6958_v16 = vmul.f32 %v6857_v25, %v3336_v59  ;;  %v3237_v59 = vld [vmem:[#allocation2 + $0xa8] sm:$0xff] }
 0x7aa   :  { %9452 = vst [vmem:[#allocation35_spill] sm:$0xff] %v6934_v23  ;;  %v6941_v20 = vrot.slane %v6566_v8, %v9453_v49  ;;  %9454 = vst [vmem:[#allocation36_spill] sm:$0xff] %v6948_v37  ;;  %v3192_v24 = vsel %vm3186_vm2, 1, %v9456_v32  ;;  %v6965_v49 = vsel %vm9311_vm14, %v6895_v0, %v6878_v39  ;;  %v6972_v3 = vsel %vm9310_vm9, %v6898_v4, %v6885_v31 }
 0x7ab   :  { %9455 = vst [vmem:[#allocation37_spill] sm:$0xff] %v6951_v28  ;;  %9457 = vst [vmem:[#allocation38_spill] sm:$0xff] %v6958_v16  ;;  %v6979_v38 = vsel %vm3289_vm6, %v6910_v27, %v6892_v33  ;;  %v6982_v5 = vmul.f32 %v6793_v35, %v3303_v1  ;;  %v6985_v30 = vmul.f32 %v6693_v10, %v3236_v43  ;;  %v6989_v8 = vcvt.s32.f32 %v3809_v57  ;;  %v3370_v1 = vld [vmem:[#allocation2 + $0x150] sm:$0xff] }
 0x7ac   :  { %9458 = vst [vmem:[#allocation39_spill] sm:$0xff] %v6965_v49  ;;  %9459 = vst [vmem:[#allocation40_spill] sm:$0xff] %v6972_v3  ;;  %vm9324_vm2 = vcmp.gt.f32.partialorder %v6951_v28, %v6934_v23  ;;  %v6996_v31 = vsel %vm3356_vm12, %v6916_v12, %v6907_v60  ;;  %v6999_v4 = vmul.f32 %v6793_v35, %v3307_v42  ;;  %v3226_v43 = vsel %vm3220_vm7, 2, %v3192_v24  ;;  %v3270_v42 = vld [vmem:[#allocation2 + $0xd0] sm:$0xff] }
 0x7ad   :  { %9460 = vst [vmem:[#allocation41_spill] sm:$0xff] %v6982_v5  ;;  %9461 = vst [vmem:[#allocation42_spill] sm:$0xff] %v6985_v30  ;;  %vm9332_vm4 = vcmp.gt.f32.partialorder %v6958_v16, %v6948_v37  ;;  %v7007_v57 = vmul.f32 %v6941_v20, %v3374_v17  ;;  %vm9328_vm9 = vcmp.gt.f32.partialorder %v6982_v5, %v6965_v49  ;;  %v3578_v33 = vld [vmem:[#allocation2 + $0x290] sm:$0xff] }
 0x7ae   :  { %9462 = vst [vmem:[#allocation43_spill] sm:$0xff] %v6989_v8  ;;  %vm9327_vm14 = vcmp.gt.f32.partialorder %v6985_v30, %v6972_v3  ;;  %v3337_v8 = vld [vmem:[#allocation2 + $0x128] sm:$0xff]  ;;  %v7015_v39 = vrot.slane %v6570_v13, %v6627_v22  ;;  %v7019_v0 = vrot.slane %v6570_v13, %v6642_v51  ;;  %vm3323_vm7 = vcmp.gt.f32.partialorder %v6999_v4, %v6979_v38  ;;  %v3408_v22 = vld [vmem:[#allocation2 + $0x1a0] sm:$0xff] }
 0x7af   :  { %v7028_v46 = vsel %vm9324_vm2, %v6951_v28, %v6934_v23  ;;  %vm3390_vm1 = vcmp.gt.f32.partialorder %v7007_v57, %v6996_v31  ;;  %v7034_v24 = vrot.slane %v6570_v13, %v6654_v2  ;;  %v7041_v17 = vsel %vm9332_vm4, %v6958_v16, %v6948_v37  ;;  %v3304_v16 = vld [vmem:[#allocation2 + $0x100] sm:$0xff] }
 0x7b0   :  { %9463 = vst [vmem:[#allocation44_spill] sm:$0xff] %v7028_v46  ;;  %v7044_v51 = vmul.f32 %v6693_v10, %v3237_v59  ;;  %v3260_v23 = vsel %vm3254_vm11, 3, %v3226_v43  ;;  %v7050_v28 = vmul.f32 %v6941_v20, %v3370_v1  ;;  %v7057_v50 = vsel %vm9328_vm9, %v6982_v5, %v6965_v49  ;;  %v3442_v59 = vld [vmem:[#allocation2 + $0x1d0] sm:$0xff]  ;;  %v3271_v43 = vld [vmem:[#allocation2 + $0xd8] sm:$0xff]  ;;  %v3404_v5 = vld [vmem:[#allocation2 + $0x180] sm:$0xff] }
 0x7b1   :  { %9465 = vst [vmem:[#allocation46_spill] sm:$0xff] %v7057_v50  ;;  %v7064_v10 = vsel %vm9327_vm14, %v6985_v30, %v6972_v3  ;;  %v7071_v52 = vsel %vm3323_vm7, %v6999_v4, %v6979_v38  ;;  %v7074_v62 = vmul.f32 %v6857_v25, %v3337_v8  ;;  %v7077_v1 = vmul.f32 %v6737_v11, %v3270_v42  ;;  %v3476_v3 = vld [vmem:[#allocation2 + $0x200] sm:$0xff]  ;;  %v3406_v4 = vld [vmem:[#allocation2 + $0x190] sm:$0xff]  ;;  %v3473_v38 = vld [vmem:[#allocation2 + $0x1e8] sm:$0xff] }
 0x7b2   :  { %9464 = vst [vmem:[#allocation45_spill] sm:$0xff] %v7044_v51  ;;  %9466 = vst [vmem:[#allocation47_spill] sm:$0xff] %v7064_v10  ;;  %vm9337_vm11 = vcmp.gt.f32.partialorder %v7044_v51, %v7028_v46  ;;  %v9469_v30 = vsub.s32 5, %v6621_v63  ;;  %v7091_v8 = vsel %vm3390_vm1, %v7007_v57, %v6996_v31  ;;  %v7094_v42 = vmul.f32 %v6857_v25, %v3341_v26  ;;  %v3371_v26 = vld [vmem:[#allocation2 + $0x158] sm:$0xff] }
 0x7b3   :  { %9467 = vst [vmem:[#allocation48_spill] sm:$0xff] %v7074_v62  ;;  %9468 = vst [vmem:[#allocation49_spill] sm:$0xff] %v7077_v1  ;;  %vm3386_vm2 = vcmp.gt.f32.partialorder %v7050_v28, %v7041_v17  ;;  %v3294_v37 = vsel %vm3288_vm0, 4, %v3260_v23  ;;  %vm9342_vm14 = vcmp.gt.f32.partialorder %v7074_v62, %v7057_v50  ;;  %vm9340_vm9 = vcmp.gt.f32.partialorder %v7077_v1, %v7064_v10 }
 0x7b4   :  { %v7084_v49 = vrot.slane %v6570_v13, %v9469_v30  ;;  %v7102_v30 = vmul.f32 %v7015_v39, %v3408_v22  ;;  %v7110_v56 = vrot.slane %v6589_v36, %v6654_v2  ;;  %v7113_v29 = vmul.f32 %v7019_v0, %v3442_v59 }
 0x7b5   :  { %vm3357_vm0 = vcmp.gt.f32.partialorder %v7094_v42, %v7071_v52  ;;  %v7122_v22 = vsel %vm9337_vm11, %v7044_v51, %v7028_v46  ;;  %v7127_v2 = vmul.f32 %v7034_v24, %v3476_v3  ;;  %v7134_v21 = vsel %vm3386_vm2, %v7050_v28, %v7041_v17 }
 0x7b6   :  { %9470 = vst [vmem:[#allocation50_spill] sm:$0xff] %v7122_v22  ;;  %vm3424_vm4 = vcmp.gt.f32.partialorder %v7102_v30, %v7091_v8  ;;  %v7137_v23 = vmul.f32 %v6737_v11, %v3271_v43  ;;  %v3328_v59 = vsel %vm3322_vm13, 5, %v3294_v37  ;;  %v7143_v36 = vmul.f32 %v7015_v39, %v3404_v5  ;;  %v3576_v43 = vld [vmem:[#allocation2 + $0x280] sm:$0xff]  ;;  %v3305_v5 = vld [vmem:[#allocation2 + $0x108] sm:$0xff] }
 0x7b7   :  { %v7150_v3 = vsel %vm9342_vm14, %v7074_v62, %v7057_v50  ;;  %v7157_v11 = vsel %vm9340_vm9, %v7077_v1, %v7064_v10  ;;  %v7164_v48 = vsel %vm3357_vm0, %v7094_v42, %v7071_v52  ;;  %v7167_v55 = vmul.f32 %v6941_v20, %v3371_v26  ;;  %v3511_v42 = vld [vmem:[#allocation2 + $0x238] sm:$0xff] }
 0x7b8   :  { %9471 = vst [vmem:[#allocation51_spill] sm:$0xff] %v7137_v23  ;;  %9472 = vst [vmem:[#allocation52_spill] sm:$0xff] %v7157_v11  ;;  %v7170_v37 = vmul.f32 %v6793_v35, %v3304_v16  ;;  %vm9350_vm13 = vcmp.gt.f32.partialorder %v7137_v23, %v7122_v22  ;;  %v7179_v46 = vsel %vm3424_vm4, %v7102_v30, %v7091_v8  ;;  %v3193_v26 = vsel %vm3187_vm10, 1, %v9456_v32  ;;  %v3438_v16 = vld [vmem:[#allocation2 + $0x1b0] sm:$0xff] }
 0x7b9   :  { %v7186_v51 = vmul.f32 %v6941_v20, %v3375_v14  ;;  %vm3420_vm11 = vcmp.gt.f32.partialorder %v7143_v36, %v7134_v21  ;;  %v3362_v10 = vsel %vm3356_vm12, 6, %v3328_v59  ;;  %v7195_v1 = vrot.slane %v6570_v13, %v6675_v9  ;;  %v3409_v59 = vld [vmem:[#allocation2 + $0x1a8] sm:$0xff]  ;;  %v3510_v9 = vld [vmem:[#allocation2 + $0x230] sm:$0xff] }
 0x7ba   :  { %9473 = vst [vmem:[#allocation53_spill] sm:$0xff] %v7170_v37  ;;  %vm9352_vm9 = vcmp.gt.f32.partialorder %v7167_v55, %v7150_v3  ;;  %vm9351_vm10 = vcmp.gt.f32.partialorder %v7170_v37, %v7157_v11  ;;  %v7202_v14 = vmul.f32 %v7084_v49, %v3576_v43  ;;  %v9475_v50 = vsub.s32 4, %v6621_v63 }
 0x7bb   :  { %vm3391_vm12 = vcmp.gt.f32.partialorder %v7186_v51, %v7164_v48  ;;  %v7216_v60 = vsel %vm9350_vm13, %v7137_v23, %v7122_v22  ;;  %vm3458_vm14 = vcmp.gt.f32.partialorder %v7113_v29, %v7179_v46  ;;  %v3227_v43 = vsel %vm3221_vm15, 2, %v3193_v26  ;;  %v3544_v22 = vld [vmem:[#allocation2 + $0x260] sm:$0xff] }
 0x7bc   :  { %9474 = vst [vmem:[#allocation54_spill] sm:$0xff] %v7202_v14  ;;  %v7207_v12 = vrot.slane %v6570_v13, %v9475_v50  ;;  %9476 = vst [vmem:[#allocation55_spill] sm:$0xff] %v7216_v60  ;;  %v7228_v50 = vsel %vm3420_vm11, %v7143_v36, %v7134_v21  ;;  %v7231_v14 = vmul.f32 %v6793_v35, %v3305_v5  ;;  %v3396_v23 = vsel %vm3390_vm1, 7, %v3362_v10  ;;  %v3577_v35 = vld [vmem:[#allocation2 + $0x288] sm:$0xff]  ;;  %v3339_v5 = vld [vmem:[#allocation2 + $0x138] sm:$0xff] }
 0x7bd   :  { %v7237_v62 = vmul.f32 %v7019_v0, %v3438_v16  ;;  %v7244_v6 = vsel %vm9352_vm9, %v7167_v55, %v7150_v3  ;;  %v7251_v19 = vsel %vm9351_vm10, %v7170_v37, %v7157_v11  ;;  %v7258_v31 = vsel %vm3391_vm12, %v7186_v51, %v7164_v48  ;;  %v3440_v51 = vld [vmem:[#allocation2 + $0x1c0] sm:$0xff]  ;;  %v3507_v48 = vld [vmem:[#allocation2 + $0x218] sm:$0xff] }
 0x7be   :  { %9477 = vst [vmem:[#allocation56_spill] sm:$0xff] %v7231_v14  ;;  %9478 = vst [vmem:[#allocation57_spill] sm:$0xff] %v7251_v19  ;;  %v7261_v57 = vmul.f32 %v7015_v39, %v3405_v54  ;;  %v7264_v10 = vmul.f32 %v6857_v25, %v3338_v47  ;;  %vm9358_vm1 = vcmp.gt.f32.partialorder %v7231_v14, %v7216_v60  ;;  %v3261_v16 = vsel %vm3255_vm5, 3, %v3227_v43  ;;  %v3472_v47 = vld [vmem:[#allocation2 + $0x1e0] sm:$0xff] }
 0x7bf   :  { %v7273_v26 = vsel %vm3458_vm14, %v7113_v29, %v7179_v46  ;;  %v7279_v54 = vmul.f32 %v7015_v39, %v3409_v59  ;;  %vm3454_vm15 = vcmp.gt.f32.partialorder %v7237_v62, %v7228_v50  ;;  %v7284_v11 = vmul.f32 %v7195_v1, %v3510_v9 }
 0x7c0   :  { %9479 = vst [vmem:[#allocation58_spill] sm:$0xff] %v7264_v10  ;;  %v7287_v37 = vmul.f32 %v7207_v12, %v3544_v22  ;;  %vm3421_vm13 = vcmp.gt.f32.partialorder %v7261_v57, %v7244_v6  ;;  %vm3354_vm10 = vcmp.gt.f32.partialorder %v7264_v10, %v7251_v19  ;;  %v7294_v59 = vmul.f32 %v7084_v49, %v3577_v35  ;;  %v3443_v22 = vld [vmem:[#allocation2 + $0x1d8] sm:$0xff] }
 0x7c1   :  { %v3430_v43 = vsel %vm3424_vm4, 8, %v3396_v23  ;;  %vm3425_vm5 = vcmp.gt.f32.partialorder %v7279_v54, %v7258_v31  ;;  %v7306_v9 = vsel %vm9358_vm1, %v7231_v14, %v7216_v60  ;;  %vm3492_vm9 = vcmp.gt.f32.partialorder %v7127_v2, %v7273_v26  ;;  %v3747_v23 = vld [vmem:[#allocation2 + $0x378] sm:$0xff] }
 0x7c2   :  { %9480 = vst [vmem:[#allocation59_spill] sm:$0xff] %v7294_v59  ;;  %9481 = vst [vmem:[#allocation60_spill] sm:$0xff] %v7306_v9  ;;  %v3295_v35 = vsel %vm3289_vm6, 4, %v3261_v16  ;;  %v7318_v8 = vsel %vm3454_vm15, %v7237_v62, %v7228_v50  ;;  %v7321_v30 = vmul.f32 %v6857_v25, %v3339_v5  ;;  %v3188_v59 = vsel %vm3182_vm3, 1, %v9456_v32  ;;  %v3373_v16 = vld [vmem:[#allocation2 + $0x168] sm:$0xff] }
 0x7c3   :  { %v7328_v60 = vmul.f32 %v7034_v24, %v3472_v47  ;;  %v7335_v27 = vsel %vm3421_vm13, %v7261_v57, %v7244_v6  ;;  %v7342_v25 = vsel %vm3354_vm10, %v7264_v10, %v7251_v19  ;;  %v7349_v41 = vsel %vm3425_vm5, %v7279_v54, %v7258_v31  ;;  %v9495_v31 = vld [vmem:[#allocation19_spill] sm:$0xff]  ;;  %v9550_v6 = vld [vmem:[#allocation50_spill] sm:$0xff] }
 0x7c4   :  { %9482 = vst [vmem:[#allocation61_spill] sm:$0xff] %v7321_v30  ;;  %v7352_v45 = vmul.f32 %v7019_v0, %v3439_v53  ;;  %v7355_v5 = vmul.f32 %v6941_v20, %v3372_v44  ;;  %vm9361_vm3 = vcmp.gt.f32.partialorder %v7321_v30, %v7306_v9  ;;  %v7364_v47 = vsel %vm3492_vm9, %v7127_v2, %v7273_v26  ;;  %v3506_v44 = vld [vmem:[#allocation2 + $0x210] sm:$0xff] }
 0x7c5   :  { %v3329_v14 = vsel %vm3323_vm7, 5, %v3295_v35  ;;  %v3453_v53 = vmul.f32 %v7019_v0, %v3443_v22  ;;  %vm3488_vm6 = vcmp.gt.f32.partialorder %v7328_v60, %v7318_v8  ;;  %v7373_v19 = vmul.f32 %v7110_v56, %v3747_v23 }
 0x7c6   :  { %v3222_v10 = vsel %vm3216_vm8, 2, %v3188_v59  ;;  %vm9363_vm4 = vcmp.gt.f32.partialorder %v7352_v45, %v7335_v27  ;;  %vm9362_vm1 = vcmp.gt.f32.partialorder %v7355_v5, %v7342_v25  ;;  %v3464_v22 = vsel %vm3458_vm14, 9, %v3430_v43  ;;  %v3748_v59 = vld [vmem:[#allocation2 + $0x380] sm:$0xff] }
 0x7c7   :  { %9483 = vst [vmem:[#allocation62_spill] sm:$0xff] %v7373_v19  ;;  %v7386_v35 = vmul.f32 %v7084_v49, %v3578_v33  ;;  %vm3459_vm7 = vcmp.gt.f32.partialorder %v3453_v53, %v7349_v41  ;;  %v7394_v34 = vsel %vm9361_vm3, %v7321_v30, %v7306_v9  ;;  %vm3526_vm8 = vcmp.gt.f32.partialorder %v7284_v11, %v7364_v47  ;;  %v9502_v30 = vld [vmem:[#allocation20_spill] sm:$0xff] }
 0x7c8   :  { %9484 = vst [vmem:[#allocation63_spill] sm:$0xff] %v7394_v34  ;;  %v3363_v29 = vsel %vm3357_vm0, 6, %v3329_v14  ;;  %v7406_v46 = vsel %vm3488_vm6, %v7328_v60, %v7318_v8  ;;  %v7409_v43 = vmul.f32 %v6941_v20, %v3373_v16  ;;  %vm9486_vm14 = vcmp.gt.f32.partialorder %v6748_v61, %v6744_v7  ;;  %v3540_v16 = vld [vmem:[#allocation2 + $0x240] sm:$0xff] }
 0x7c9   :  { %v3256_v23 = vsel %vm9486_vm14, 3, %v3222_v10  ;;  %v7415_v33 = vmul.f32 %v7195_v1, %v3506_v44  ;;  %v7422_v52 = vsel %vm9363_vm4, %v7352_v45, %v7335_v27  ;;  %v7429_v20 = vsel %vm9362_vm1, %v7355_v5, %v7342_v25  ;;  %v3407_v10 = vld [vmem:[#allocation2 + $0x198] sm:$0xff]  ;;  %v9534_v8 = vld [vmem:[#allocation49_spill] sm:$0xff] }
 0x7ca   :  { %9485 = vst [vmem:[#allocation64_spill] sm:$0xff] %v7409_v43  ;;  %9487 = vst [vmem:[#allocation65_spill] sm:$0xff] %v7422_v52  ;;  %v3471_v7 = vsel %vm3459_vm7, %v3453_v53, %v7349_v41  ;;  %v7435_v61 = vmul.f32 %v7034_v24, %v3473_v38  ;;  %v7438_v14 = vmul.f32 %v7015_v39, %v3406_v4  ;;  %v3397_v19 = vsel %vm3391_vm12, 7, %v3363_v29  ;;  %v3541_v41 = vld [vmem:[#allocation2 + $0x248] sm:$0xff] }
 0x7cb   :  { %9488 = vst [vmem:[#allocation66_spill] sm:$0xff] %v7429_v20  ;;  %vm9370_vm0 = vcmp.gt.f32.partialorder %v7409_v43, %v7394_v34  ;;  %v7443_v44 = vmul.f32 %v7110_v56, %v3748_v59  ;;  %v3487_v9 = vmul.f32 %v7034_v24, %v3477_v18  ;;  %vm3522_vm14 = vcmp.gt.f32.partialorder %v7415_v33, %v7406_v46 }
 0x7cc   :  { %9489 = vst [vmem:[#allocation67_spill] sm:$0xff] %v7438_v14  ;;  %v3498_v4 = vsel %vm3492_vm9, 10, %v3464_v22  ;;  %vm9491_vm3 = vcmp.gt.f32.partialorder %v6804_v40, %v6800_v15  ;;  %vm9373_vm1 = vcmp.gt.f32.partialorder %v7435_v61, %v7422_v52  ;;  %vm9372_vm4 = vcmp.gt.f32.partialorder %v7438_v14, %v7429_v20  ;;  %v3545_v40 = vld [vmem:[#allocation2 + $0x268] sm:$0xff] }
 0x7cd   :  { %9490 = vst [vmem:[#allocation68_spill] sm:$0xff] %v7443_v44  ;;  %v3290_v38 = vsel %vm9491_vm3, 4, %v3256_v23  ;;  %v3538_v18 = vsel %vm3526_vm8, %v7284_v11, %v7364_v47  ;;  %vm3493_vm12 = vcmp.gt.f32.partialorder %v3487_v9, %v3471_v7  ;;  %v3521_v2 = vmul.f32 %v7195_v1, %v3511_v42  ;;  %v9493_v23 = vld [vmem:[#allocation27_spill] sm:$0xff] }
 0x7ce   :  { %v7472_v15 = vsel %vm9370_vm0, %v7409_v43, %v7394_v34  ;;  %v3431_v26 = vsel %vm3425_vm5, 8, %v3397_v19  ;;  %v7482_v22 = vsel %vm3522_vm14, %v7415_v33, %v7406_v46  ;;  %v7485_v59 = vmul.f32 %v7207_v12, %v3540_v16  ;;  %v9496_v19 = vld [vmem:[#allocation18_spill] sm:$0xff]  ;;  %v3474_v11 = vld [vmem:[#allocation2 + $0x1f0] sm:$0xff]  ;;  %v3643_v33 = vld [vmem:[#allocation2 + $0x2d8] sm:$0xff] }
 0x7cf   :  { %9492 = vst [vmem:[#allocation69_spill] sm:$0xff] %v7472_v15  ;;  %v7488_v29 = vmul.f32 %v7015_v39, %v3407_v10  ;;  %vm9494_vm9 = vcmp.gt.f32.partialorder %v6871_v58, %v9493_v23  ;;  %vm9497_vm5 = vcmp.gt.f32.partialorder %v9495_v31, %v9496_v19  ;;  %v7502_v44 = vsel %vm9373_vm1, %v7435_v61, %v7422_v52  ;;  %v3579_v10 = vld [vmem:[#allocation2 + $0x298] sm:$0xff]  ;;  %v3441_v23 = vld [vmem:[#allocation2 + $0x1c8] sm:$0xff]  ;;  %v3574_v31 = vld [vmem:[#allocation2 + $0x270] sm:$0xff] }
 0x7d0   :  { %v3324_v42 = vsel %vm9494_vm9, 5, %v3290_v38  ;;  %v3189_v54 = vsel %vm9497_vm5, 1, %v9456_v32  ;;  %v7509_v39 = vsel %vm9372_vm4, %v7438_v14, %v7429_v20  ;;  %v3505_v58 = vsel %vm3493_vm12, %v3487_v9, %v3471_v7  ;;  %v9501_v14 = vld [vmem:[#allocation21_spill] sm:$0xff]  ;;  %v9506_v9 = vld [vmem:[#allocation22_spill] sm:$0xff] }
 0x7d1   :  { %v7513_v16 = vmul.f32 %v7195_v1, %v3507_v48  ;;  %v7516_v38 = vmul.f32 %v7019_v0, %v3440_v51  ;;  %vm9374_vm3 = vcmp.gt.f32.partialorder %v7488_v29, %v7472_v15  ;;  %v3532_v19 = vsel %vm3526_vm8, 11, %v3498_v4  ;;  %v9498_v51 = vld [vmem:[#allocation38_spill] sm:$0xff]  ;;  %v9499_v48 = vld [vmem:[#allocation36_spill] sm:$0xff] }
 0x7d2   :  { %v3465_v34 = vsel %vm3459_vm7, 9, %v3431_v26  ;;  %v7526_v43 = vmul.f32 %v7207_v12, %v3545_v40  ;;  %vm3556_vm9 = vcmp.gt.f32.partialorder %v7485_v59, %v7482_v22  ;;  %vm9500_vm5 = vcmp.gt.f32.partialorder %v9498_v51, %v9499_v48  ;;  %v9509_v51 = vld [vmem:[#allocation25_spill] sm:$0xff]  ;;  %v9510_v48 = vld [vmem:[#allocation23_spill] sm:$0xff] }
 0x7d3   :  { %v3358_v20 = vsel %vm9500_vm5, 6, %v3324_v42  ;;  %vm9503_vm0 = vcmp.gt.f32.partialorder %v9501_v14, %v9502_v30  ;;  %vm3523_vm8 = vcmp.gt.f32.partialorder %v7513_v16, %v7502_v44  ;;  %vm9375_vm7 = vcmp.gt.f32.partialorder %v7516_v38, %v7509_v39  ;;  %v9505_v42 = vld [vmem:[#allocation24_spill] sm:$0xff] }
 0x7d4   :  { %v3223_v52 = vsel %vm9503_vm0, 2, %v3189_v54  ;;  %vm3560_vm4 = vcmp.gt.f32.partialorder %v7287_v37, %v3538_v18  ;;  %vm3527_vm1 = vcmp.gt.f32.partialorder %v3521_v2, %v3505_v58  ;;  %v7542_v47 = vmul.f32 %v7084_v49, %v3579_v10  ;;  %v3608_v10 = vld [vmem:[#allocation2 + $0x2a0] sm:$0xff] }
 0x7d5   :  { %v7549_v30 = vsel %vm9374_vm3, %v7488_v29, %v7472_v15  ;;  %v3499_v53 = vsel %vm3493_vm12, 10, %v3465_v34  ;;  %v7557_v14 = vsel %vm3556_vm9, %v7485_v59, %v7482_v22  ;;  %v7560_v4 = vmul.f32 %v7084_v49, %v3574_v31  ;;  %v3575_v15 = vld [vmem:[#allocation2 + $0x278] sm:$0xff] }
 0x7d6   :  { %9504 = vst [vmem:[#allocation27_spill] sm:$0xff] %v7549_v30  ;;  %v7563_v40 = vmul.f32 %v7019_v0, %v3441_v23  ;;  %v3392_v26 = vsel %vm3386_vm2, 7, %v3358_v20  ;;  %vm9507_vm0 = vcmp.gt.f32.partialorder %v9505_v42, %v9506_v9  ;;  %v7576_v7 = vsel %vm3523_vm8, %v7513_v16, %v7502_v44  ;;  %v3475_v20 = vld [vmem:[#allocation2 + $0x1f8] sm:$0xff]  ;;  %v9512_v42 = vld [vmem:[#allocation31_spill] sm:$0xff] }
 0x7d7   :  { %v3257_v34 = vsel %vm9507_vm0, 3, %v3223_v52  ;;  %v7583_v0 = vsel %vm9375_vm7, %v7516_v38, %v7509_v39  ;;  %v3539_v28 = vsel %vm3527_vm1, %v3521_v2, %v3505_v58  ;;  %v7587_v17 = vmul.f32 %v7207_v12, %v3541_v41  ;;  %v9516_v2 = vld [vmem:[#allocation30_spill] sm:$0xff]  ;;  %v9570_v44 = vld [vmem:[#allocation64_spill] sm:$0xff]  ;;  %v9571_v16 = vld [vmem:[#allocation63_spill] sm:$0xff] }
 0x7d8   :  { %v7590_v52 = vmul.f32 %v7034_v24, %v3474_v11  ;;  %vm9379_vm2 = vcmp.gt.f32.partialorder %v7563_v40, %v7549_v30  ;;  %v3566_v54 = vsel %vm3560_vm4, 12, %v3532_v19  ;;  %vm3590_vm12 = vcmp.gt.f32.partialorder %v7560_v4, %v7557_v14  ;;  %v9513_v19 = vld [vmem:[#allocation29_spill] sm:$0xff] }
 0x7d9   :  { %v9508_v23 = vsub.s32 6, %v6621_v63  ;;  %vm9511_vm5 = vcmp.gt.f32.partialorder %v9509_v51, %v9510_v48  ;;  %v3426_v41 = vsel %vm3420_vm11, 8, %v3392_v26  ;;  %vm9514_vm0 = vcmp.gt.f32.partialorder %v9512_v42, %v9513_v19  ;;  %v9518_v48 = vld [vmem:[#allocation41_spill] sm:$0xff]  ;;  %v9519_v42 = vld [vmem:[#allocation39_spill] sm:$0xff] }
 0x7da   :  { %v3190_v11 = vsel %vm9511_vm5, 1, %v9456_v32  ;;  %v3291_v9 = vsel %vm9514_vm0, 4, %v3257_v34  ;;  %vm3557_vm3 = vcmp.gt.f32.partialorder %v7587_v17, %v7576_v7  ;;  %vm9380_vm7 = vcmp.gt.f32.partialorder %v7590_v52, %v7583_v0 }
 0x7db   :  { %v7601_v31 = vrot.slane %v6570_v13, %v9508_v23  ;;  %v3508_v23 = vld [vmem:[#allocation2 + $0x220] sm:$0xff]  ;;  %v7620_v51 = vsel %vm3560_vm4, %v7287_v37, %v3538_v18  ;;  %v3533_v36 = vsel %vm3527_vm1, 11, %v3499_v53  ;;  %vm3561_vm11 = vcmp.gt.f32.partialorder %v7526_v43, %v3539_v28  ;;  %v9515_v18 = vld [vmem:[#allocation32_spill] sm:$0xff] }
 0x7dc   :  { %v7629_v21 = vsel %vm9379_vm2, %v7563_v40, %v7549_v30  ;;  %v7636_v26 = vsel %vm3590_vm12, %v7560_v4, %v7557_v14  ;;  %vm9517_vm1 = vcmp.gt.f32.partialorder %v9515_v18, %v9516_v2  ;;  %v7645_v53 = vmul.f32 %v7034_v24, %v3475_v20  ;;  %v9521_v20 = vld [vmem:[#allocation28_spill] sm:$0xff]  ;;  %v9525_v18 = vld [vmem:[#allocation42_spill] sm:$0xff]  ;;  %v3612_v4 = vld [vmem:[#allocation2 + $0x2c0] sm:$0xff] }
 0x7dd   :  { %v7639_v37 = vmul.f32 %v7601_v31, %v3608_v10  ;;  %v3224_v58 = vsel %vm9517_vm1, 2, %v3190_v11  ;;  %v3460_v34 = vsel %vm3454_vm15, 9, %v3426_v41  ;;  %vm9520_vm4 = vcmp.gt.f32.partialorder %v9518_v48, %v9519_v42  ;;  %v9522_v11 = vld [vmem:[#allocation26_spill] sm:$0xff]  ;;  %v9526_v2 = vld [vmem:[#allocation40_spill] sm:$0xff]  ;;  %v3642_v42 = vld [vmem:[#allocation2 + $0x2d0] sm:$0xff] }
 0x7de   :  { %v3325_v19 = vsel %vm9520_vm4, 5, %v3291_v9  ;;  %v7658_v10 = vsel %vm3557_vm3, %v7587_v17, %v7576_v7  ;;  %v7665_v24 = vsel %vm9380_vm7, %v7590_v52, %v7583_v0  ;;  %v7668_v62 = vmul.f32 %v7084_v49, %v3575_v15  ;;  %v3509_v9 = vld [vmem:[#allocation2 + $0x228] sm:$0xff]  ;;  %v3646_v17 = vld [vmem:[#allocation2 + $0x2f0] sm:$0xff] }
 0x7df   :  { %v7671_v50 = vmul.f32 %v7195_v1, %v3508_v23  ;;  %vm9523_vm15 = vcmp.gt.f32.partialorder %v9521_v20, %v9522_v11  ;;  %vm9381_vm5 = vcmp.gt.f32.partialorder %v7645_v53, %v7629_v21  ;;  %vm3594_vm0 = vcmp.gt.f32.partialorder %v7386_v35, %v7620_v51  ;;  %v3609_v23 = vld [vmem:[#allocation2 + $0x2a8] sm:$0xff]  ;;  %v9528_v11 = vld [vmem:[#allocation48_spill] sm:$0xff] }
 0x7e0   :  { %v3191_v41 = vsel %vm9523_vm15, 1, %v9456_v32  ;;  %vm3624_vm1 = vcmp.gt.f32.partialorder %v7639_v37, %v7636_v26  ;;  %v9524_v49 = vsub.s32 7, %v6621_v63  ;;  %vm9527_vm4 = vcmp.gt.f32.partialorder %v9525_v18, %v9526_v2  ;;  %v9529_v32 = vld [vmem:[#allocation46_spill] sm:$0xff]  ;;  %v3542_v63 = vld [vmem:[#allocation2 + $0x250] sm:$0xff] }
 0x7e1   :  { %v3258_v48 = vsel %vm9527_vm4, 3, %v3224_v58  ;;  %v3567_v20 = vsel %vm3561_vm11, 12, %v3533_v36  ;;  %vm9530_vm15 = vcmp.gt.f32.partialorder %v9528_v11, %v9529_v32  ;;  %vm3591_vm2 = vcmp.gt.f32.partialorder %v7668_v62, %v7658_v10  ;;  %v9531_v58 = vld [vmem:[#allocation37_spill] sm:$0xff]  ;;  %v9532_v18 = vld [vmem:[#allocation35_spill] sm:$0xff] }
 0x7e2   :  { %v7686_v15 = vrot.slane %v6570_v13, %v9524_v49  ;;  %v3359_v30 = vsel %vm9530_vm15, 6, %v3325_v19  ;;  %vm3524_vm7 = vcmp.gt.f32.partialorder %v7671_v50, %v7665_v24  ;;  %v7703_v49 = vsel %vm3561_vm11, %v7526_v43, %v3539_v28  ;;  %v9535_v28 = vld [vmem:[#allocation47_spill] sm:$0xff] }
 0x7e3   :  { %v3494_v36 = vsel %vm3488_vm6, 10, %v3460_v34  ;;  %vm9533_vm4 = vcmp.gt.f32.partialorder %v9531_v58, %v9532_v18  ;;  %v7716_v19 = vsel %vm9381_vm5, %v7645_v53, %v7629_v21  ;;  %v7723_v43 = vsel %vm3624_vm1, %v7639_v37, %v7636_v26  ;;  %v9541_v58 = vld [vmem:[#allocation13_spill] sm:$0xff]  ;;  %v9542_v18 = vld [vmem:[#allocation11_spill] sm:$0xff] }
 0x7e4   :  { %v3225_v32 = vsel %vm9533_vm4, 2, %v3191_v41  ;;  %v7726_v60 = vmul.f32 %v7601_v31, %v3609_v23  ;;  %vm9536_vm6 = vcmp.gt.f32.partialorder %v9534_v8, %v9535_v28  ;;  %v7732_v41 = vmul.f32 %v7195_v1, %v3509_v9  ;;  %v9544_v28 = vld [vmem:[#allocation52_spill] sm:$0xff] }
 0x7e5   :  { %v3292_v34 = vsel %vm9536_vm6, 4, %v3258_v48  ;;  %v7735_v2 = vmul.f32 %v7686_v15, %v3642_v42  ;;  %vm9537_vm11 = vcmp.gt.f32.partialorder %v7167_v55, %v7150_v3  ;;  %v7745_v23 = vsel %vm3591_vm2, %v7668_v62, %v7658_v10  ;;  %v9538_v55 = vld [vmem:[#allocation45_spill] sm:$0xff]  ;;  %v3543_v48 = vld [vmem:[#allocation2 + $0x258] sm:$0xff] }
 0x7e6   :  { %v3393_v11 = vsel %vm9537_vm11, 7, %v3359_v30  ;;  %v7752_v1 = vsel %vm3524_vm7, %v7671_v50, %v7665_v24  ;;  %vm3595_vm15 = vcmp.gt.f32.partialorder %v7542_v47, %v7703_v49  ;;  %v7757_v3 = vmul.f32 %v7207_v12, %v3542_v63  ;;  %v9539_v30 = vld [vmem:[#allocation44_spill] sm:$0xff]  ;;  %v9543_v63 = vld [vmem:[#allocation53_spill] sm:$0xff] }
 0x7e7   :  { %vm9540_vm4 = vcmp.gt.f32.partialorder %v9538_v55, %v9539_v30  ;;  %vm9384_vm6 = vcmp.gt.f32.partialorder %v7732_v41, %v7716_v19  ;;  %v3528_v42 = vsel %vm3522_vm14, 11, %v3494_v36  ;;  %vm3658_vm11 = vcmp.gt.f32.partialorder %v7735_v2, %v7723_v43  ;;  %v3744_v36 = vld [vmem:[#allocation2 + $0x360] sm:$0xff]  ;;  %v3779_v24 = vld [vmem:[#allocation2 + $0x398] sm:$0xff] }
 0x7e8   :  { %v3259_v9 = vsel %vm9540_vm4, 3, %v3225_v32  ;;  %v7771_v8 = vrot.slane %v9542_v18, %v9541_v58  ;;  %vm9545_vm5 = vcmp.gt.f32.partialorder %v9543_v63, %v9544_v28  ;;  %v3676_v32 = vld [vmem:[#allocation2 + $0x300] sm:$0xff]  ;;  %v7779_v30 = vsel %vm3594_vm0, 13, %v3566_v54  ;;  %v9548_v58 = vld [vmem:[#allocation15_spill] sm:$0xff] }
 0x7e9   :  { %v3326_v55 = vsel %vm9545_vm5, 5, %v3292_v34  ;;  %9546 = vst [vmem:[#allocation19_spill] sm:$0xff] %v7779_v30  ;;  %v3427_v46 = vsel %vm3421_vm13, 8, %v3393_v11  ;;  %vm3625_vm14 = vcmp.gt.f32.partialorder %v7726_v60, %v7745_v23  ;;  %vm9385_vm4 = vcmp.gt.f32.partialorder %v7757_v3, %v7752_v1  ;;  %v9549_v63 = vld [vmem:[#allocation51_spill] sm:$0xff]  ;;  %v9558_v30 = vld [vmem:[#allocation17_spill] sm:$0xff] }
 0x7ea   :  { %v7791_v34 = vsel %vm3595_vm15, 13, %v3567_v20  ;;  %v7795_v54 = vrot.slane %v9542_v18, %v9548_v58  ;;  %vm9551_vm13 = vcmp.gt.f32.partialorder %v9549_v63, %v9550_v6  ;;  %v7805_v11 = vsel %vm9384_vm6, %v7732_v41, %v7716_v19  ;;  %v3677_v63 = vld [vmem:[#allocation2 + $0x308] sm:$0xff] }
 0x7eb   :  { %9547 = vst [vmem:[#allocation18_spill] sm:$0xff] %v7791_v34  ;;  %v3293_v57 = vsel %vm9551_vm13, 4, %v3259_v9  ;;  %v3562_v20 = vsel %vm3556_vm9, 12, %v3528_v42  ;;  %v3670_v28 = vsel %vm3658_vm11, %v7735_v2, %v7723_v43  ;;  %v3360_v9 = vsel %vm3354_vm10, 6, %v3326_v55  ;;  %v3710_v42 = vld [vmem:[#allocation2 + $0x330] sm:$0xff] }
 0x7ec   :  { %v7819_v6 = vmul.f32 %v7207_v12, %v3543_v48  ;;  %v3686_v13 = vmul.f32 %v7771_v8, %v3676_v32  ;;  %vm9554_vm5 = vcmp.gt.f32.partialorder %v7352_v45, %v7335_v27  ;;  %v7830_v59 = vsel %vm3625_vm14, %v7726_v60, %v7745_v23  ;;  %v3610_v48 = vld [vmem:[#allocation2 + $0x2b0] sm:$0xff]  ;;  %v9555_v32 = vld [vmem:[#allocation56_spill] sm:$0xff]  ;;  %v3680_v23 = vld [vmem:[#allocation2 + $0x320] sm:$0xff] }
 0x7ed   :  { %v3461_v22 = vsel %vm9554_vm5, 9, %v3427_v46  ;;  %v7837_v12 = vsel %vm9385_vm4, %v7757_v3, %v7752_v1  ;;  %v7840_v55 = vmul.f32 %v7110_v56, %v3744_v36  ;;  %v3778_v27 = vld [vmem:[#allocation2 + $0x390] sm:$0xff]  ;;  %v7843_v45 = vmul.f32 %v7686_v15, %v3643_v33 }
 0x7ee   :  { %v9556_v46 = vld [vmem:[#allocation55_spill] sm:$0xff]  ;;  %vm3559_vm9 = vcmp.gt.f32.partialorder %v7819_v6, %v7805_v11  ;;  %v3596_v34 = vsel %vm3590_vm12, 13, %v3562_v20  ;;  %vm3692_vm13 = vcmp.gt.f32.partialorder %v3686_v13, %v3670_v28  ;;  %v7855_v36 = vrot.slane %v9542_v18, %v9558_v30 }
 0x7ef   :  { %vm9557_vm10 = vcmp.gt.f32.partialorder %v9555_v32, %v9556_v46  ;;  %vm9559_vm5 = vcmp.gt.f32.partialorder %v7355_v5, %v7342_v25  ;;  %v9560_v32 = vld [vmem:[#allocation65_spill] sm:$0xff]  ;;  %vm3659_vm6 = vcmp.gt.f32.partialorder %v7843_v45, %v7830_v59  ;;  %v9562_v46 = vld [vmem:[#allocation54_spill] sm:$0xff]  ;;  %v7868_v14 = vmul.f32 %v7601_v31, %v3610_v48  ;;  %v9565_v5 = vld [vmem:[#allocation60_spill] sm:$0xff] }
 0x7f0   :  { %v3327_v58 = vsel %vm9557_vm10, 5, %v3293_v57  ;;  %v3394_v33 = vsel %vm9559_vm5, 7, %v3360_v9  ;;  %vm9561_vm10 = vcmp.gt.f32.partialorder %v7435_v61, %v9560_v32  ;;  %vm3592_vm4 = vcmp.gt.f32.partialorder %v9562_v46, %v7837_v12  ;;  %v9564_v25 = vld [vmem:[#allocation61_spill] sm:$0xff]  ;;  %v3711_v48 = vld [vmem:[#allocation2 + $0x338] sm:$0xff] }
 0x7f1   :  { %v3495_v57 = vsel %vm9561_vm10, 10, %v3461_v22  ;;  %v3720_v30 = vmul.f32 %v7795_v54, %v3710_v42  ;;  %v7872_v20 = vmul.f32 %v7855_v36, %v3778_v27  ;;  %vm9566_vm12 = vcmp.gt.f32.partialorder %v9564_v25, %v9565_v5  ;;  %v3611_v22 = vld [vmem:[#allocation2 + $0x2b8] sm:$0xff]  ;;  %v9567_v25 = vld [vmem:[#allocation67_spill] sm:$0xff] }
 0x7f2   :  { %v3361_v61 = vsel %vm9566_vm12, 6, %v3327_v58  ;;  %v7882_v9 = vsel %vm3559_vm9, %v7819_v6, %v7805_v11  ;;  %v3630_v42 = vsel %vm3624_vm1, 14, %v3596_v34  ;;  %v3704_v27 = vsel %vm3692_vm13, %v3686_v13, %v3670_v28  ;;  %v9568_v58 = vld [vmem:[#allocation66_spill] sm:$0xff]  ;;  %v3647_v28 = vld [vmem:[#allocation2 + $0x2f8] sm:$0xff] }
 0x7f3   :  { %9563 = vst [vmem:[#allocation38_spill] sm:$0xff] %v7872_v20  ;;  %v7889_v32 = vmul.f32 %v7771_v8, %v3677_v63  ;;  %vm9569_vm5 = vcmp.gt.f32.partialorder %v9567_v25, %v9568_v58  ;;  %v3529_v18 = vsel %vm3523_vm8, 11, %v3495_v57  ;;  %v7902_v26 = vsel %vm3659_vm6, %v7843_v45, %v7830_v59  ;;  %v3613_v63 = vld [vmem:[#allocation2 + $0x2c8] sm:$0xff]  ;;  %v9573_v57 = vld [vmem:[#allocation59_spill] sm:$0xff]  ;;  %v3644_v58 = vld [vmem:[#allocation2 + $0x2e0] sm:$0xff] }
 0x7f4   :  { %v3428_v5 = vsel %vm9569_vm5, 8, %v3394_v33  ;;  %v7909_v37 = vsel %vm3592_vm4, %v9562_v46, %v7837_v12  ;;  %v7912_v34 = vmul.f32 %v7601_v31, %v3612_v4  ;;  %vm9572_vm1 = vcmp.gt.f32.partialorder %v9570_v44, %v9571_v16 }
 0x7f5   :  { %vm3626_vm8 = vcmp.gt.f32.partialorder %v7868_v14, %v7909_v37  ;;  %v3395_v33 = vsel %vm9572_vm1, 7, %v3361_v61  ;;  %vm3593_vm10 = vcmp.gt.f32.partialorder %v9573_v57, %v7882_v9  ;;  %v7922_v25 = vmul.f32 %v7601_v31, %v3611_v22 }
 0x7f6   :  { %v3664_v4 = vsel %vm3658_vm11, 15, %v3630_v42  ;;  %vm3726_vm12 = vcmp.gt.f32.partialorder %v3720_v30, %v3704_v27  ;;  %v7928_v20 = vmul.f32 %v7795_v54, %v3711_v48  ;;  %vm9574_vm5 = vcmp.gt.f32.partialorder %v7516_v38, %v7509_v39  ;;  %v9575_v38 = vld [vmem:[#allocation69_spill] sm:$0xff] }
 0x7f7   :  { %v3462_v44 = vsel %vm9574_vm5, 9, %v3428_v5  ;;  %v3563_v61 = vsel %vm3557_vm3, 12, %v3529_v18  ;;  %vm3693_vm1 = vcmp.gt.f32.partialorder %v7889_v32, %v7902_v26  ;;  %v7943_v43 = vsel %vm3594_vm0, %v7386_v35, %v7620_v51  ;;  %v3645_v18 = vld [vmem:[#allocation2 + $0x2e8] sm:$0xff] }
 0x7f8   :  { %v7946_v2 = vmul.f32 %v7601_v31, %v3613_v63  ;;  %v7953_v39 = vsel %vm3626_vm8, %v7868_v14, %v7909_v37  ;;  %vm9576_vm3 = vcmp.gt.f32.partialorder %v7488_v29, %v9575_v38  ;;  %v7963_v35 = vsel %vm3593_vm10, %v9573_v57, %v7882_v9  ;;  %v3745_v63 = vld [vmem:[#allocation2 + $0x368] sm:$0xff] }
 0x7f9   :  { %v3429_v7 = vsel %vm9576_vm3, 8, %v3395_v33  ;;  %vm3628_vm0 = vcmp.gt.f32.partialorder %v7912_v34, %v7943_v43  ;;  %v3698_v31 = vsel %vm3692_vm13, 16, %v3664_v4  ;;  %vm9577_vm11 = vcmp.gt.f32.partialorder %v7590_v52, %v7583_v0  ;;  %v9578_v52 = vld [vmem:[#allocation27_spill] sm:$0xff]  ;;  %v3681_v38 = vld [vmem:[#allocation2 + $0x328] sm:$0xff] }
 0x7fa   :  { %v3496_v51 = vsel %vm9577_vm11, 10, %v3462_v44  ;;  %v7972_v29 = vmul.f32 %v7686_v15, %v3644_v58  ;;  %vm3627_vm5 = vcmp.gt.f32.partialorder %v7922_v25, %v7963_v35  ;;  %v3738_v22 = vsel %vm3726_vm12, %v3720_v30, %v3704_v27  ;;  %v9583_v37 = vld [vmem:[#allocation38_spill] sm:$0xff] }
 0x7fb   :  { %v3597_v48 = vsel %vm3591_vm2, 13, %v3563_v61  ;;  %v3705_v13 = vsel %vm3693_vm1, %v7889_v32, %v7902_v26  ;;  %v7990_v0 = vsel %vm3595_vm15, %v7542_v47, %v7703_v49  ;;  %vm9579_vm3 = vcmp.gt.f32.partialorder %v7563_v40, %v9578_v52  ;;  %v3678_v47 = vld [vmem:[#allocation2 + $0x310] sm:$0xff]  ;;  %v3713_v26 = vld [vmem:[#allocation2 + $0x348] sm:$0xff] }
 0x7fc   :  { %vm3660_vm13 = vcmp.gt.f32.partialorder %v7972_v29, %v7953_v39  ;;  %v3463_v10 = vsel %vm9579_vm3, 9, %v3429_v7  ;;  %v8002_v62 = vsel %vm3628_vm0, %v7912_v34, %v7943_v43  ;;  %vm9388_vm2 = vcmp.gt.f32.partialorder %v7946_v2, %v7990_v0  ;;  %v3712_v7 = vld [vmem:[#allocation2 + $0x340] sm:$0xff]  ;;  %v9585_v57 = vld [vmem:[#allocation18_spill] sm:$0xff] }
 0x7fd   :  { %v3732_v49 = vsel %vm3726_vm12, 17, %v3698_v31  ;;  %v3530_v42 = vsel %vm3524_vm7, 11, %v3496_v51  ;;  %v8015_v40 = vsel %vm3627_vm5, %v7922_v25, %v7963_v35  ;;  %v3656_v5 = vmul.f32 %v7686_v15, %v3646_v17 }
 0x7fe   :  { %vm3760_vm15 = vcmp.gt.f32.partialorder %v7840_v55, %v3738_v22  ;;  %v3631_v30 = vsel %vm3625_vm14, 14, %v3597_v48  ;;  %vm3727_vm12 = vcmp.gt.f32.partialorder %v7928_v20, %v3705_v13  ;;  %v8024_v50 = vmul.f32 %v7686_v15, %v3645_v18  ;;  %v9584_v48 = vld [vmem:[#allocation19_spill] sm:$0xff] }
 0x7ff   :  { %v3672_v27 = vsel %vm3660_vm13, %v7972_v29, %v7953_v39  ;;  %vm9580_vm7 = vcmp.gt.f32.partialorder %v7645_v53, %v7629_v21  ;;  %vm3662_vm11 = vcmp.gt.f32.partialorder %v3656_v5, %v8002_v62  ;;  %v8040_v60 = vsel %vm9388_vm2, %v7946_v2, %v7990_v0  ;;  %v3679_v53 = vld [vmem:[#allocation2 + $0x318] sm:$0xff] }
 0x800   :  { %v3497_v16 = vsel %vm9580_vm7, 10, %v3463_v10  ;;  %vm9581_vm14 = vcmp.gt.f32.partialorder %v7757_v3, %v7752_v1  ;;  %v3688_v58 = vmul.f32 %v7771_v8, %v3678_v47  ;;  %vm3661_vm3 = vcmp.gt.f32.partialorder %v8024_v50, %v8015_v40 }
 0x801   :  { %v3564_v33 = vsel %vm9581_vm14, 12, %v3530_v42  ;;  %v3657_v21 = vmul.f32 %v7686_v15, %v3647_v28  ;;  %v8051_v4 = vsel %vm3760_vm15, 18, %v3732_v49  ;;  %v3665_v44 = vsel %vm3659_vm6, 15, %v3631_v30  ;;  %v3715_v28 = vld [vmem:[#allocation2 + $0x358] sm:$0xff] }
 0x802   :  { %v3755_v61 = vmul.f32 %v7110_v56, %v3745_v63  ;;  %v8058_v1 = vmul.f32 %v7855_v36, %v3779_v24  ;;  %vm3694_vm7 = vcmp.gt.f32.partialorder %v3688_v58, %v3672_v27  ;;  %vm9582_vm14 = vcmp.gt.f32.partialorder %v7732_v41, %v7716_v19  ;;  %v3749_v63 = vld [vmem:[#allocation2 + $0x388] sm:$0xff] }
 0x803   :  { %v3531_v3 = vsel %vm9582_vm14, 11, %v3497_v16  ;;  %v3674_v15 = vsel %vm3662_vm11, %v3656_v5, %v8002_v62  ;;  %vm3663_vm2 = vcmp.gt.f32.partialorder %v3657_v21, %v8040_v60  ;;  %v3739_v59 = vsel %vm3727_vm12, %v7928_v20, %v3705_v13  ;;  %v3746_v20 = vld [vmem:[#allocation2 + $0x370] sm:$0xff]  ;;  %v3781_v16 = vld [vmem:[#allocation2 + $0x3a8] sm:$0xff] }
 0x804   :  { %v3598_v45 = vsel %vm3592_vm4, 13, %v3564_v33  ;;  %v3673_v19 = vsel %vm3661_vm3, %v8024_v50, %v8015_v40  ;;  %v3690_v41 = vmul.f32 %v7771_v8, %v3680_v23  ;;  %v3772_v17 = vsel %vm3760_vm15, %v7840_v55, %v3738_v22  ;;  %v3714_v22 = vld [vmem:[#allocation2 + $0x350] sm:$0xff]  ;;  %v9587_v50 = vld [vmem:[#allocation12_spill] sm:$0xff] }
 0x805   :  { %v3699_v31 = vsel %vm3693_vm1, 16, %v3665_v44  ;;  %v3632_v12 = vsel %vm3626_vm8, 14, %v3598_v45  ;;  %v3689_v46 = vmul.f32 %v7771_v8, %v3679_v53  ;;  %v3565_v51 = vsel %vm3559_vm9, 12, %v3531_v3  ;;  %v9588_v3 = vld [vmem:[#allocation68_spill] sm:$0xff]  ;;  %v9589_v45 = vld [vmem:[#allocation62_spill] sm:$0xff] }
 0x806   :  { %vm3696_vm6 = vcmp.gt.f32.partialorder %v3690_v41, %v3674_v15  ;;  %v3675_v18 = vsel %vm3663_vm2, %v3657_v21, %v8040_v60  ;;  %v3706_v55 = vsel %vm3694_vm7, %v3688_v58, %v3672_v27  ;;  %vm3761_vm4 = vcmp.gt.f32.partialorder %v3755_v61, %v3739_v59  ;;  %v3780_v27 = vld [vmem:[#allocation2 + $0x3a0] sm:$0xff] }
 0x807   :  { %vm3695_vm1 = vcmp.gt.f32.partialorder %v3689_v46, %v3673_v19  ;;  %v3691_v32 = vmul.f32 %v7771_v8, %v3681_v38  ;;  %v3722_v14 = vmul.f32 %v7795_v54, %v3712_v7  ;;  %vm3794_vm8 = vcmp.gt.f32.partialorder %v9583_v37, %v3772_v17  ;;  %v3783_v38 = vld [vmem:[#allocation2 + $0x3b8] sm:$0xff] }
 0x808   :  { %v3733_v11 = vsel %vm3727_vm12, 17, %v3699_v31  ;;  %v3666_v6 = vsel %vm3660_vm13, 15, %v3632_v12  ;;  %v3634_v52 = vsel %vm3628_vm0, 14, %v9584_v48  ;;  %v3599_v8 = vsel %vm3593_vm10, 13, %v3565_v51  ;;  %v9590_v12 = vld [vmem:[#allocation14_spill] sm:$0xff]  ;;  %v9591_v37 = vld [vmem:[#allocation16_spill] sm:$0xff] }
 0x809   :  { %vm3697_vm9 = vcmp.gt.f32.partialorder %v3691_v32, %v3675_v18  ;;  %vm3728_vm15 = vcmp.gt.f32.partialorder %v3722_v14, %v3706_v55  ;;  %v3708_v10 = vsel %vm3696_vm6, %v3690_v41, %v3674_v15  ;;  %v3773_v13 = vsel %vm3761_vm4, %v3755_v61, %v3739_v59 }
 0x80a   :  { %v3633_v39 = vsel %vm3627_vm5, 14, %v3599_v8  ;;  %v3707_v29 = vsel %vm3695_vm1, %v3689_v46, %v3673_v19  ;;  %v3724_v34 = vmul.f32 %v7795_v54, %v3714_v22  ;;  %v3700_v43 = vsel %vm3694_vm7, 16, %v3666_v6 }
 0x80b   :  { %v3668_v9 = vsel %vm3662_vm11, 15, %v3634_v52  ;;  %vm9586_vm10 = vcmp.gt.f32.partialorder %v7946_v2, %v7990_v0  ;;  %v3723_v49 = vmul.f32 %v7795_v54, %v3713_v26  ;;  %v3767_v42 = vsel %vm3761_vm4, 18, %v3733_v11 }
 0x80c   :  { %v3635_v47 = vsel %vm9586_vm10, 14, %v9585_v57  ;;  %v3740_v25 = vsel %vm3728_vm15, %v3722_v14, %v3706_v55  ;;  %vm3730_vm0 = vcmp.gt.f32.partialorder %v3724_v34, %v3708_v10  ;;  %v3709_v35 = vsel %vm3697_vm9, %v3691_v32, %v3675_v18 }
 0x80d   :  { %v3667_v62 = vsel %vm3661_vm3, 15, %v3633_v39  ;;  %v3756_v5 = vmul.f32 %v7110_v56, %v3746_v20  ;;  %vm3729_vm5 = vcmp.gt.f32.partialorder %v3723_v49, %v3707_v29  ;;  %v3725_v2 = vmul.f32 %v7795_v54, %v3715_v28 }
 0x80e   :  { %vm3795_vm13 = vcmp.gt.f32.partialorder %v8058_v1, %v3773_v13  ;;  %v3702_v0 = vsel %vm3696_vm6, 16, %v3668_v9  ;;  %v3669_v30 = vsel %vm3663_vm2, 15, %v3635_v47  ;;  %v3734_v24 = vsel %vm3728_vm15, 17, %v3700_v43  ;;  %v9594_v47 = vld [vmem:[#allocation10_spill] sm:$0xff] }
 0x80f   :  { %vm3762_vm12 = vcmp.gt.f32.partialorder %v3756_v5, %v3740_v25  ;;  %v3742_v40 = vsel %vm3730_vm0, %v3724_v34, %v3708_v10  ;;  %vm3731_vm11 = vcmp.gt.f32.partialorder %v3725_v2, %v3709_v35  ;;  %v1239_v23 = vcvt.f32.s32 %v9587_v50  ;;  %v9592_v10 = vld [vmem:[#allocation9_spill] sm:$0xff] }
 0x810   :  { %v8142_v33 = vmul.f32 %v7110_v56, %v3749_v63  ;;  %v8147_v54 = vsel %vm3794_vm8, 19, %v8051_v4  ;;  %v3701_v60 = vsel %vm3695_vm1, 16, %v3667_v62  ;;  %v3741_v58 = vsel %vm3729_vm5, %v3723_v49, %v3707_v29  ;;  %v3782_v56 = vld [vmem:[#allocation2 + $0x3b0] sm:$0xff] }
 0x811   :  { %v8151_v21 = vsel %vm3795_vm13, 19, %v3767_v42  ;;  %v3703_v53 = vsel %vm3697_vm9, 16, %v3669_v30  ;;  %v8155_v44 = vmul.f32 %v7855_v36, %v3780_v27  ;;  %v8158_v61 = vmul.f32 %v7855_v36, %v3781_v16 }
 0x812   :  { %v8161_v1 = vsel %vm3762_vm12, 18, %v3734_v24  ;;  %v3736_v4 = vsel %vm3730_vm0, 17, %v3702_v0  ;;  %vm3764_vm2 = vcmp.gt.f32.partialorder %v9588_v3, %v3742_v40  ;;  %v8166_v15 = vsel %vm3731_vm11, %v3725_v2, %v3709_v35 }
 0x813   :  { %v3735_v59 = vsel %vm3729_vm5, 17, %v3701_v60  ;;  %vm3763_vm3 = vcmp.gt.f32.partialorder %v9589_v45, %v3741_v58  ;;  %v1240_v19 = vshll.u32 %v1239_v23, 16  ;;  %v8171_v17 = vsel %vm3762_vm12, %v3756_v5, %v3740_v25 }
 0x814   :  { %v8174_v31 = vmul.f32 %v7855_v36, %v3782_v56  ;;  %v1254_v46 = vcvt.f32.s32 %v9590_v12  ;;  %vm1272_vm7 = vcmask 7168   ;;  %v8179_v51 = vsel %vm3764_vm2, 18, %v3736_v4 }
 0x815   :  { %vm3765_vm14 = vcmp.gt.f32.partialorder %v8142_v33, %v8166_v15  ;;  %v8184_v18 = vmul.f32 %v7855_v36, %v3783_v38  ;;  %v8188_v32 = vsel %vm3763_vm3, 18, %v3735_v59  ;;  %v8191_v14 = vsel %vm3763_vm3, %v9589_v45, %v3741_v58 }
 0x816   :  { %v8196_v26 = vsel %vm3764_vm2, %v9588_v3, %v3742_v40  ;;  %v1269_v11 = vcvt.f32.s32 %v9591_v37  ;;  %v3737_v6 = vsel %vm3731_vm11, 17, %v3703_v53  ;;  %v8213_v48 = vsel %vm3765_vm14, %v8142_v33, %v8166_v15 }
 0x817   :  { %v1255_v52 = vshll.u32 %v1254_v46, 16  ;;  %vm3796_vm5 = vcmp.gt.f32.partialorder %v8155_v44, %v8171_v17  ;;  %vm3797_vm13 = vcmp.gt.f32.partialorder %v8158_v61, %v8191_v14  ;;  %vm3798_vm12 = vcmp.gt.f32.partialorder %v8174_v31, %v8196_v26  ;;  %v9602_v44 = vld [vmem:[#allocation11_spill] sm:$0xff] }
 0x818   :  { %v1270_v8 = vshll.u32 %v1269_v11, 16  ;;  %vm3799_vm11 = vcmp.gt.f32.partialorder %v8184_v18, %v8213_v48  ;;  %v3771_v38 = vsel %vm3765_vm14, 18, %v3737_v6  ;;  %v8382_v33 = vsel %vm3797_vm13, 19, %v8188_v32 }
 0x819   :  { %v8388_v15 = vsel %vm3798_vm12, 19, %v8179_v51  ;;  %vm9603_vm12 = vcmask 1043456  }
 0x81a   :  { %9600 = vst [vmem:[#allocation23_spill] sm:$0xff] %v8388_v15 }
 0x825   :  { %v1237_v7 = vpop.xlane.xlu0 %1236 }
 0x826   :  { %v1238_v41 = vcvt.f32.s32 %v1237_v7 }
 0x828   :  { %v8186_v55 = vadd.s32 %v1240_v19, %v1238_v41  ;;  %v1252_v22 = vpop.xlane.xlu1 %1251  ;;  %v8376_v19 = vsel %vm3796_vm5, 19, %v8161_v1  ;;  %v8393_v41 = vsel %vm3799_vm11, 19, %v3771_v38  ;;  %vm9604_vm11 = vmmov %vm9603_vm12 }
 0x829   :  { %v1253_v36 = vcvt.f32.s32 %v1252_v22  ;;  %9601 = vst [vmem:[#allocation31_spill] sm:$0xff] %v8393_v41 }
 0x82a   :  { %1273 = vst.msk [vmem:[%s9278_s15] sm:$0xff] %vm1272_vm7, %v8186_v55  ;;  %vm3813_vm6 = vcmp.eq.s32.totalorder %v8186_v55, 1  ;;  %vm3859_vm4 = vcmp.eq.s32.totalorder %v8186_v55, 2  ;;  %vm9424_vm1 = vcmp.eq.s32.totalorder %v8186_v55, 3  ;;  %vm9392_vm8 = vcmp.eq.s32.totalorder %v8186_v55, 4 }
 0x82b   :  { %vm9391_vm9 = vcmp.eq.s32.totalorder %v8186_v55, 5  ;;  %vm9389_vm15 = vcmp.eq.s32.totalorder %v8186_v55, 6  ;;  %vm9390_vm10 = vcmp.eq.s32.totalorder %v8186_v55, 7  ;;  %vm9393_vm0 = vcmp.eq.s32.totalorder %v8186_v55, 8 }
 0x82c   :  { %v8223_v28 = vsel %vm3813_vm6, %v9592_v10, -1.0  ;;  %v8228_v20 = vsel %vm3859_vm4, %v9592_v10, -1.0  ;;  %v8233_v13 = vsel %vm9424_vm1, %v9592_v10, -1.0  ;;  %v8246_v39 = vsel %vm9392_vm8, %v9592_v10, -1.0 }
 0x82d   :  { %v8251_v29 = vsel %vm9391_vm9, %v9592_v10, -1.0  ;;  %v8256_v34 = vsel %vm9389_vm15, %v9592_v10, -1.0  ;;  %v8258_v43 = vadd.s32 %v1255_v52, %v1253_v36  ;;  %v8263_v9 = vsel %vm9390_vm10, %v9592_v10, -1.0  ;;  %v1267_v0 = vpop.xlane.xlu0 %1266 }
 0x82e   :  { %v8268_v57 = vsel %vm9393_vm0, %v9592_v10, -1.0  ;;  %vm9402_vm2 = vcmp.eq.s32.totalorder %v8186_v55, 9  ;;  %vm9400_vm3 = vcmp.eq.s32.totalorder %v8186_v55, 10  ;;  %v1268_v58 = vcvt.f32.s32 %v1267_v0 }
 0x82f   :  { %9593 = vst [vmem:[#allocation36_spill] sm:$0xff] %v8268_v57  ;;  %1274 = vst.msk [vmem:[%s9278_s15 + $0x8] sm:$0xff] %vm1272_vm7, %v8258_v43  ;;  %vm3814_vm15 = vcmp.eq.s32.totalorder %v8258_v43, 1  ;;  %vm3860_vm10 = vcmp.eq.s32.totalorder %v8258_v43, 2  ;;  %vm9394_vm9 = vcmp.eq.s32.totalorder %v8258_v43, 3  ;;  %vm9395_vm8 = vcmp.eq.s32.totalorder %v8258_v43, 4 }
 0x830   :  { %v8284_v49 = vsel %vm3814_vm15, %v9594_v47, -1.0  ;;  %v8289_v42 = vsel %vm3860_vm10, %v9594_v47, -1.0  ;;  %v8294_v25 = vsel %vm9394_vm9, %v9594_v47, -1.0  ;;  %v8299_v35 = vsel %vm9395_vm8, %v9594_v47, -1.0 }
 0x831   :  { %v3820_v63 = vmax.f32 %v8223_v28, %v8284_v49  ;;  %v3866_v62 = vmax.f32 %v8228_v20, %v8289_v42  ;;  %v3912_v5 = vmax.f32 %v8233_v13, %v8294_v25  ;;  %v3958_v2 = vmax.f32 %v8246_v39, %v8299_v35 }
 0x832   :  { %vm9398_vm7 = vcmp.eq.s32.totalorder %v8258_v43, 5  ;;  %vm9397_vm0 = vcmp.eq.s32.totalorder %v8258_v43, 6  ;;  %vm9396_vm9 = vcmp.eq.s32.totalorder %v8258_v43, 7  ;;  %vm9403_vm8 = vcmp.eq.s32.totalorder %v8258_v43, 8 }
 0x833   :  { %v8316_v30 = vsel %vm9398_vm7, %v9594_v47, -1.0  ;;  %v8321_v24 = vsel %vm9397_vm0, %v9594_v47, -1.0  ;;  %v8326_v27 = vsel %vm9396_vm9, %v9594_v47, -1.0  ;;  %v8331_v16 = vsel %vm9403_vm8, %v9594_v47, -1.0 }
 0x834   :  { %9595 = vst [vmem:[#allocation21_spill] sm:$0xff] %v8331_v16  ;;  %v4004_v40 = vmax.f32 %v8251_v29, %v8316_v30  ;;  %v4050_v50 = vmax.f32 %v8256_v34, %v8321_v24  ;;  %v4096_v23 = vmax.f32 %v8263_v9, %v8326_v27  ;;  %v4142_v60 = vmax.f32 %v8268_v57, %v8331_v16 }
 0x835   :  { %vm9401_vm9 = vcmp.eq.s32.totalorder %v8258_v43, 9  ;;  %vm9399_vm0 = vcmp.eq.s32.totalorder %v8258_v43, 10  ;;  %vm1275_vm7 = vcmask 3072   ;;  %v8346_v53 = vsel %vm9402_vm2, %v9592_v10, -1.0 }
 0x836   :  { %9596 = vst [vmem:[#allocation20_spill] sm:$0xff] %v8346_v53  ;;  %v8351_v56 = vsel %vm9400_vm3, %v9592_v10, -1.0  ;;  %v8356_v4 = vsel %vm9401_vm9, %v9594_v47, -1.0  ;;  %v8361_v3 = vsel %vm9399_vm0, %v9594_v47, -1.0  ;;  %v8370_v45 = vadd.s32 %v1270_v8, %v1268_v58 }
 0x837   :  { %9597 = vst [vmem:[#allocation24_spill] sm:$0xff] %v8351_v56  ;;  %9598 = vst [vmem:[#allocation22_spill] sm:$0xff] %v8356_v4 }
 0x838   :  { %9599 = vst [vmem:[#allocation25_spill] sm:$0xff] %v8361_v3  ;;  %1276 = vst.msk [vmem:[%s9278_s15 + $0x10] sm:$0xf] %vm1275_vm7, %v8370_v45  ;;  %vm3815_vm14 = vcmp.eq.s32.totalorder %v8370_v45, 1  ;;  %vm9425_vm5 = vcmp.eq.s32.totalorder %v8370_v45, 2  ;;  %vm9423_vm13 = vcmp.eq.s32.totalorder %v8370_v45, 3 }
 0x839   :  { %vm9422_vm0 = vcmp.eq.s32.totalorder %v8370_v45, 4  ;;  %v8406_v61 = vsel %vm3815_vm14, %v9602_v44, -1.0  ;;  %v8411_v1 = vsel %vm9425_vm5, %v9602_v44, -1.0  ;;  %v8416_v17 = vsel %vm9423_vm13, %v9602_v44, -1.0  ;;  %vm9605_vm7 = vmmov %vm9604_vm11  ;;  %s5450_s15 = smov [#allocation4]  }
 0x83a   :  { %v8421_v31 = vsel %vm9422_vm0, %v9602_v44, -1.0  ;;  %v3819_v12 = vsel %vm9603_vm12, %v8406_v61, -inf  ;;  %v3865_v46 = vsel %vm9604_vm11, %v8411_v1, -inf  ;;  %v3911_v51 = vsel %vm9605_vm7, %v8416_v17, -inf  ;;  %vm9606_vm3 = vmmov %vm9605_vm7  ;;  %s4506_s16 = sshll.u32 %s5450_s15, 4  ;;  %s4507_s16 = int_to_ptr.vmem [resolvable:$true] %s4506_s16 }
 0x83b   :  { %v3957_v18 = vsel %vm9606_vm3, %v8421_v31, -inf  ;;  %v3821_v22 = vmax.f32 %v3820_v63, %v3819_v12  ;;  %v3867_v32 = vmax.f32 %v3866_v62, %v3865_v46  ;;  %v3913_v14 = vmax.f32 %v3912_v5, %v3911_v51  ;;  %vm9608_vm11 = vmmov %vm9606_vm3  ;;  %s5379_s19 = scalar_lea.vmem %s4507_s16, 1536  ;;  %p5384_p1 = scmp.lt.s32.totalorder %s4507_s16, %s4507_s16 }
 0x83c   :  { %v3959_v26 = vmax.f32 %v3958_v2, %v3957_v18  ;;  %vm9421_vm9 = vcmp.eq.s32.totalorder %v8370_v45, 5  ;;  %vm9420_vm2 = vcmp.eq.s32.totalorder %v8370_v45, 6  ;;  %vm9404_vm8 = vcmp.eq.s32.totalorder %v8370_v45, 7  ;;  %vm9609_vm7 = vmmov %vm9606_vm3  ;;  %p5380_p0 = scmp.ne.s32.totalorder %s4507_s16, %s5379_s19  ;;  %p5385_p2 = scmp.lt.s32.totalorder %s5379_s19, %s5379_s19 }
 0x83d   :  { %vm9419_vm12 = vcmp.eq.s32.totalorder %v8370_v45, 8  ;;  %v3822_v37 = vrot.slane %v3821_v22, 4  ;;  %v3868_v11 = vrot.slane %v3867_v32, 4  ;;  %v3914_v36 = vrot.slane %v3913_v14, 4 }
 0x83e   :  { %v3960_v6 = vrot.slane %v3959_v26, 4  ;;  %v8438_v48 = vsel %vm9421_vm9, %v9602_v44, -1.0  ;;  %v8443_v52 = vsel %vm9420_vm2, %v9602_v44, -1.0  ;;  %v8448_v8 = vsel %vm9404_vm8, %v9602_v44, -1.0  ;;  %vm9610_vm8 = vmmov %vm9606_vm3  ;;  %p5386_p3 = por %p5385_p2, %p5384_p1 }
 0x83f   :  { %v8453_v10 = vsel %vm9419_vm12, %v9602_v44, -1.0  ;;  %v3823_v47 = vmax.f32 %v3821_v22, %v3822_v37  ;;  %v3869_v63 = vmax.f32 %v3867_v32, %v3868_v11  ;;  %v3915_v62 = vmax.f32 %v3913_v14, %v3914_v36 }
 0x840   :  { %9607 = vst [vmem:[#allocation29_spill] sm:$0xff] %v8453_v10  ;;  %v3961_v5 = vmax.f32 %v3959_v26, %v3960_v6  ;;  %v4003_v2 = vsel %vm9606_vm3, %v8438_v48, -inf  ;;  %v4049_v0 = vsel %vm9608_vm11, %v8443_v52, -inf  ;;  %v4095_v58 = vsel %vm9609_vm7, %v8448_v8, -inf  ;;  %p5387_p4 = pnand %p5386_p3, %p5380_p0 }
 0x841   :  { %v4141_v38 = vsel %vm9610_vm8, %v8453_v10, -inf  ;;  %v3824_v12 = vrot.slane %v3823_v47, 2  ;;  %v3870_v46 = vrot.slane %v3869_v63, 2  ;;  %v3916_v51 = vrot.slane %v3915_v62, 2 }
 0x842   :  { %v3962_v18 = vrot.slane %v3961_v5, 2  ;;  %v4005_v22 = vmax.f32 %v4004_v40, %v4003_v2  ;;  %v4051_v32 = vmax.f32 %v4050_v50, %v4049_v0  ;;  %v4097_v14 = vmax.f32 %v4096_v23, %v4095_v58 }
 0x843   :  { %v4143_v26 = vmax.f32 %v4142_v60, %v4141_v38  ;;  %v3825_v37 = vmax.f32 %v3823_v47, %v3824_v12  ;;  %v3871_v11 = vmax.f32 %v3869_v63, %v3870_v46  ;;  %v3917_v36 = vmax.f32 %v3915_v62, %v3916_v51 }
 0x844   :  { %v3963_v6 = vmax.f32 %v3961_v5, %v3962_v18  ;;  %v4006_v59 = vrot.slane %v4005_v22, 4  ;;  %v4052_v7 = vrot.slane %v4051_v32, 4  ;;  %v4098_v3 = vrot.slane %v4097_v14, 4 }
 0x845   :  { %v4144_v56 = vrot.slane %v4143_v26, 4  ;;  %v3826_v4 = vrot.slane %v3825_v37, 1  ;;  %v3872_v53 = vrot.slane %v3871_v11, 1  ;;  %v3918_v44 = vrot.slane %v3917_v36, 1 }
 0x846   :  { %v3964_v10 = vrot.slane %v3963_v6, 1  ;;  %v4007_v16 = vmax.f32 %v4005_v22, %v4006_v59  ;;  %v4053_v57 = vmax.f32 %v4051_v32, %v4052_v7  ;;  %v4099_v41 = vmax.f32 %v4097_v14, %v4098_v3  ;;  %v9615_v59 = vld [vmem:[#allocation43_spill] sm:$0xff] }
 0x847   :  { %v4145_v15 = vmax.f32 %v4143_v26, %v4144_v56  ;;  %v3827_v40 = vmax.f32 %v3825_v37, %v3826_v4  ;;  %v3873_v50 = vmax.f32 %v3871_v11, %v3872_v53  ;;  %v3919_v23 = vmax.f32 %v3917_v36, %v3918_v44  ;;  %v9614_v53 = vld [vmem:[#allocation34_spill] sm:$0xff] }
 0x848   :  { %v8463_v60 = vmax.f32 %v3963_v6, %v3964_v10  ;;  %v4008_v47 = vrot.slane %v4007_v16, 2  ;;  %v4054_v63 = vrot.slane %v4053_v57, 2  ;;  %v4100_v62 = vrot.slane %v4099_v41, 2 }
 0x849   :  { %v4146_v5 = vrot.slane %v4145_v15, 2  ;;  %vm3828_vm8 = vcmp.ge.f32.partialorder %v8223_v28, %v3827_v40  ;;  %vm3829_vm3 = vcmp.ge.f32.partialorder %v8284_v49, %v3827_v40  ;;  %vm3830_vm11 = vcmp.ge.f32.partialorder %v8406_v61, %v3827_v40  ;;  %v9613_v28 = vld [vmem:[#allocation33_spill] sm:$0xff] }
 0x84a   :  { %vm3874_vm7 = vcmp.ge.f32.partialorder %v8228_v20, %v3873_v50  ;;  %vm8471_vm12 = vmand %vm3813_vm6, %vm3828_vm8  ;;  %vm3875_vm2 = vcmp.ge.f32.partialorder %v8289_v42, %v3873_v50  ;;  %vm3876_vm9 = vcmp.ge.f32.partialorder %v8411_v1, %v3873_v50  ;;  %vm3921_vm13 = vcmp.ge.f32.partialorder %v8294_v25, %v3919_v23 }
 0x84b   :  { %vm3832_vm1 = vmand %vm3814_vm15, %vm3829_vm3  ;;  %v3834_v49 = vsel %vm8471_vm12, %v9613_v28, 20.0  ;;  %vm3922_vm6 = vcmp.ge.f32.partialorder %v8416_v17, %v3919_v23  ;;  %vm3966_vm8 = vcmp.ge.f32.partialorder %v8246_v39, %v8463_v60  ;;  %vm3967_vm5 = vcmp.ge.f32.partialorder %v8299_v35, %v8463_v60 }
 0x84c   :  { %vm3833_vm0 = vmand %vm3815_vm14, %vm3830_vm11  ;;  %v3835_v4 = vsel %vm3832_vm1, %v9614_v53, 20.0  ;;  %vm3968_vm15 = vcmp.ge.f32.partialorder %v8421_v31, %v8463_v60  ;;  %v4009_v3 = vmax.f32 %v4007_v16, %v4008_v47  ;;  %v4055_v7 = vmax.f32 %v4053_v57, %v4054_v63 }
 0x84d   :  { %v3836_v44 = vsel %vm3833_vm0, %v9615_v59, 20.0  ;;  %v3838_v61 = vmin.f32 %v3834_v49, %v3835_v4  ;;  %vm3877_vm12 = vmand %vm3859_vm4, %vm3874_vm7  ;;  %v4101_v10 = vmax.f32 %v4099_v41, %v4100_v62  ;;  %v8499_v2 = vmax.f32 %v4145_v15, %v4146_v5 }
 0x84e   :  { %vm9616_vm3 = vcmask 1043456   ;;  %vm3878_vm1 = vmand %vm3860_vm10, %vm3875_vm2  ;;  %v3880_v57 = vsel %vm3877_vm12, %v9613_v28, 20.0  ;;  %v4010_v16 = vrot.slane %v4009_v3, 1  ;;  %v4056_v58 = vrot.slane %v4055_v7, 1 }
 0x84f   :  { %v3837_v0 = vsel %vm9616_vm3, %v3836_v44, inf  ;;  %vm9617_vm0 = vcmp.eq.s32.totalorder %v8370_v45, 2  ;;  %v3881_v20 = vsel %vm3878_vm1, %v9614_v53, 20.0  ;;  %v4102_v15 = vrot.slane %v4101_v10, 1  ;;  %vm9620_vm11 = vmmov %vm9616_vm3 }
 0x850   :  { %v3839_v38 = vmin.f32 %v3838_v61, %v3837_v0  ;;  %vm3879_vm4 = vmand %vm9617_vm0, %vm3876_vm9  ;;  %v4148_v41 = vrot.slane %v8499_v2, 1  ;;  %v3884_v12 = vmin.f32 %v3880_v57, %v3881_v20  ;;  %vm9618_vm10 = vcmp.ge.f32.partialorder %v8233_v13, %v3919_v23 }
 0x851   :  { %v3882_v42 = vsel %vm3879_vm4, %v9615_v59, 20.0  ;;  %vm9619_vm2 = vcmp.eq.s32.totalorder %v8186_v55, 3  ;;  %v4011_v46 = vmax.f32 %v4009_v3, %v4010_v16  ;;  %v8518_v51 = vmax.f32 %v4055_v7, %v4056_v58 }
 0x852   :  { %vm3923_vm14 = vmand %vm9619_vm2, %vm9618_vm10  ;;  %v3840_v1 = vrot.slane %v3839_v38, 4  ;;  %v3883_v18 = vsel %vm9620_vm11, %v3882_v42, inf  ;;  %vm9621_vm9 = vcmp.eq.s32.totalorder %v8258_v43, 3  ;;  %v8526_v32 = vmax.f32 %v4101_v10, %v4102_v15 }
 0x853   :  { %vm3924_vm7 = vmand %vm9621_vm9, %vm3921_vm13  ;;  %v3926_v22 = vsel %vm3923_vm14, %v9613_v28, 20.0  ;;  %v3885_v14 = vmin.f32 %v3884_v12, %v3883_v18  ;;  %vm9622_vm12 = vcmp.eq.s32.totalorder %v8370_v45, 3  ;;  %vm4012_vm1 = vcmp.ge.f32.partialorder %v8251_v29, %v4011_v46 }
 0x854   :  { %vm3925_vm3 = vmand %vm9622_vm12, %vm3922_vm6  ;;  %v3927_v13 = vsel %vm3924_vm7, %v9614_v53, 20.0  ;;  %vm4013_vm0 = vcmp.ge.f32.partialorder %v8316_v30, %v4011_v46  ;;  %v3841_v25 = vmin.f32 %v3839_v38, %v3840_v1  ;;  %vm9623_vm13 = vcmp.eq.s32.totalorder %v8186_v55, 4 }
 0x855   :  { %v3928_v26 = vsel %vm3925_vm3, %v9615_v59, 20.0  ;;  %v3930_v37 = vmin.f32 %v3926_v22, %v3927_v13  ;;  %vm8541_vm4 = vmand %vm9623_vm13, %vm3966_vm8  ;;  %vm4014_vm6 = vcmp.ge.f32.partialorder %v8438_v48, %v4011_v46  ;;  %v3886_v11 = vrot.slane %v3885_v14, 4 }
 0x856   :  { %vm9626_vm10 = vmmov %vm9620_vm11  ;;  %vm9627_vm2 = vcmp.eq.s32.totalorder %v8258_v43, 4  ;;  %v3972_v39 = vsel %vm8541_vm4, %v9613_v28, 20.0  ;;  %vm4058_vm8 = vcmp.ge.f32.partialorder %v8256_v34, %v8518_v51  ;;  %v3842_v6 = vrot.slane %v3841_v25, 2 }
 0x857   :  { %v3929_v36 = vsel %vm9626_vm10, %v3928_v26, inf  ;;  %vm3970_vm14 = vmand %vm9627_vm2, %vm3967_vm5  ;;  %vm9628_vm11 = vcmp.eq.s32.totalorder %v8370_v45, 4  ;;  %vm4059_vm5 = vcmp.ge.f32.partialorder %v8321_v24, %v8518_v51  ;;  %v3887_v23 = vmin.f32 %v3885_v14, %v3886_v11 }
 0x858   :  { %v3931_v40 = vmin.f32 %v3930_v37, %v3929_v36  ;;  %vm8562_vm9 = vmand %vm9628_vm11, %vm3968_vm15  ;;  %v3973_v35 = vsel %vm3970_vm14, %v9614_v53, 20.0  ;;  %vm9631_vm15 = vcmp.eq.s32.totalorder %v8186_v55, 5  ;;  %vm4060_vm12 = vcmp.ge.f32.partialorder %v8443_v52, %v8518_v51 }
 0x859   :  { %v3974_v31 = vsel %vm8562_vm9, %v9615_v59, 20.0  ;;  %v3976_v60 = vmin.f32 %v3972_v39, %v3973_v35  ;;  %vm8576_vm7 = vmand %vm9631_vm15, %vm4012_vm1  ;;  %v3843_v63 = vmin.f32 %v3841_v25, %v3842_v6  ;;  %vm9635_vm13 = vcmp.eq.s32.totalorder %v8258_v43, 5 }
 0x85a   :  { %v3932_v62 = vrot.slane %v3931_v40, 4  ;;  %vm9634_vm3 = vmmov %vm9626_vm10  ;;  %v4018_v56 = vsel %vm8576_vm7, %v9613_v28, 20.0 }
 0x85b   :  { %v3975_v5 = vsel %vm9634_vm3, %v3974_v31, inf  ;;  %vm8589_vm4 = vmand %vm9635_vm13, %vm4013_vm0 }
 0x85c   :  { %5390 = shalt.err (!%p5387_p4)
}
 0x85d   :  { %s5391_s1 = scalar_lea.hbm %s9276_s13, 1536 }
 0x85e   :  { %p5392_p5 = scmp.ne.s32.totalorder %s9276_s13, %s5391_s1  ;;  %p5395_p6 = scmp.lt.u32.totalorder %s5391_s1, %s9276_s13 }
 0x860   :  { %p5397_p7 = pnand %p5395_p6, %p5392_p5 }
 0x862   :  { %5400 = shalt.err (!%p5397_p7)
}
 0x863   :  { %s5452_s8 = smov 128   ;;  %s5453_s24 = smov 8   ;;  %v3888_v30 = vrot.slane %v3887_v23, 2  ;;  %v3977_v49 = vmin.f32 %v3976_v60, %v3975_v5  ;;  %vm9638_vm1 = vcmp.eq.s32.totalorder %v8370_v45, 5  ;;  %v4019_v3 = vsel %vm8589_vm4, %v9614_v53, 20.0 }
 0x864   :  { %4512 = dma.vmem_to_hbm [thread:$0]  %s4507_s16, 1536, %s9276_s13, [#allocation5], %s5452_s8, %s5452_s8, %s5453_s24   ;;  %vm8615_vm0 = vmand %vm9638_vm1, %vm4014_vm6  ;;  %vm4104_vm10 = vcmp.ge.f32.partialorder %v8263_v9, %v8526_v32 }
 0x865   :  { %s5401_s10 = scalar_lea.vmem %s8582_s18, 15360  ;;  %p5406_p9 = scmp.lt.s32.totalorder %s8582_s18, %s8582_s18 }
 0x866   :  { %p5402_p8 = scmp.ne.s32.totalorder %s8582_s18, %s5401_s10  ;;  %p5407_p10 = scmp.lt.s32.totalorder %s5401_s10, %s5401_s10 }
 0x868   :  { %p5408_p11 = por %p5407_p10, %p5406_p9 }
 0x86a   :  { %p5409_p12 = pnand %p5408_p11, %p5402_p8 }
 0x86c   :  { %5412 = shalt.err (!%p5409_p12)
}
 0x86d   :  { %s5413_s26 = scalar_lea.hbm %s9275_s12, 15360 }
 0x86e   :  { %p5414_p13 = scmp.ne.s32.totalorder %s9275_s12, %s5413_s26  ;;  %p5417_p0 = scmp.lt.u32.totalorder %s5413_s26, %s9275_s12 }
 0x870   :  { %p5419_p1 = pnand %p5417_p0, %p5414_p13 }
 0x872   :  { %5422 = shalt.err (!%p5419_p1)
}
 0x873   :  { %4500 = dma.vmem_to_hbm [thread:$0]  %s8582_s18, 15360, %s9275_s12, [#allocation3], %s5452_s8, %s5452_s8, %s5453_s24   ;;  %v3844_v48 = vrot.slane %v3843_v63, 1  ;;  %v3933_v7 = vmin.f32 %v3931_v40, %v3932_v62  ;;  %v4020_v44 = vsel %vm8615_vm0, %v9615_v59, 20.0  ;;  %v4022_v61 = vmin.f32 %v4018_v56, %v4019_v3  ;;  %vm9642_vm14 = vmmov %vm9634_vm3  ;;  %v9664_v46 = vld [vmem:[#allocation29_spill] sm:$0xff] }
 0x874   :  { %vm9641_vm6 = vcmp.eq.s32.totalorder %v8186_v55, 6  ;;  %v3889_v10 = vmin.f32 %v3887_v23, %v3888_v30  ;;  %v3978_v0 = vrot.slane %v3977_v49, 4  ;;  %v4021_v57 = vsel %vm9642_vm14, %v4020_v44, inf  ;;  %s5454_s12 = smov [#allocation6]  }
 0x875   :  { %vm4061_vm2 = vmand %vm9641_vm6, %vm4058_vm8  ;;  %vm9643_vm11 = vcmp.eq.s32.totalorder %v8258_v43, 6  ;;  %v3845_v58 = vmin.f32 %v3843_v63, %v3844_v48  ;;  %v3934_v38 = vrot.slane %v3933_v7, 2  ;;  %v4023_v20 = vmin.f32 %v4022_v61, %v4021_v57  ;;  %s4518_s30 = sshll.u32 %s5454_s12, 4  ;;  %s4519_s30 = int_to_ptr.vmem [resolvable:$true] %s4518_s30 }
 0x876   :  { %vm4062_vm9 = vmand %vm9643_vm11, %vm4059_vm5  ;;  %v4064_v16 = vsel %vm4061_vm2, %v9613_v28, 20.0  ;;  %vm9644_vm8 = vcmp.eq.s32.totalorder %v8370_v45, 6  ;;  %v3890_v15 = vrot.slane %v3889_v10, 1  ;;  %v3979_v42 = vmin.f32 %v3977_v49, %v3978_v0  ;;  %s5423_s3 = scalar_lea.vmem %s4519_s30, 9216  ;;  %p5428_p3 = scmp.lt.s32.totalorder %s4519_s30, %s4519_s30 }
 0x877   :  { %vm4063_vm15 = vmand %vm9644_vm8, %vm4060_vm12  ;;  %v4065_v34 = vsel %vm4062_vm9, %v9614_v53, 20.0  ;;  %vm9645_vm5 = vcmp.eq.s32.totalorder %v8186_v55, 7  ;;  %v5034_v52 = vtrunc.f32 %v3845_v58  ;;  %v3935_v51 = vmin.f32 %v3933_v7, %v3934_v38  ;;  %v9659_v58 = vld [vmem:[#allocation36_spill] sm:$0xff]  ;;  %v9660_v38 = vld [vmem:[#allocation21_spill] sm:$0xff]  ;;  %p5424_p2 = scmp.ne.s32.totalorder %s4519_s30, %s5423_s3  ;;  %p5429_p4 = scmp.lt.s32.totalorder %s5423_s3, %s5423_s3 }
 0x878   :  { %v4066_v24 = vsel %vm4063_vm15, %v9615_v59, 20.0  ;;  %v4068_v12 = vmin.f32 %v4064_v16, %v4065_v34  ;;  %vm8671_vm7 = vmand %vm9645_vm5, %vm4104_vm10  ;;  %v4024_v1 = vrot.slane %v4023_v20, 4  ;;  %v3891_v22 = vmin.f32 %v3889_v10, %v3890_v15 }
 0x879   :  { %vm9648_vm12 = vmmov %vm9634_vm3  ;;  %v3980_v14 = vrot.slane %v3979_v42, 2  ;;  %vm4105_vm3 = vcmp.ge.f32.partialorder %v8326_v27, %v8526_v32  ;;  %v5035_v25 = vcvt.f32.s32 %v5034_v52  ;;  %v3936_v26 = vrot.slane %v3935_v51, 1  ;;  %p5430_p5 = por %p5429_p4, %p5428_p3 }
 0x87a   :  { %v4067_v18 = vsel %vm9648_vm12, %v4066_v24, inf  ;;  %v4025_v9 = vmin.f32 %v4023_v20, %v4024_v1  ;;  %vm4106_vm13 = vcmp.ge.f32.partialorder %v8448_v8, %v8526_v32  ;;  %vm9649_vm4 = vcmp.eq.s32.totalorder %v8258_v43, 7  ;;  %v9655_v8 = vld [vmem:[#allocation23_spill] sm:$0xff] }
 0x87b   :  { %v4069_v13 = vmin.f32 %v4068_v12, %v4067_v18  ;;  %vm8682_vm1 = vmand %vm9649_vm4, %vm4105_vm3  ;;  %v5036_v17 = vtrunc.f32 %v3891_v22  ;;  %v3981_v11 = vmin.f32 %v3979_v42, %v3980_v14  ;;  %vm9652_vm0 = vcmp.eq.s32.totalorder %v8370_v45, 7  ;;  %v9656_v32 = vld [vmem:[#allocation31_spill] sm:$0xff]  ;;  %p5431_p6 = pnand %p5430_p5, %p5424_p2 }
 0x87c   :  { %vm8688_vm10 = vmand %vm9652_vm0, %vm4106_vm13  ;;  %v4110_v27 = vsel %vm8671_vm7, %v9613_v28, 20.0  ;;  %vm3847_vm6 = vcmp.eq.s32.totalorder %v8147_v54, %v5035_v25  ;;  %vm3848_vm2 = vcmp.eq.s32.totalorder %v8151_v21, %v5035_v25  ;;  %vm3849_vm14 = vcmp.eq.s32.totalorder %v8376_v19, %v5035_v25 }
 0x87d   :  { %v4070_v36 = vrot.slane %v4069_v13, 4  ;;  %vm3850_vm11 = vcmp.eq.s32.totalorder %v8382_v33, %v5035_v25  ;;  %vm3851_vm9 = vcmp.eq.s32.totalorder %v9655_v8, %v5035_v25  ;;  %vm3852_vm8 = vcmp.eq.s32.totalorder %v9656_v32, %v5035_v25 }
 0x87e   :  { %v9657_v6 = vmov 0   ;;  %v5037_v47 = vcvt.f32.s32 %v5036_v17  ;;  %v3937_v63 = vmin.f32 %v3935_v51, %v3936_v26  ;;  %v3982_v62 = vrot.slane %v3981_v11, 1 }
 0x87f   :  { %v3853_v40 = vsel %vm3847_vm6, 1, %v9657_v6  ;;  %v3854_v50 = vsel %vm3848_vm2, 1, %v9657_v6  ;;  %v3855_v35 = vsel %vm3849_vm14, 1, %v9657_v6  ;;  %v3856_v23 = vsel %vm3850_vm11, 1, %v9657_v6 }
 0x880   :  { %v3857_v31 = vsel %vm3851_vm9, 1, %v9657_v6  ;;  %v3858_v60 = vsel %vm3852_vm8, 1, %v9657_v6  ;;  %v4026_v5 = vrot.slane %v4025_v9, 2  ;;  %v4071_v29 = vmin.f32 %v4069_v13, %v4070_v36 }
 0x881   :  { %v4111_v56 = vsel %vm8682_vm1, %v9614_v53, 20.0  ;;  %v4112_v30 = vsel %vm8688_vm10, %v9615_v59, 20.0  ;;  %v4149_v49 = vmax.f32 %v8499_v2, %v4148_v41  ;;  %vm3893_vm15 = vcmp.eq.s32.totalorder %v8147_v54, %v5037_v47 }
 0x882   :  { %vm3894_vm5 = vcmp.eq.s32.totalorder %v8151_v21, %v5037_v47  ;;  %vm3895_vm7 = vcmp.eq.s32.totalorder %v8376_v19, %v5037_v47  ;;  %vm3896_vm12 = vcmp.eq.s32.totalorder %v8382_v33, %v5037_v47  ;;  %vm3897_vm3 = vcmp.eq.s32.totalorder %v9655_v8, %v5037_v47 }
 0x883   :  { %vm3898_vm13 = vcmp.eq.s32.totalorder %v9656_v32, %v5037_v47  ;;  %v3899_v4 = vsel %vm3893_vm15, 2, %v3853_v40  ;;  %v3900_v3 = vsel %vm3894_vm5, 2, %v3854_v50  ;;  %v3901_v48 = vsel %vm3895_vm7, 2, %v3855_v35 }
 0x884   :  { %v3902_v7 = vsel %vm3896_vm12, 2, %v3856_v23  ;;  %v3903_v44 = vsel %vm3897_vm3, 2, %v3857_v31  ;;  %v3904_v61 = vsel %vm3898_vm13, 2, %v3858_v60  ;;  %v5038_v10 = vtrunc.f32 %v3937_v63 }
 0x885   :  { %v3983_v2 = vmin.f32 %v3981_v11, %v3982_v62  ;;  %v4027_v41 = vmin.f32 %v4025_v9, %v4026_v5  ;;  %v4072_v0 = vrot.slane %v4071_v29, 2  ;;  %vm9658_vm4 = vcmask 1043456  }
 0x886   :  { %v4113_v57 = vsel %vm9658_vm4, %v4112_v30, inf  ;;  %v4114_v16 = vmin.f32 %v4110_v27, %v4111_v56  ;;  %vm4150_vm1 = vcmp.ge.f32.partialorder %v9659_v58, %v4149_v49  ;;  %vm4151_vm0 = vcmp.ge.f32.partialorder %v9660_v38, %v4149_v49  ;;  %v9671_v27 = vld [vmem:[#allocation11_spill] sm:$0xff] }
 0x887   :  { %v5039_v20 = vcvt.f32.s32 %v5038_v10  ;;  %v5040_v34 = vtrunc.f32 %v3983_v2  ;;  %v4028_v15 = vrot.slane %v4027_v41, 1  ;;  %v4073_v42 = vmin.f32 %v4071_v29, %v4072_v0 }
 0x888   :  { %vm9661_vm10 = vcmp.eq.s32.totalorder %v8186_v55, 8  ;;  %v4115_v12 = vmin.f32 %v4114_v16, %v4113_v57  ;;  %vm4152_vm2 = vcmp.ge.f32.partialorder %v9664_v46, %v4149_v49  ;;  %vm9665_vm14 = vcmp.eq.s32.totalorder %v8258_v43, 8  ;;  %v9679_v46 = vld [vmem:[#allocation25_spill] sm:$0xff] }
 0x889   :  { %vm8727_vm6 = vmand %vm9661_vm10, %vm4150_vm1  ;;  %vm4183_vm9 = vcmp.eq.s32.totalorder %v8370_v45, 9  ;;  %vm3939_vm8 = vcmp.eq.s32.totalorder %v8147_v54, %v5039_v20  ;;  %vm3940_vm15 = vcmp.eq.s32.totalorder %v8151_v21, %v5039_v20  ;;  %vm3941_vm5 = vcmp.eq.s32.totalorder %v8376_v19, %v5039_v20 }
 0x88a   :  { %vm8734_vm11 = vmand %vm9665_vm14, %vm4151_vm0  ;;  %v4156_v51 = vsel %vm8727_vm6, %v9613_v28, 20.0  ;;  %vm3942_vm7 = vcmp.eq.s32.totalorder %v8382_v33, %v5039_v20  ;;  %vm9668_vm12 = vcmp.eq.s32.totalorder %v8370_v45, 8  ;;  %vm3943_vm13 = vcmp.eq.s32.totalorder %v9655_v8, %v5039_v20 }
 0x88b   :  { %vm8748_vm3 = vmand %vm9668_vm12, %vm4152_vm2  ;;  %vm3944_vm4 = vcmp.eq.s32.totalorder %v9656_v32, %v5039_v20  ;;  %v3945_v18 = vsel %vm3939_vm8, 3, %v3899_v4  ;;  %v3946_v22 = vsel %vm3940_vm15, 3, %v3900_v3  ;;  %v3947_v14 = vsel %vm3941_vm5, 3, %v3901_v48  ;;  %v9674_v3 = vld [vmem:[#allocation20_spill] sm:$0xff]  ;;  %v9675_v48 = vld [vmem:[#allocation22_spill] sm:$0xff] }
 0x88c   :  { %v3948_v13 = vsel %vm3942_vm7, 3, %v3902_v7  ;;  %v3949_v25 = vsel %vm3943_vm13, 3, %v3903_v44  ;;  %v3950_v26 = vsel %vm3944_vm4, 3, %v3904_v61  ;;  %v5041_v9 = vcvt.f32.s32 %v5040_v34 }
 0x88d   :  { %v4029_v37 = vmin.f32 %v4027_v41, %v4028_v15  ;;  %v4074_v17 = vrot.slane %v4073_v42, 1  ;;  %v4116_v11 = vrot.slane %v4115_v12, 4  ;;  %v4157_v36 = vsel %vm8734_vm11, %v9614_v53, 20.0 }
 0x88e   :  { %v4158_v39 = vsel %vm8748_vm3, %v9615_v59, 20.0  ;;  %v8763_v40 = vsel %vm4183_vm9, %v9671_v27, -1.0  ;;  %vm4229_vm1 = vcmp.eq.s32.totalorder %v8370_v45, 10  ;;  %vm3985_vm0 = vcmp.eq.s32.totalorder %v8147_v54, %v5041_v9 }
 0x88f   :  { %vm3986_vm10 = vcmp.eq.s32.totalorder %v8151_v21, %v5041_v9  ;;  %vm3987_vm6 = vcmp.eq.s32.totalorder %v8376_v19, %v5041_v9  ;;  %vm3988_vm2 = vcmp.eq.s32.totalorder %v8382_v33, %v5041_v9  ;;  %vm3989_vm14 = vcmp.eq.s32.totalorder %v9655_v8, %v5041_v9 }
 0x890   :  { %vm3990_vm11 = vcmp.eq.s32.totalorder %v9656_v32, %v5041_v9  ;;  %v3991_v50 = vsel %vm3985_vm0, 4, %v3945_v18  ;;  %v3992_v35 = vsel %vm3986_vm10, 4, %v3946_v22  ;;  %v3993_v23 = vsel %vm3987_vm6, 4, %v3947_v14 }
 0x891   :  { %v3994_v31 = vsel %vm3988_vm2, 4, %v3948_v13  ;;  %v3995_v60 = vsel %vm3989_vm14, 4, %v3949_v25  ;;  %v3996_v47 = vsel %vm3990_vm11, 4, %v3950_v26  ;;  %v5042_v63 = vtrunc.f32 %v4029_v37 }
 0x892   :  { %v4075_v62 = vmin.f32 %v4073_v42, %v4074_v17  ;;  %v4117_v5 = vmin.f32 %v4115_v12, %v4116_v11  ;;  %vm9672_vm8 = vcmask 1043456   ;;  %v4160_v56 = vmin.f32 %v4156_v51, %v4157_v36  ;;  %v9678_v12 = vld [vmem:[#allocation24_spill] sm:$0xff] }
 0x893   :  { %v4159_v29 = vsel %vm9672_vm8, %v4158_v39, inf  ;;  %vm9673_vm15 = vmmov %vm9672_vm8  ;;  %v8778_v49 = vsel %vm4229_vm1, %v9671_v27, -1.0  ;;  %v5043_v4 = vcvt.f32.s32 %v5042_v63  ;;  %v9676_v7 = vmax.f32 %v9674_v3, %v9675_v48 }
 0x894   :  { %v4187_v30 = vsel %vm9673_vm15, %v8763_v40, -inf  ;;  %v5044_v61 = vtrunc.f32 %v4075_v62  ;;  %v4118_v10 = vrot.slane %v4117_v5, 2  ;;  %v4161_v2 = vmin.f32 %v4160_v56, %v4159_v29  ;;  %vm9677_vm5 = vmmov %vm9672_vm8 }
 0x895   :  { %v4189_v44 = vmax.f32 %v9676_v7, %v4187_v30  ;;  %v4233_v41 = vsel %vm9677_vm5, %v8778_v49, -inf  ;;  %vm4031_vm7 = vcmp.eq.s32.totalorder %v8147_v54, %v5043_v4  ;;  %vm4032_vm12 = vcmp.eq.s32.totalorder %v8151_v21, %v5043_v4 }
 0x896   :  { %vm4033_vm3 = vcmp.eq.s32.totalorder %v8376_v19, %v5043_v4  ;;  %vm4034_vm13 = vcmp.eq.s32.totalorder %v8382_v33, %v5043_v4  ;;  %vm4035_vm4 = vcmp.eq.s32.totalorder %v9655_v8, %v5043_v4  ;;  %vm4036_vm0 = vcmp.eq.s32.totalorder %v9656_v32, %v5043_v4 }
 0x897   :  { %v4037_v0 = vsel %vm4031_vm7, 5, %v3991_v50  ;;  %v4038_v57 = vsel %vm4032_vm12, 5, %v3992_v35  ;;  %v4039_v16 = vsel %vm4033_vm3, 5, %v3993_v23  ;;  %v4040_v58 = vsel %vm4034_vm13, 5, %v3994_v31 }
 0x898   :  { %v4041_v38 = vsel %vm4035_vm4, 5, %v3995_v60  ;;  %v4042_v20 = vsel %vm4036_vm0, 5, %v3996_v47  ;;  %v5045_v34 = vcvt.f32.s32 %v5044_v61  ;;  %v4119_v15 = vmin.f32 %v4117_v5, %v4118_v10 }
 0x899   :  { %v4162_v42 = vrot.slane %v4161_v2, 4  ;;  %v4190_v24 = vrot.slane %v4189_v44, 4  ;;  %v9680_v52 = vmax.f32 %v9678_v12, %v9679_v46 }
 0x89a   :  { %vm4077_vm10 = vcmp.eq.s32.totalorder %v8147_v54, %v5045_v34  ;;  %vm4078_vm6 = vcmp.eq.s32.totalorder %v8151_v21, %v5045_v34  ;;  %vm4079_vm2 = vcmp.eq.s32.totalorder %v8376_v19, %v5045_v34  ;;  %vm4080_vm14 = vcmp.eq.s32.totalorder %v8382_v33, %v5045_v34 }
 0x89b   :  { %v4235_v51 = vmax.f32 %v9680_v52, %v4233_v41  ;;  %vm4081_vm11 = vcmp.eq.s32.totalorder %v9655_v8, %v5045_v34  ;;  %vm4082_vm8 = vcmp.eq.s32.totalorder %v9656_v32, %v5045_v34  ;;  %v4083_v1 = vsel %vm4077_vm10, 6, %v4037_v0 }
 0x89c   :  { %v4084_v18 = vsel %vm4078_vm6, 6, %v4038_v57  ;;  %v4085_v22 = vsel %vm4079_vm2, 6, %v4039_v16  ;;  %v4086_v14 = vsel %vm4080_vm14, 6, %v4040_v58  ;;  %v4087_v13 = vsel %vm4081_vm11, 6, %v4041_v38 }
 0x89d   :  { %v4088_v25 = vsel %vm4082_vm8, 6, %v4042_v20  ;;  %v4120_v26 = vrot.slane %v4119_v15, 1  ;;  %v4163_v9 = vmin.f32 %v4161_v2, %v4162_v42  ;;  %v4191_v37 = vmax.f32 %v4189_v44, %v4190_v24 }
 0x89e   :  { %v4236_v17 = vrot.slane %v4235_v51, 4  ;;  %vm9681_vm6 = vcmp.eq.s32.totalorder %v8186_v55, 9  ;;  %vm9684_vm14 = vcmp.eq.s32.totalorder %v8258_v43, 9 }
 0x89f   :  { %v4121_v11 = vmin.f32 %v4119_v15, %v4120_v26  ;;  %v4164_v36 = vrot.slane %v4163_v9, 2  ;;  %v4192_v39 = vrot.slane %v4191_v37, 2 }
 0x8a0   :  { %v4237_v27 = vmax.f32 %v4235_v51, %v4236_v17 }
 0x8a1   :  { %v5046_v50 = vtrunc.f32 %v4121_v11  ;;  %v4165_v35 = vmin.f32 %v4163_v9, %v4164_v36  ;;  %v4193_v23 = vmax.f32 %v4191_v37, %v4192_v39 }
 0x8a2   :  { %v4238_v31 = vrot.slane %v4237_v27, 2 }
 0x8a3   :  { %v5047_v60 = vcvt.f32.s32 %v5046_v50  ;;  %v4166_v47 = vrot.slane %v4165_v35, 1  ;;  %v4194_v63 = vrot.slane %v4193_v23, 1 }
 0x8a4   :  { %v4239_v62 = vmax.f32 %v4237_v27, %v4238_v31 }
 0x8a5   :  { %vm4123_vm15 = vcmp.eq.s32.totalorder %v8147_v54, %v5047_v60  ;;  %vm4124_vm5 = vcmp.eq.s32.totalorder %v8151_v21, %v5047_v60  ;;  %vm4125_vm7 = vcmp.eq.s32.totalorder %v8376_v19, %v5047_v60  ;;  %vm4126_vm12 = vcmp.eq.s32.totalorder %v8382_v33, %v5047_v60 }
 0x8a6   :  { %vm4127_vm3 = vcmp.eq.s32.totalorder %v9655_v8, %v5047_v60  ;;  %vm4128_vm13 = vcmp.eq.s32.totalorder %v9656_v32, %v5047_v60  ;;  %v4129_v5 = vsel %vm4123_vm15, 7, %v4083_v1  ;;  %v4130_v29 = vsel %vm4124_vm5, 7, %v4084_v18 }
 0x8a7   :  { %v4131_v56 = vsel %vm4125_vm7, 7, %v4085_v22  ;;  %v4132_v30 = vsel %vm4126_vm12, 7, %v4086_v14  ;;  %v4133_v4 = vsel %vm4127_vm3, 7, %v4087_v13  ;;  %v4134_v7 = vsel %vm4128_vm13, 7, %v4088_v25 }
 0x8a8   :  { %v4167_v44 = vmin.f32 %v4165_v35, %v4166_v47  ;;  %v4195_v61 = vmax.f32 %v4193_v23, %v4194_v63  ;;  %v4240_v10 = vrot.slane %v4239_v62, 1 }
 0x8aa   :  { %v5048_v2 = vtrunc.f32 %v4167_v44  ;;  %vm4196_vm4 = vcmp.ge.f32.partialorder %v9674_v3, %v4195_v61  ;;  %vm4197_vm0 = vcmp.ge.f32.partialorder %v9675_v48, %v4195_v61  ;;  %vm4198_vm10 = vcmp.ge.f32.partialorder %v8763_v40, %v4195_v61 }
 0x8ab   :  { %vm8811_vm2 = vmand %vm9681_vm6, %vm4196_vm4  ;;  %v4241_v0 = vmax.f32 %v4239_v62, %v4240_v10  ;;  %vm9689_vm4 = vcmp.eq.s32.totalorder %v8186_v55, 10 }
 0x8ac   :  { %v5049_v57 = vcvt.f32.s32 %v5048_v2  ;;  %vm8817_vm11 = vmand %vm9684_vm14, %vm4197_vm0  ;;  %v4202_v3 = vsel %vm8811_vm2, %v9613_v28, 20.0  ;;  %vm9692_vm2 = vcmp.eq.s32.totalorder %v8258_v43, 10 }
 0x8ad   :  { %vm8826_vm8 = vmand %vm4183_vm9, %vm4198_vm10  ;;  %v4203_v48 = vsel %vm8817_vm11, %v9614_v53, 20.0  ;;  %vm4242_vm15 = vcmp.ge.f32.partialorder %v9678_v12, %v4241_v0  ;;  %vm4243_vm5 = vcmp.ge.f32.partialorder %v9679_v46, %v4241_v0  ;;  %vm4244_vm7 = vcmp.ge.f32.partialorder %v8778_v49, %v4241_v0 }
 0x8ae   :  { %vm4169_vm12 = vcmp.eq.s32.totalorder %v8147_v54, %v5049_v57  ;;  %vm4170_vm3 = vcmp.eq.s32.totalorder %v8151_v21, %v5049_v57  ;;  %vm4171_vm13 = vcmp.eq.s32.totalorder %v8376_v19, %v5049_v57  ;;  %vm4172_vm9 = vcmp.eq.s32.totalorder %v8382_v33, %v5049_v57  ;;  %vm8842_vm0 = vmand %vm9689_vm4, %vm4242_vm15 }
 0x8af   :  { %vm4173_vm10 = vcmp.eq.s32.totalorder %v9655_v8, %v5049_v57  ;;  %vm4174_vm6 = vcmp.eq.s32.totalorder %v9656_v32, %v5049_v57  ;;  %v4175_v38 = vsel %vm4169_vm12, 8, %v4129_v5  ;;  %v4176_v20 = vsel %vm4170_vm3, 8, %v4130_v29  ;;  %vm4246_vm14 = vmand %vm9692_vm2, %vm4243_vm5 }
 0x8b0   :  { %v4177_v34 = vsel %vm4171_vm13, 8, %v4131_v56  ;;  %v4178_v15 = vsel %vm4172_vm9, 8, %v4132_v30  ;;  %v4179_v42 = vsel %vm4173_vm10, 8, %v4133_v4  ;;  %v4180_v24 = vsel %vm4174_vm6, 8, %v4134_v7  ;;  %vm4247_vm11 = vmand %vm4229_vm1, %vm4244_vm7 }
 0x8b1   :  { %v4204_v55 = vsel %vm8826_vm8, %v9615_v59, 20.0  ;;  %v4206_v12 = vmin.f32 %v4202_v3, %v4203_v48  ;;  %v4248_v46 = vsel %vm8842_vm0, %v9613_v28, 20.0  ;;  %v4249_v43 = vsel %vm4246_vm14, %v9614_v53, 20.0 }
 0x8b2   :  { %vm9693_vm15 = vcmask 1043456   ;;  %v4250_v51 = vsel %vm4247_vm11, %v9615_v59, 20.0  ;;  %v4252_v1 = vmin.f32 %v4248_v46, %v4249_v43 }
 0x8b3   :  { %v4205_v52 = vsel %vm9693_vm15, %v4204_v55, inf  ;;  %vm9694_vm5 = vmmov %vm9693_vm15 }
 0x8b4   :  { %v4207_v49 = vmin.f32 %v4206_v12, %v4205_v52  ;;  %v4251_v45 = vsel %vm9694_vm5, %v4250_v51, inf }
 0x8b5   :  { %v4253_v18 = vmin.f32 %v4252_v1, %v4251_v45 }
 0x8b6   :  { %v4208_v22 = vrot.slane %v4207_v49, 4 }
 0x8b7   :  { %v4254_v14 = vrot.slane %v4253_v18, 4 }
 0x8b8   :  { %v4209_v13 = vmin.f32 %v4207_v49, %v4208_v22 }
 0x8b9   :  { %v4255_v25 = vmin.f32 %v4253_v18, %v4254_v14 }
 0x8ba   :  { %v4210_v26 = vrot.slane %v4209_v13, 2 }
 0x8bb   :  { %v4256_v9 = vrot.slane %v4255_v25, 2 }
 0x8bc   :  { %v4211_v37 = vmin.f32 %v4209_v13, %v4210_v26 }
 0x8bd   :  { %v4257_v17 = vmin.f32 %v4255_v25, %v4256_v9 }
 0x8be   :  { %v4212_v28 = vrot.slane %v4211_v37, 1 }
 0x8bf   :  { %v4258_v11 = vrot.slane %v4257_v17, 1 }
 0x8c0   :  { %v4213_v53 = vmin.f32 %v4211_v37, %v4212_v28 }
 0x8c1   :  { %v4259_v36 = vmin.f32 %v4257_v17, %v4258_v11 }
 0x8c2   :  { %v5050_v39 = vtrunc.f32 %v4213_v53 }
 0x8c3   :  { %v5052_v27 = vtrunc.f32 %v4259_v36 }
 0x8c4   :  { %v5051_v59 = vcvt.f32.s32 %v5050_v39 }
 0x8c5   :  { %v5053_v50 = vcvt.f32.s32 %v5052_v27 }
 0x8c6   :  { %vm4215_vm1 = vcmp.eq.s32.totalorder %v8147_v54, %v5051_v59  ;;  %vm4216_vm8 = vcmp.eq.s32.totalorder %v8151_v21, %v5051_v59  ;;  %vm4217_vm7 = vcmp.eq.s32.totalorder %v8376_v19, %v5051_v59  ;;  %vm4218_vm12 = vcmp.eq.s32.totalorder %v8382_v33, %v5051_v59 }
 0x8c7   :  { %vm4219_vm3 = vcmp.eq.s32.totalorder %v9655_v8, %v5051_v59  ;;  %vm4220_vm13 = vcmp.eq.s32.totalorder %v9656_v32, %v5051_v59  ;;  %v4221_v35 = vsel %vm4215_vm1, 9, %v4175_v38  ;;  %v4222_v23 = vsel %vm4216_vm8, 9, %v4176_v20 }
 0x8c8   :  { %v4223_v31 = vsel %vm4217_vm7, 9, %v4177_v34  ;;  %v4224_v60 = vsel %vm4218_vm12, 9, %v4178_v15  ;;  %v4225_v47 = vsel %vm4219_vm3, 9, %v4179_v42  ;;  %v4226_v63 = vsel %vm4220_vm13, 9, %v4180_v24 }
 0x8c9   :  { %vm4261_vm9 = vcmp.eq.s32.totalorder %v8147_v54, %v5053_v50  ;;  %vm4262_vm4 = vcmp.eq.s32.totalorder %v8151_v21, %v5053_v50  ;;  %vm4263_vm0 = vcmp.eq.s32.totalorder %v8376_v19, %v5053_v50  ;;  %vm4264_vm10 = vcmp.eq.s32.totalorder %v8382_v33, %v5053_v50 }
 0x8ca   :  { %vm4265_vm6 = vcmp.eq.s32.totalorder %v9655_v8, %v5053_v50  ;;  %vm4266_vm2 = vcmp.eq.s32.totalorder %v9656_v32, %v5053_v50  ;;  %v8876_v62 = vsel %vm4261_vm9, 10, %v4221_v35  ;;  %v8878_v5 = vsel %vm4262_vm4, 10, %v4222_v23 }
 0x8cb   :  { %v8880_v29 = vsel %vm4263_vm0, 10, %v4223_v31  ;;  %v8882_v56 = vsel %vm4264_vm10, 10, %v4224_v60  ;;  %v8884_v30 = vsel %vm4265_vm6, 10, %v4225_v47  ;;  %v8886_v54 = vsel %vm4266_vm2, 10, %v4226_v63 }
 0x8cc   :  { %vm4273_vm14 = vcmp.eq.s32.totalorder %v8876_v62, 0  ;;  %vm4274_vm11 = vcmp.eq.s32.totalorder %v8878_v5, 0  ;;  %vm4275_vm15 = vcmp.eq.s32.totalorder %v8880_v29, 0  ;;  %vm4276_vm5 = vcmp.eq.s32.totalorder %v8882_v56, 0 }
 0x8cd   :  { %vm4277_vm1 = vcmp.eq.s32.totalorder %v8884_v30, 0  ;;  %vm4278_vm8 = vcmp.eq.s32.totalorder %v8886_v54, 0  ;;  %vm4311_vm3 = vcmp.eq.s32.totalorder %v8880_v29, 6  ;;  %vm4312_vm13 = vcmp.eq.s32.totalorder %v8882_v56, 6 }
 0x8ce   :  { %vm4313_vm9 = vcmp.eq.s32.totalorder %v8884_v30, 6  ;;  %vm4314_vm4 = vcmp.eq.s32.totalorder %v8886_v54, 6  ;;  %vm4315_vm0 = vcmp.eq.s32.totalorder %v8876_v62, 7  ;;  %vm4316_vm10 = vcmp.eq.s32.totalorder %v8878_v5, 7 }
 0x8cf   :  { %v4345_v21 = vsel %vm4273_vm14, 1, %v9657_v6  ;;  %v4346_v19 = vsel %vm4274_vm11, 1, %v9657_v6  ;;  %v4347_v33 = vsel %vm4275_vm15, 1, %v9657_v6  ;;  %v4348_v8 = vsel %vm4276_vm5, 1, %v9657_v6 }
 0x8d0   :  { %v4349_v32 = vsel %vm4277_vm1, 1, %v9657_v6  ;;  %v4350_v4 = vsel %vm4278_vm8, 1, %v9657_v6  ;;  %vm9695_vm11 = vcmp.eq.s32.totalorder %v8876_v62, 1  ;;  %vm9696_vm15 = vcmp.eq.s32.totalorder %v8878_v5, 1 }
 0x8d1   :  { %v4351_v7 = vsel %vm9695_vm11, 1, %v9657_v6  ;;  %v4352_v44 = vsel %vm9696_vm15, 1, %v9657_v6  ;;  %vm9697_vm5 = vcmask 392192   ;;  %vm9701_vm6 = vcmp.eq.s32.totalorder %v8880_v29, 1 }
 0x8d2   :  { %4417 = vst.msk [vmem:[#allocation6] sm:$0xff] %vm9697_vm5, %v4345_v21  ;;  %vm9698_vm2 = vmmov %vm9697_vm5  ;;  %v4353_v61 = vsel %vm9701_vm6, 1, %v9657_v6  ;;  %vm9702_vm15 = vcmp.eq.s32.totalorder %v8882_v56, 1  ;;  %vm9708_vm1 = vcmp.eq.s32.totalorder %v8876_v62, 2  ;;  %vm9715_vm6 = vcmp.eq.s32.totalorder %v8884_v30, 2 }
 0x8d3   :  { %4418 = vst.msk [vmem:[#allocation6 + $0x8] sm:$0xff] %vm9698_vm2, %v4346_v19  ;;  %vm9699_vm14 = vmmov %vm9698_vm2  ;;  %v4354_v10 = vsel %vm9702_vm15, 1, %v9657_v6  ;;  %v4357_v0 = vsel %vm9708_vm1, 1, %v9657_v6  ;;  %v4361_v40 = vsel %vm9715_vm6, 1, %v9657_v6  ;;  %vm9722_vm1 = vcmp.eq.s32.totalorder %v8880_v29, 3 }
 0x8d4   :  { %4419 = vst.msk [vmem:[#allocation6 + $0x10] sm:$0xff] %vm9699_vm14, %v4347_v33  ;;  %vm9700_vm12 = vmmov %vm9698_vm2  ;;  %vm9703_vm2 = vcmp.eq.s32.totalorder %v8884_v30, 1  ;;  %v4365_v20 = vsel %vm9722_vm1, 1, %v9657_v6  ;;  %vm4341_vm1 = vcmp.eq.s32.totalorder %v8880_v29, 11  ;;  %vm9729_vm6 = vcmp.eq.s32.totalorder %v8876_v62, 4 }
 0x8d5   :  { %4420 = vst.msk [vmem:[#allocation6 + $0x18] sm:$0xff] %vm9700_vm12, %v4348_v8  ;;  %v4355_v2 = vsel %vm9703_vm2, 1, %v9657_v6  ;;  %vm9704_vm12 = vcmp.eq.s32.totalorder %v8886_v54, 1  ;;  %vm9705_vm14 = vmmov %vm9697_vm5  ;;  %v4369_v24 = vsel %vm9729_vm6, 1, %v9657_v6  ;;  %vm9736_vm6 = vcmp.eq.s32.totalorder %v8884_v30, 4 }
 0x8d6   :  { %v4356_v41 = vsel %vm9704_vm12, 1, %v9657_v6  ;;  %4421 = vst.msk [vmem:[#allocation6 + $0x20] sm:$0xff] %vm9705_vm14, %v4349_v32  ;;  %vm9706_vm11 = vmmov %vm9697_vm5  ;;  %vm9709_vm12 = vcmp.eq.s32.totalorder %v8878_v5, 2  ;;  %v4373_v43 = vsel %vm9736_vm6, 1, %v9657_v6  ;;  %vm9743_vm6 = vcmp.eq.s32.totalorder %v8880_v29, 5 }
 0x8d7   :  { %4422 = vst.msk [vmem:[#allocation6 + $0x28] sm:$0xff] %vm9697_vm5, %v4350_v4  ;;  %vm9707_vm7 = vmmov %vm9697_vm5  ;;  %v4358_v57 = vsel %vm9709_vm12, 1, %v9657_v6  ;;  %v4377_v49 = vsel %vm9743_vm6, 1, %v9657_v6  ;;  %vm9750_vm6 = vcmp.eq.s32.totalorder %v8876_v62, 6  ;;  %v4383_v25 = vsel %vm4311_vm3, 1, %v9657_v6 }
 0x8d8   :  { %4423 = vst.msk [vmem:[#allocation6 + $0x30] sm:$0xff] %vm9706_vm11, %v4351_v7  ;;  %vm9710_vm11 = vcmp.eq.s32.totalorder %v8880_v29, 2  ;;  %vm9712_vm14 = vmmov %vm9697_vm5  ;;  %v4381_v14 = vsel %vm9750_vm6, 1, %v9657_v6  ;;  %v4384_v26 = vsel %vm4312_vm13, 1, %v9657_v6  ;;  %v4385_v9 = vsel %vm4313_vm9, 1, %v9657_v6 }
 0x8d9   :  { %4424 = vst.msk [vmem:[#allocation6 + $0x38] sm:$0xff] %vm9707_vm7, %v4352_v44  ;;  %v4359_v16 = vsel %vm9710_vm11, 1, %v9657_v6  ;;  %vm9711_vm7 = vcmp.eq.s32.totalorder %v8882_v56, 2  ;;  %vm9713_vm2 = vmmov %vm9697_vm5  ;;  %v4386_v37 = vsel %vm4314_vm4, 1, %v9657_v6  ;;  %v4387_v17 = vsel %vm4315_vm0, 1, %v9657_v6 }
 0x8da   :  { %v4360_v3 = vsel %vm9711_vm7, 1, %v9657_v6  ;;  %4425 = vst.msk [vmem:[#allocation6 + $0x40] sm:$0xff] %vm9712_vm14, %v4353_v61  ;;  %vm9714_vm8 = vmmov %vm9713_vm2  ;;  %vm9716_vm7 = vcmp.eq.s32.totalorder %v8886_v54, 2  ;;  %v4388_v28 = vsel %vm4316_vm10, 1, %v9657_v6  ;;  %vm9760_vm9 = vcmp.eq.s32.totalorder %v8880_v29, 7 }
 0x8db   :  { %4426 = vst.msk [vmem:[#allocation6 + $0x48] sm:$0xff] %vm9697_vm5, %v4354_v10  ;;  %v4362_v48 = vsel %vm9716_vm7, 1, %v9657_v6  ;;  %vm9719_vm14 = vmmov %vm9697_vm5  ;;  %v4389_v11 = vsel %vm9760_vm9, 1, %v9657_v6  ;;  %vm9761_vm4 = vcmp.eq.s32.totalorder %v8882_v56, 7  ;;  %vm9762_vm0 = vcmp.eq.s32.totalorder %v8884_v30, 7 }
 0x8dc   :  { %4427 = vst.msk [vmem:[#allocation6 + $0x50] sm:$0xff] %vm9713_vm2, %v4355_v2  ;;  %vm9717_vm2 = vcmp.eq.s32.totalorder %v8876_v62, 3  ;;  %vm9720_vm11 = vmmov %vm9697_vm5  ;;  %v4390_v53 = vsel %vm9761_vm4, 1, %v9657_v6  ;;  %v4391_v36 = vsel %vm9762_vm0, 1, %v9657_v6  ;;  %vm9763_vm10 = vcmp.eq.s32.totalorder %v8886_v54, 7 }
 0x8dd   :  { %4428 = vst.msk [vmem:[#allocation6 + $0x58] sm:$0xff] %vm9714_vm8, %v4356_v41  ;;  %v4363_v58 = vsel %vm9717_vm2, 1, %v9657_v6  ;;  %vm9718_vm8 = vcmp.eq.s32.totalorder %v8878_v5, 3  ;;  %vm9721_vm15 = vmmov %vm9697_vm5  ;;  %v4392_v39 = vsel %vm9763_vm10, 1, %v9657_v6  ;;  %vm9775_vm0 = vcmp.eq.s32.totalorder %v8884_v30, 8 }
 0x8de   :  { %v4364_v38 = vsel %vm9718_vm8, 1, %v9657_v6  ;;  %4429 = vst.msk [vmem:[#allocation6 + $0x60] sm:$0xff] %vm9719_vm14, %v4357_v0  ;;  %vm9723_vm8 = vcmp.eq.s32.totalorder %v8882_v56, 3  ;;  %vm9726_vm14 = vmmov %vm9697_vm5  ;;  %v4397_v23 = vsel %vm9775_vm0, 1, %v9657_v6  ;;  %vm9776_vm10 = vcmp.eq.s32.totalorder %v8886_v54, 8 }
 0x8df   :  { %4430 = vst.msk [vmem:[#allocation6 + $0x68] sm:$0xff] %vm9697_vm5, %v4358_v57  ;;  %v4366_v34 = vsel %vm9723_vm8, 1, %v9657_v6  ;;  %4434 = vst.msk [vmem:[#allocation6 + $0x88] sm:$0xff] %vm9697_vm5, %v4362_v48  ;;  %vm4342_vm8 = vcmp.eq.s32.totalorder %v8882_v56, 11  ;;  %v4398_v31 = vsel %vm9776_vm10, 1, %v9657_v6  ;;  %v4413_v41 = vsel %vm4341_vm1, 1, %v9657_v6 }
 0x8e0   :  { %4431 = vst.msk [vmem:[#allocation6 + $0x70] sm:$0xff] %vm9720_vm11, %v4359_v16  ;;  %vm9724_vm11 = vcmp.eq.s32.totalorder %v8884_v30, 3  ;;  %vm9727_vm2 = vmmov %vm9697_vm5 }
 0x8e1   :  { %4432 = vst.msk [vmem:[#allocation6 + $0x78] sm:$0xff] %vm9721_vm15, %v4360_v3  ;;  %v4367_v15 = vsel %vm9724_vm11, 1, %v9657_v6  ;;  %vm9725_vm15 = vcmp.eq.s32.totalorder %v8886_v54, 3  ;;  %vm9728_vm12 = vmmov %vm9727_vm2 }
 0x8e2   :  { %v4368_v42 = vsel %vm9725_vm15, 1, %v9657_v6  ;;  %4433 = vst.msk [vmem:[#allocation6 + $0x80] sm:$0xff] %vm9726_vm14, %v4361_v40  ;;  %vm9730_vm15 = vcmp.eq.s32.totalorder %v8878_v5, 4  ;;  %vm9733_vm14 = vmmov %vm9697_vm5 }
 0x8e3   :  { %4435 = vst.msk [vmem:[#allocation6 + $0x90] sm:$0xff] %vm9727_vm2, %v4363_v58  ;;  %v4370_v55 = vsel %vm9730_vm15, 1, %v9657_v6  ;;  %vm9731_vm2 = vcmp.eq.s32.totalorder %v8880_v29, 4  ;;  %vm9734_vm11 = vmmov %vm9697_vm5  ;;  %vm9737_vm15 = vcmp.eq.s32.totalorder %v8886_v54, 4 }
 0x8e4   :  { %4436 = vst.msk [vmem:[#allocation6 + $0x98] sm:$0xff] %vm9728_vm12, %v4364_v38  ;;  %v4371_v12 = vsel %vm9731_vm2, 1, %v9657_v6  ;;  %vm9732_vm12 = vcmp.eq.s32.totalorder %v8882_v56, 4  ;;  %vm9735_vm7 = vmmov %vm9697_vm5  ;;  %v4374_v52 = vsel %vm9737_vm15, 1, %v9657_v6  ;;  %vm9738_vm2 = vcmp.eq.s32.totalorder %v8876_v62, 5 }
 0x8e5   :  { %v4372_v46 = vsel %vm9732_vm12, 1, %v9657_v6  ;;  %4437 = vst.msk [vmem:[#allocation6 + $0xa0] sm:$0xff] %vm9733_vm14, %v4365_v20  ;;  %v4375_v51 = vsel %vm9738_vm2, 1, %v9657_v6  ;;  %vm9739_vm12 = vcmp.eq.s32.totalorder %v8878_v5, 5  ;;  %vm9740_vm14 = vmmov %vm9697_vm5  ;;  %vm9744_vm15 = vcmp.eq.s32.totalorder %v8882_v56, 5 }
 0x8e6   :  { %4438 = vst.msk [vmem:[#allocation6 + $0xa8] sm:$0xff] %vm9697_vm5, %v4366_v34  ;;  %v4376_v1 = vsel %vm9739_vm12, 1, %v9657_v6  ;;  %4444 = vst.msk [vmem:[#allocation6 + $0xd8] sm:$0xff] %vm9697_vm5, %v4372_v46  ;;  %v4378_v45 = vsel %vm9744_vm15, 1, %v9657_v6  ;;  %vm9745_vm2 = vcmp.eq.s32.totalorder %v8884_v30, 5  ;;  %vm9746_vm12 = vcmp.eq.s32.totalorder %v8886_v54, 5 }
 0x8e7   :  { %4439 = vst.msk [vmem:[#allocation6 + $0xb0] sm:$0xff] %vm9734_vm11, %v4367_v15  ;;  %vm9741_vm11 = vmmov %vm9697_vm5  ;;  %v4379_v18 = vsel %vm9745_vm2, 1, %v9657_v6  ;;  %v4380_v22 = vsel %vm9746_vm12, 1, %v9657_v6  ;;  %vm9751_vm15 = vcmp.eq.s32.totalorder %v8878_v5, 6 }
 0x8e8   :  { %4440 = vst.msk [vmem:[#allocation6 + $0xb8] sm:$0xff] %vm9735_vm7, %v4368_v42  ;;  %vm9742_vm7 = vmmov %vm9697_vm5  ;;  %v4382_v13 = vsel %vm9751_vm15, 1, %v9657_v6 }
 0x8e9   :  { %4441 = vst.msk [vmem:[#allocation6 + $0xc0] sm:$0xff] %vm9740_vm14, %v4369_v24  ;;  %vm9747_vm14 = vmmov %vm9697_vm5 }
 0x8ea   :  { %4442 = vst.msk [vmem:[#allocation6 + $0xc8] sm:$0xff] %vm9741_vm11, %v4370_v55  ;;  %vm9748_vm11 = vmmov %vm9697_vm5 }
 0x8eb   :  { %4443 = vst.msk [vmem:[#allocation6 + $0xd0] sm:$0xff] %vm9742_vm7, %v4371_v12  ;;  %vm9749_vm7 = vmmov %vm9697_vm5 }
 0x8ec   :  { %4445 = vst.msk [vmem:[#allocation6 + $0xe0] sm:$0xff] %vm9747_vm14, %v4373_v43  ;;  %vm9752_vm2 = vmmov %vm9697_vm5 }
 0x8ed   :  { %4446 = vst.msk [vmem:[#allocation6 + $0xe8] sm:$0xff] %vm9748_vm11, %v4374_v52  ;;  %vm9753_vm12 = vmmov %vm9752_vm2 }
 0x8ee   :  { %4447 = vst.msk [vmem:[#allocation6 + $0xf0] sm:$0xff] %vm9749_vm7, %v4375_v51  ;;  %vm9754_vm14 = vmmov %vm9752_vm2 }
 0x8ef   :  { %4448 = vst.msk [vmem:[#allocation6 + $0xf8] sm:$0xff] %vm9697_vm5, %v4376_v1  ;;  %vm9755_vm11 = vmmov %vm9752_vm2 }
 0x8f0   :  { %4449 = vst.msk [vmem:[#allocation6 + $0x100] sm:$0xff] %vm9752_vm2, %v4377_v49  ;;  %vm9756_vm3 = vmmov %vm9752_vm2 }
 0x8f1   :  { %4450 = vst.msk [vmem:[#allocation6 + $0x108] sm:$0xff] %vm9753_vm12, %v4378_v45  ;;  %vm9757_vm13 = vmmov %vm9752_vm2 }
 0x8f2   :  { %4451 = vst.msk [vmem:[#allocation6 + $0x110] sm:$0xff] %vm9754_vm14, %v4379_v18  ;;  %vm9758_vm7 = vmmov %vm9752_vm2  ;;  %vm9767_vm14 = vcmp.eq.s32.totalorder %v8876_v62, 8 }
 0x8f3   :  { %4452 = vst.msk [vmem:[#allocation6 + $0x118] sm:$0xff] %vm9755_vm11, %v4380_v22  ;;  %vm9759_vm5 = vmmov %vm9752_vm2  ;;  %v4393_v27 = vsel %vm9767_vm14, 1, %v9657_v6  ;;  %vm9768_vm11 = vcmp.eq.s32.totalorder %v8878_v5, 8 }
 0x8f4   :  { %4453 = vst.msk [vmem:[#allocation6 + $0x120] sm:$0xff] %vm9756_vm3, %v4381_v14  ;;  %vm9764_vm6 = vmmov %vm9752_vm2  ;;  %v4394_v59 = vsel %vm9768_vm11, 1, %v9657_v6  ;;  %vm9769_vm3 = vcmp.eq.s32.totalorder %v8880_v29, 8 }
 0x8f5   :  { %4454 = vst.msk [vmem:[#allocation6 + $0x128] sm:$0xff] %vm9757_vm13, %v4382_v13  ;;  %vm9765_vm15 = vmmov %vm9752_vm2  ;;  %v4395_v50 = vsel %vm9769_vm3, 1, %v9657_v6  ;;  %vm9770_vm13 = vcmp.eq.s32.totalorder %v8882_v56, 8  ;;  %vm9782_vm3 = vcmp.eq.s32.totalorder %v8880_v29, 9 }
 0x8f6   :  { %4455 = vst.msk [vmem:[#allocation6 + $0x130] sm:$0xff] %vm9758_vm7, %v4383_v25  ;;  %vm9766_vm12 = vmmov %vm9752_vm2  ;;  %v4396_v35 = vsel %vm9770_vm13, 1, %v9657_v6  ;;  %v4401_v63 = vsel %vm9782_vm3, 1, %v9657_v6  ;;  %vm9783_vm13 = vcmp.eq.s32.totalorder %v8882_v56, 9 }
 0x8f7   :  { %4456 = vst.msk [vmem:[#allocation6 + $0x138] sm:$0xff] %vm9759_vm5, %v4384_v26  ;;  %vm9771_vm7 = vmmov %vm9752_vm2  ;;  %v4402_v21 = vsel %vm9783_vm13, 1, %v9657_v6 }
 0x8f8   :  { %4457 = vst.msk [vmem:[#allocation6 + $0x140] sm:$0xff] %vm9764_vm6, %v4385_v9  ;;  %vm9772_vm5 = vmmov %vm9752_vm2  ;;  %vm9777_vm6 = vcmp.eq.s32.totalorder %v8876_v62, 9 }
 0x8f9   :  { %4458 = vst.msk [vmem:[#allocation6 + $0x148] sm:$0xff] %vm9765_vm15, %v4386_v37  ;;  %vm9773_vm9 = vmmov %vm9752_vm2  ;;  %v4399_v60 = vsel %vm9777_vm6, 1, %v9657_v6  ;;  %vm9778_vm15 = vcmp.eq.s32.totalorder %v8878_v5, 9  ;;  %vm9790_vm6 = vcmp.eq.s32.totalorder %v8876_v62, 10 }
 0x8fa   :  { %4459 = vst.msk [vmem:[#allocation6 + $0x150] sm:$0xff] %vm9752_vm2, %v4387_v17  ;;  %vm9774_vm4 = vmmov %vm9752_vm2  ;;  %v4400_v47 = vsel %vm9778_vm15, 1, %v9657_v6  ;;  %v4405_v8 = vsel %vm9790_vm6, 1, %v9657_v6  ;;  %vm9791_vm15 = vcmp.eq.s32.totalorder %v8878_v5, 10 }
 0x8fb   :  { %4460 = vst.msk [vmem:[#allocation6 + $0x158] sm:$0xff] %vm9766_vm12, %v4388_v28  ;;  %vm9779_vm12 = vmmov %vm9752_vm2  ;;  %v4406_v32 = vsel %vm9791_vm15, 1, %v9657_v6 }
 0x8fc   :  { %4461 = vst.msk [vmem:[#allocation6 + $0x160] sm:$0xff] %vm9771_vm7, %v4389_v11  ;;  %vm9780_vm14 = vmmov %vm9752_vm2  ;;  %vm9784_vm7 = vcmp.eq.s32.totalorder %v8884_v30, 9 }
 0x8fd   :  { %4462 = vst.msk [vmem:[#allocation6 + $0x168] sm:$0xff] %vm9772_vm5, %v4390_v53  ;;  %vm9781_vm11 = vmmov %vm9752_vm2  ;;  %v4403_v19 = vsel %vm9784_vm7, 1, %v9657_v6  ;;  %vm9785_vm5 = vcmp.eq.s32.totalorder %v8886_v54, 9  ;;  %vm9798_vm7 = vcmp.eq.s32.totalorder %v8884_v30, 10 }
 0x8fe   :  { %4463 = vst.msk [vmem:[#allocation6 + $0x170] sm:$0xff] %vm9773_vm9, %v4391_v36  ;;  %v4404_v33 = vsel %vm9785_vm5, 1, %v9657_v6  ;;  %vm9786_vm9 = vmmov %vm9752_vm2  ;;  %v4409_v44 = vsel %vm9798_vm7, 1, %v9657_v6  ;;  %vm9799_vm5 = vcmp.eq.s32.totalorder %v8886_v54, 10 }
 0x8ff   :  { %4464 = vst.msk [vmem:[#allocation6 + $0x178] sm:$0xff] %vm9774_vm4, %v4392_v39  ;;  %vm9787_vm4 = vmmov %vm9752_vm2  ;;  %v4410_v61 = vsel %vm9799_vm5, 1, %v9657_v6 }
 0x900   :  { %4465 = vst.msk [vmem:[#allocation6 + $0x180] sm:$0xff] %vm9752_vm2, %v4393_v27  ;;  %vm9788_vm0 = vmmov %vm9752_vm2  ;;  %vm9792_vm2 = vcmp.eq.s32.totalorder %v8880_v29, 10 }
 0x901   :  { %4466 = vst.msk [vmem:[#allocation6 + $0x188] sm:$0xff] %vm9779_vm12, %v4394_v59  ;;  %vm9789_vm10 = vmmov %vm9788_vm0  ;;  %v4407_v4 = vsel %vm9792_vm2, 1, %v9657_v6  ;;  %vm9793_vm12 = vcmp.eq.s32.totalorder %v8882_v56, 10  ;;  %vm9805_vm2 = vcmp.eq.s32.totalorder %v8884_v30, 11 }
 0x902   :  { %4467 = vst.msk [vmem:[#allocation6 + $0x190] sm:$0xff] %vm9780_vm14, %v4395_v50  ;;  %v4408_v7 = vsel %vm9793_vm12, 1, %v9657_v6  ;;  %vm9794_vm14 = vmmov %vm9788_vm0  ;;  %vm9806_vm12 = vcmp.eq.s32.totalorder %v8886_v54, 11 }
 0x903   :  { %4468 = vst.msk [vmem:[#allocation6 + $0x198] sm:$0xff] %vm9781_vm11, %v4396_v35  ;;  %vm9795_vm11 = vmmov %vm9788_vm0  ;;  %v4416_v0 = vsel %vm9806_vm12, 1, %v9657_v6 }
 0x904   :  { %4469 = vst.msk [vmem:[#allocation6 + $0x1a0] sm:$0xff] %vm9786_vm9, %v4397_v23  ;;  %vm9796_vm3 = vmmov %vm9788_vm0  ;;  %vm9800_vm9 = vcmp.eq.s32.totalorder %v8876_v62, 11  ;;  %v4414_v62 = vsel %vm4342_vm8, 1, %v9657_v6 }
 0x905   :  { %4470 = vst.msk [vmem:[#allocation6 + $0x1a8] sm:$0xff] %vm9787_vm4, %v4398_v31  ;;  %vm9797_vm13 = vmmov %vm9788_vm0  ;;  %v4411_v10 = vsel %vm9800_vm9, 1, %v9657_v6  ;;  %vm9801_vm4 = vcmp.eq.s32.totalorder %v8878_v5, 11  ;;  %v4415_v5 = vsel %vm9805_vm2, 1, %v9657_v6 }
 0x906   :  { %4471 = vst.msk [vmem:[#allocation6 + $0x1b0] sm:$0xff] %vm9788_vm0, %v4399_v60  ;;  %v4412_v2 = vsel %vm9801_vm4, 1, %v9657_v6  ;;  %4477 = vst.msk [vmem:[#allocation6 + $0x1e0] sm:$0xff] %vm9788_vm0, %v4405_v8 }
 0x907   :  { %4472 = vst.msk [vmem:[#allocation6 + $0x1b8] sm:$0xff] %vm9789_vm10, %v4400_v47  ;;  %vm9802_vm10 = vmmov %vm9788_vm0 }
 0x908   :  { %4473 = vst.msk [vmem:[#allocation6 + $0x1c0] sm:$0xff] %vm9794_vm14, %v4401_v63  ;;  %vm9803_vm6 = vmmov %vm9788_vm0 }
 0x909   :  { %4474 = vst.msk [vmem:[#allocation6 + $0x1c8] sm:$0xff] %vm9795_vm11, %v4402_v21  ;;  %vm9804_vm15 = vmmov %vm9788_vm0 }
 0x90a   :  { %4475 = vst.msk [vmem:[#allocation6 + $0x1d0] sm:$0xff] %vm9796_vm3, %v4403_v19  ;;  %vm9807_vm14 = vmmov %vm9788_vm0 }
 0x90b   :  { %4476 = vst.msk [vmem:[#allocation6 + $0x1d8] sm:$0xff] %vm9797_vm13, %v4404_v33  ;;  %vm9808_vm11 = vmmov %vm9788_vm0 }
 0x90c   :  { %4478 = vst.msk [vmem:[#allocation6 + $0x1e8] sm:$0xff] %vm9802_vm10, %v4406_v32  ;;  %vm9809_vm3 = vmmov %vm9788_vm0 }
 0x90d   :  { %4479 = vst.msk [vmem:[#allocation6 + $0x1f0] sm:$0xff] %vm9803_vm6, %v4407_v4  ;;  %vm9810_vm13 = vmmov %vm9788_vm0 }
 0x90e   :  { %4480 = vst.msk [vmem:[#allocation6 + $0x1f8] sm:$0xff] %vm9804_vm15, %v4408_v7  ;;  %vm9811_vm1 = vmmov %vm9788_vm0 }
 0x90f   :  { %4481 = vst.msk [vmem:[#allocation6 + $0x200] sm:$0xff] %vm9807_vm14, %v4409_v44  ;;  %vm9812_vm7 = vmmov %vm9788_vm0 }
 0x910   :  { %4482 = vst.msk [vmem:[#allocation6 + $0x208] sm:$0xff] %vm9808_vm11, %v4410_v61  ;;  %vm9813_vm8 = vmmov %vm9788_vm0 }
 0x911   :  { %4483 = vst.msk [vmem:[#allocation6 + $0x210] sm:$0xff] %vm9809_vm3, %v4411_v10  ;;  %vm9814_vm5 = vmmov %vm9788_vm0 }
 0x912   :  { %4484 = vst.msk [vmem:[#allocation6 + $0x218] sm:$0xff] %vm9810_vm13, %v4412_v2 }
 0x913   :  { %4485 = vst.msk [vmem:[#allocation6 + $0x220] sm:$0xff] %vm9811_vm1, %v4413_v41 }
 0x914   :  { %4486 = vst.msk [vmem:[#allocation6 + $0x228] sm:$0xff] %vm9812_vm7, %v4414_v62 }
 0x915   :  { %4487 = vst.msk [vmem:[#allocation6 + $0x230] sm:$0xff] %vm9813_vm8, %v4415_v5 }
 0x916   :  { %4488 = vst.msk [vmem:[#allocation6 + $0x238] sm:$0xff] %vm9814_vm5, %v4416_v0 }
 0x917   :  { %5434 = shalt.err (!%p5431_p6)
}
 0x918   :  { %s5435_s16 = scalar_lea.hbm %s9277_s14, 9216 }
 0x919   :  { %p5436_p7 = scmp.ne.s32.totalorder %s9277_s14, %s5435_s16  ;;  %p5439_p8 = scmp.lt.u32.totalorder %s5435_s16, %s9277_s14 }
 0x91b   :  { %p5441_p9 = pnand %p5439_p8, %p5436_p7 }
 0x91d   :  { %5444 = shalt.err (!%p5441_p9)
}
 0x91e   :  { %4524 = dma.vmem_to_hbm [thread:$0]  %s4519_s30, 9216, %s9277_s14, [#allocation5], %s5452_s8, %s5452_s8, %s5453_s24  }
 0x91f   :  { %5445 = dma.done.wait [#allocation3], 15360  }
 0x920   :  { %5446 = vsyncadd [#allocation3], 4294951936 }
 0x921   :  { %5447 = dma.done.wait [#allocation5], 10752  }
 0x922   :  { %5448 = vsyncadd [#allocation5], 4294956544 }
 0x923   :  { %4538 = vsyncpa [#allocation3], 1 }
 0x924   :  { %4539 = vsyncpa [#allocation5], 1 }

</bundles_post_ra>
